<compile_context>
chip_gen: v6e
topology: v6e:2x2x1
jax: 0.10.0
libtpu: 0.0.40
codegen_flags: <defaults>
</compile_context>

<pallas_src>
import functools

import jax
import jax.numpy as jnp
from jax.experimental import pallas as pl
from jax.experimental.pallas import tpu as pltpu


def _pad1_hw(x):
    """Zero-pad an (H, W, C) value by 1 on both spatial dims -> (H+2, W+2, C).

    Built with concatenation along non-lane axes (lowers cleanly in Mosaic);
    the channel/lane axis is untouched.
    """
    h, w, c = x.shape
    zc = jnp.zeros((h, 1, c), x.dtype)
    x = jnp.concatenate([zc, x, zc], axis=1)            # (H, W+2, C)
    zr = jnp.zeros((1, w + 2, c), x.dtype)
    return jnp.concatenate([zr, x, zr], axis=0)         # (H+2, W+2, C)


def _groupnorm_silu(x2d, gamma, beta, eps):
    """GroupNorm(num_groups=1) over a whole (S, C) sample + SiLU, f32 math.

    One-pass statistics (var = E[x^2] - E[x]^2), clamped >= 0 before rsqrt.
    """
    n = x2d.shape[0] * x2d.shape[1]
    s1 = jnp.sum(x2d)
    s2 = jnp.sum(x2d * x2d)
    mean = s1 / n
    var = jnp.maximum(s2 / n - mean * mean, 0.0)
    inv = jax.lax.rsqrt(var + eps)
    xn = (x2d - mean) * inv * gamma + beta              # (1, C) affine broadcast
    return xn * jax.nn.sigmoid(xn)                      # SiLU


def _conv3x3(h_f32, w_ref, mxu_dtype, use_im2col):
    """3x3 'SAME' conv of an (H, W, C) f32 activation map (no bias).

    `w_ref` holds the (9*C, Cout) weight in im2col row order (ky, kx, cin),
    already in the MXU dtype.  Returns an (H*W, Cout) float32 result.
    """
    H, W, C = h_f32.shape
    S = H * W
    Cout = w_ref.shape[-1]
    xp = _pad1_hw(h_f32)                                # (H+2, W+2, C) f32

    def window(ky, kx):
        # f32 window slice (proven lowering path), cast to the MXU dtype right
        # away so everything downstream (concat / matmul operand) moves half
        # the bytes.
        return xp[ky:ky + H, kx:kx + W, :].reshape(S, C).astype(mxu_dtype)

    if use_im2col:
        # Small C: one K=9C matmul; the (S, 9C) patch matrix is built in bf16.
        patch = jnp.concatenate(
            [window(ky, kx) for ky in range(3) for kx in range(3)], axis=-1)
        return jnp.dot(patch, w_ref[...], preferred_element_type=jnp.float32)

    # Production C: 9 accumulated K=C matmuls — no 9x im2col duplication and
    # only one (S, C) bf16 window live at a time.
    acc = jnp.zeros((S, Cout), jnp.float32)
    for ky in range(3):
        for kx in range(3):
            k = ky * 3 + kx
            acc = acc + jnp.dot(window(ky, kx), w_ref[k * C:(k + 1) * C, :],
                                preferred_element_type=jnp.float32)
    return acc


def _resnet_block_kernel(x_ref, g1_ref, bn1_ref, w1_ref, b1_ref,
                         g2_ref, bn2_ref, w2_ref, b2_ref, o_ref,
                         *, H, W, eps, mxu_dtype, use_im2col):
    x = x_ref[...]                                      # (H, W, Cin) f32 residual
    Cin = x.shape[-1]
    Cout = o_ref.shape[-1]
    S = H * W

    # ---- norm1 + SiLU (f32, VPU/EUP) ----
    h1 = _groupnorm_silu(x.reshape(S, Cin), g1_ref[...], bn1_ref[...], eps)

    # ---- conv1: 3x3, pad 1 (bf16 MXU operands, f32 accumulation) ----
    y1 = _conv3x3(h1.reshape(H, W, Cin), w1_ref, mxu_dtype, use_im2col)
    y1 = y1 + b1_ref[...]                               # (S, Cout) f32

    # ---- norm2 + SiLU (f32) ----
    h2 = _groupnorm_silu(y1, g2_ref[...], bn2_ref[...], eps)
    # TODO(synk): training-mode nn.Dropout (stochastic mask via pltpu.prng_*)
    # is not implemented; eval-mode (identity) semantics are used here.

    # ---- conv2: 3x3, pad 1 ----
    y2 = _conv3x3(h2.reshape(H, W, Cout), w2_ref, mxu_dtype, use_im2col)
    y2 = y2 + b2_ref[...]                               # (S, Cout) f32

    # ---- residual add (original, un-normalized input) ----
    # TODO(synk): for C < 128 this store is lane-masked (C/128 lanes used);
    # see review item 4 note at the top of the file.
    o_ref[...] = x + y2.reshape(H, W, Cout)


def resnet_block(x_nchw, params, *, eps=1e-5, mxu_dtype=jnp.bfloat16):
    """x_nchw: (B, Cin, H, W) float32. Returns (B, Cout, H, W) float32."""
    b, c_in, h, w = x_nchw.shape
    c_out = params["conv1_w"].shape[0]
    # The PyTorch module's `x + residual` requires matching channel counts.
    assert c_in == c_out, "residual add requires in_channels == out_channels"

    # Conv strategy: im2col (single K=9C matmul) only for small C; at
    # production channel counts switch to 9 accumulated K=C matmuls.
    use_im2col = c_in < 128

    # NCHW -> NHWC (channels on the lane axis).
    x = jnp.transpose(x_nchw, (0, 2, 3, 1))

    # Conv weights (Cout, Cin, 3, 3) -> (3*3*Cin, Cout) with (ky, kx, cin) row
    # order matching the in-kernel window order; pre-cast to the MXU dtype so
    # the weight DMA is half-size.
    # TODO(synk): callers should store weights pre-transposed / pre-cast in
    # params so this happens once at parameter-load time, not per call.
    w1 = jnp.transpose(params["conv1_w"], (2, 3, 1, 0)).reshape(9 * c_in, c_out)
    w2 = jnp.transpose(params["conv2_w"], (2, 3, 1, 0)).reshape(9 * c_out, c_out)
    w1 = w1.astype(mxu_dtype)
    w2 = w2.astype(mxu_dtype)
    b1 = params["conv1_b"].reshape(1, c_out).astype(jnp.float32)
    b2 = params["conv2_b"].reshape(1, c_out).astype(jnp.float32)
    g1 = params["norm1_w"].reshape(1, c_in).astype(jnp.float32)
    bn1 = params["norm1_b"].reshape(1, c_in).astype(jnp.float32)
    g2 = params["norm2_w"].reshape(1, c_out).astype(jnp.float32)
    bn2 = params["norm2_b"].reshape(1, c_out).astype(jnp.float32)

    kernel = functools.partial(_resnet_block_kernel, H=h, W=w, eps=eps,
                               mxu_dtype=mxu_dtype, use_im2col=use_im2col)

    full2d = lambda i: (0, 0)
    # TODO(synk): haloed row-band grid axis for very large H*W / B=1 megacore
    # utilization (needs a 3-pass structure because of full-sample GroupNorm).
    out = pl.pallas_call(
        kernel,
        out_shape=jax.ShapeDtypeStruct((b, h, w, c_out), jnp.float32),
        grid_spec=pltpu.PrefetchScalarGridSpec(
            num_scalar_prefetch=0,
            grid=(b,),
            in_specs=[
                # Squeezed batch dim -> kernel ref is (H, W, C) directly.
                pl.BlockSpec((None, h, w, c_in), lambda i: (i, 0, 0, 0)),   # x
                # Grid-invariant operands below (TODO(synk): pl.Buffered(1)).
                pl.BlockSpec((1, c_in), full2d),          # gamma1
                pl.BlockSpec((1, c_in), full2d),          # beta1
                pl.BlockSpec((9 * c_in, c_out), full2d),  # w1 (im2col layout)
                pl.BlockSpec((1, c_out), full2d),         # b1
                pl.BlockSpec((1, c_out), full2d),         # gamma2
                pl.BlockSpec((1, c_out), full2d),         # beta2
                pl.BlockSpec((9 * c_out, c_out), full2d), # w2 (im2col layout)
                pl.BlockSpec((1, c_out), full2d),         # b2
            ],
            out_specs=pl.BlockSpec((None, h, w, c_out), lambda i: (i, 0, 0, 0)),
        ),
        compiler_params=pltpu.CompilerParams(
            dimension_semantics=("parallel",),
            # v7x has 64 MiB physical VMEM (32 MiB default scoped); 48 MiB
            # leaves headroom there and is well under v5e/v6e's 128 MiB.
            vmem_limit_bytes=48 * 1024 * 1024,
        ),
    )(x, g1, bn1, w1, b1, g2, bn2, w2, b2)

    # NHWC -> NCHW
    return jnp.transpose(out, (0, 3, 1, 2))


def _reference(x_nchw, params, *, eps=1e-5):
    """Pure-JAX f32 reference matching the PyTorch module (eval mode)."""
    def gn(v, g, b):
        mean = jnp.mean(v, axis=(1, 2, 3), keepdims=True)
        var = jnp.mean((v - mean) ** 2, axis=(1, 2, 3), keepdims=True)
        vn = (v - mean) / jnp.sqrt(var + eps)
        return vn * g[None, :, None, None] + b[None, :, None, None]

    def silu(v):
        return v * jax.nn.sigmoid(v)

    def conv(v, wgt, bias):
        y = jax.lax.conv_general_dilated(
            v, wgt, window_strides=(1, 1), padding="SAME",
            dimension_numbers=("NCHW", "OIHW", "NCHW"),
            precision=jax.lax.Precision.HIGHEST)
        return y + bias[None, :, None, None]

    h = silu(gn(x_nchw, params["norm1_w"], params["norm1_b"]))
    h = conv(h, params["conv1_w"], params["conv1_b"])
    h = silu(gn(h, params["norm2_w"], params["norm2_b"]))
    # Dropout is identity in eval mode.
    h = conv(h, params["conv2_w"], params["conv2_b"])
    return h + x_nchw


if __name__ == "__main__":
    def make_params(c, key):
        ks = jax.random.split(key, 4)
        return {
            # GroupNorm(1, C) defaults: weight=1, bias=0
            "norm1_w": jnp.ones((c,), jnp.float32),
            "norm1_b": jnp.zeros((c,), jnp.float32),
            "norm2_w": jnp.ones((c,), jnp.float32),
            "norm2_b": jnp.zeros((c,), jnp.float32),
            # Conv2d(C, C, 3, padding=1) weights/biases (synthetic)
            "conv1_w": 0.05 * jax.random.normal(ks[0], (c, c, 3, 3), jnp.float32),
            "conv1_b": 0.01 * jax.random.normal(ks[1], (c,), jnp.float32),
            "conv2_w": 0.05 * jax.random.normal(ks[2], (c, c, 3, 3), jnp.float32),
            "conv2_b": 0.01 * jax.random.normal(ks[3], (c,), jnp.float32),
        }

    key = jax.random.PRNGKey(0)
    k_x1, k_p1, k_x2, k_p2 = jax.random.split(key, 4)

    # ---- Test 1: small-C config (im2col path), B=2, C=32, 16x16 ----
    B, C, H, W = 2, 32, 16, 16
    x = jax.random.normal(k_x1, (B, C, H, W), dtype=jnp.float32)
    params = make_params(C, k_p1)

    out = jax.block_until_ready(
        jax.jit(functools.partial(resnet_block, mxu_dtype=jnp.bfloat16))(x, params))
    out_f32 = jax.block_until_ready(
        jax.jit(functools.partial(resnet_block, mxu_dtype=jnp.float32))(x, params))
    ref = _reference(x, params)
    assert out.shape == (B, C, H, W)
    assert jnp.allclose(out_f32, ref, atol=1e-4, rtol=1e-4), \
        f"f32 im2col path max abs err {jnp.max(jnp.abs(out_f32 - ref))}"
    assert jnp.allclose(out, ref, atol=5e-2, rtol=5e-2), \
        f"bf16 im2col path max abs err {jnp.max(jnp.abs(out - ref))}"

    # ---- Test 2: production-channel config (9 accumulated K=C matmuls),
    #      B=1, C=128, 16x16 ----
    B2, C2, H2, W2 = 1, 128, 16, 16
    x2 = jax.random.normal(k_x2, (B2, C2, H2, W2), dtype=jnp.float32)
    params2 = make_params(C2, k_p2)
    out2 = jax.block_until_ready(
        jax.jit(functools.partial(resnet_block, mxu_dtype=jnp.bfloat16))(x2, params2))
    out2_f32 = jax.block_until_ready(
        jax.jit(functools.partial(resnet_block, mxu_dtype=jnp.float32))(x2, params2))
    ref2 = _reference(x2, params2)
    assert out2.shape == (B2, C2, H2, W2)
    assert jnp.allclose(out2_f32, ref2, atol=1e-4, rtol=1e-4), \
        f"f32 accum path max abs err {jnp.max(jnp.abs(out2_f32 - ref2))}"
    assert jnp.allclose(out2, ref2, atol=5e-2, rtol=5e-2), \
        f"bf16 accum path max abs err {jnp.max(jnp.abs(out2 - ref2))}"

    print("KERNEL_OK")
</pallas_src>

<mosaic_0001>
module attributes {stable_mosaic.version = 11 : i64} {
  func.func @_resnet_block_kernel(%arg0: i32, %arg1: memref<1x16x16x32xf32, #tpu.memory_space<vmem>>, %arg2: memref<1x32xf32, #tpu.memory_space<vmem>>, %arg3: memref<1x32xf32, #tpu.memory_space<vmem>>, %arg4: memref<288x32xbf16, #tpu.memory_space<vmem>>, %arg5: memref<1x32xf32, #tpu.memory_space<vmem>>, %arg6: memref<1x32xf32, #tpu.memory_space<vmem>>, %arg7: memref<1x32xf32, #tpu.memory_space<vmem>>, %arg8: memref<288x32xbf16, #tpu.memory_space<vmem>>, %arg9: memref<1x32xf32, #tpu.memory_space<vmem>>, %arg10: memref<1x16x16x32xf32, #tpu.memory_space<vmem>>) attributes {dimension_semantics = [#tpu.dimension_semantics<parallel>], iteration_bounds = array<i64: 2>, scalar_prefetch = 0 : i64, scratch_operands = 0 : i64, tpu.core_type = #tpu.core_type<tc>, window_params = [{transform_indices = @transform_0, window_bounds = array<i64: 1, 16, 16, 32>}, {pipeline_mode = #tpu.pipeline_mode<synchronous>, transform_indices = @transform_1, window_bounds = array<i64: 1, 32>}, {pipeline_mode = #tpu.pipeline_mode<synchronous>, transform_indices = @transform_2, window_bounds = array<i64: 1, 32>}, {pipeline_mode = #tpu.pipeline_mode<synchronous>, transform_indices = @transform_3, window_bounds = array<i64: 288, 32>}, {pipeline_mode = #tpu.pipeline_mode<synchronous>, transform_indices = @transform_4, window_bounds = array<i64: 1, 32>}, {pipeline_mode = #tpu.pipeline_mode<synchronous>, transform_indices = @transform_5, window_bounds = array<i64: 1, 32>}, {pipeline_mode = #tpu.pipeline_mode<synchronous>, transform_indices = @transform_6, window_bounds = array<i64: 1, 32>}, {pipeline_mode = #tpu.pipeline_mode<synchronous>, transform_indices = @transform_7, window_bounds = array<i64: 288, 32>}, {pipeline_mode = #tpu.pipeline_mode<synchronous>, transform_indices = @transform_8, window_bounds = array<i64: 1, 32>}, {transform_indices = @transform_9, window_bounds = array<i64: 1, 16, 16, 32>}]} {
    %c0 = arith.constant 0 : index
    %c0_0 = arith.constant 0 : index
    %c0_1 = arith.constant 0 : index
    %c0_2 = arith.constant 0 : index
    %0 = vector.load %arg1[%c0, %c0_0, %c0_1, %c0_2] : memref<1x16x16x32xf32, #tpu.memory_space<vmem>>, vector<1x16x16x32xf32>
    %1 = vector.shape_cast %0 : vector<1x16x16x32xf32> to vector<16x16x32xf32>
    %2 = vector.shape_cast %1 : vector<16x16x32xf32> to vector<256x32xf32>
    %c0_3 = arith.constant 0 : index
    %c0_4 = arith.constant 0 : index
    %3 = vector.load %arg2[%c0_3, %c0_4] : memref<1x32xf32, #tpu.memory_space<vmem>>, vector<1x32xf32>
    %c0_5 = arith.constant 0 : index
    %c0_6 = arith.constant 0 : index
    %4 = vector.load %arg3[%c0_5, %c0_6] : memref<1x32xf32, #tpu.memory_space<vmem>>, vector<1x32xf32>
    %5 = vector.shape_cast %2 : vector<256x32xf32> to vector<1x256x32xf32>
    %cst = arith.constant dense<0.000000e+00> : vector<1xf32>
    %6 = vector.multi_reduction <add>, %5, %cst [1, 2] : vector<1x256x32xf32> to vector<1xf32>
    %7 = vector.shape_cast %6 : vector<1xf32> to vector<1x1x1xf32>
    %8 = vector.extract %7[0, 0, 0] : f32 from vector<1x1x1xf32>
    %9 = arith.mulf %2, %2 : vector<256x32xf32>
    %10 = vector.shape_cast %9 : vector<256x32xf32> to vector<1x256x32xf32>
    %cst_7 = arith.constant dense<0.000000e+00> : vector<1xf32>
    %11 = vector.multi_reduction <add>, %10, %cst_7 [1, 2] : vector<1x256x32xf32> to vector<1xf32>
    %12 = vector.shape_cast %11 : vector<1xf32> to vector<1x1x1xf32>
    %13 = vector.extract %12[0, 0, 0] : f32 from vector<1x1x1xf32>
    %cst_8 = arith.constant 8.192000e+03 : f32
    %14 = arith.divf %8, %cst_8 : f32
    %cst_9 = arith.constant 8.192000e+03 : f32
    %15 = arith.divf %13, %cst_9 : f32
    %16 = arith.mulf %14, %14 : f32
    %17 = arith.subf %15, %16 : f32
    %cst_10 = arith.constant 0.000000e+00 : f32
    %18 = arith.maximumf %17, %cst_10 : f32
    %cst_11 = arith.constant 9.99999974E-6 : f32
    %19 = arith.addf %18, %cst_11 : f32
    %20 = math.rsqrt %19 : f32
    %21 = vector.broadcast %14 : f32 to vector<256x32xf32>
    %22 = arith.subf %2, %21 : vector<256x32xf32>
    %23 = vector.broadcast %20 : f32 to vector<256x32xf32>
    %24 = arith.mulf %22, %23 : vector<256x32xf32>
    %25 = vector.broadcast %3 : vector<1x32xf32> to vector<256x32xf32>
    %26 = arith.mulf %24, %25 : vector<256x32xf32>
    %27 = vector.broadcast %4 : vector<1x32xf32> to vector<256x32xf32>
    %28 = arith.addf %26, %27 : vector<256x32xf32>
    %29 = arith.negf %28 : vector<256x32xf32>
    %30 = math.exp %29 : vector<256x32xf32>
    %cst_12 = arith.constant 1.000000e+00 : f32
    %31 = vector.broadcast %cst_12 : f32 to vector<256x32xf32>
    %32 = arith.addf %31, %30 : vector<256x32xf32>
    %33 = arith.divf %31, %32 : vector<256x32xf32>
    %34 = arith.mulf %28, %33 : vector<256x32xf32>
    %35 = vector.shape_cast %34 : vector<256x32xf32> to vector<16x16x32xf32>
    %cst_13 = arith.constant 0.000000e+00 : f32
    %36 = vector.broadcast %cst_13 : f32 to vector<16x1x32xf32>
    %37 = tpu.concatenate %36, %35, %36 in 1 : vector<16x1x32xf32>, vector<16x16x32xf32>, vector<16x1x32xf32> -> vector<16x18x32xf32>
    %cst_14 = arith.constant 0.000000e+00 : f32
    %38 = vector.broadcast %cst_14 : f32 to vector<1x18x32xf32>
    %39 = tpu.concatenate %38, %37, %38 in 0 : vector<1x18x32xf32>, vector<16x18x32xf32>, vector<1x18x32xf32> -> vector<18x18x32xf32>
    %40 = vector.extract_strided_slice %39 {offsets = [0, 0, 0], sizes = [16, 16, 32], strides = [1, 1, 1]} : vector<18x18x32xf32> to vector<16x16x32xf32>
    %41 = vector.shape_cast %40 : vector<16x16x32xf32> to vector<256x32xf32>
    %42 = arith.truncf %41 : vector<256x32xf32> to vector<256x32xbf16>
    %43 = vector.extract_strided_slice %39 {offsets = [0, 1, 0], sizes = [16, 16, 32], strides = [1, 1, 1]} : vector<18x18x32xf32> to vector<16x16x32xf32>
    %44 = vector.shape_cast %43 : vector<16x16x32xf32> to vector<256x32xf32>
    %45 = arith.truncf %44 : vector<256x32xf32> to vector<256x32xbf16>
    %46 = vector.extract_strided_slice %39 {offsets = [0, 2, 0], sizes = [16, 16, 32], strides = [1, 1, 1]} : vector<18x18x32xf32> to vector<16x16x32xf32>
    %47 = vector.shape_cast %46 : vector<16x16x32xf32> to vector<256x32xf32>
    %48 = arith.truncf %47 : vector<256x32xf32> to vector<256x32xbf16>
    %49 = vector.extract_strided_slice %39 {offsets = [1, 0, 0], sizes = [16, 16, 32], strides = [1, 1, 1]} : vector<18x18x32xf32> to vector<16x16x32xf32>
    %50 = vector.shape_cast %49 : vector<16x16x32xf32> to vector<256x32xf32>
    %51 = arith.truncf %50 : vector<256x32xf32> to vector<256x32xbf16>
    %52 = vector.extract_strided_slice %39 {offsets = [1, 1, 0], sizes = [16, 16, 32], strides = [1, 1, 1]} : vector<18x18x32xf32> to vector<16x16x32xf32>
    %53 = vector.shape_cast %52 : vector<16x16x32xf32> to vector<256x32xf32>
    %54 = arith.truncf %53 : vector<256x32xf32> to vector<256x32xbf16>
    %55 = vector.extract_strided_slice %39 {offsets = [1, 2, 0], sizes = [16, 16, 32], strides = [1, 1, 1]} : vector<18x18x32xf32> to vector<16x16x32xf32>
    %56 = vector.shape_cast %55 : vector<16x16x32xf32> to vector<256x32xf32>
    %57 = arith.truncf %56 : vector<256x32xf32> to vector<256x32xbf16>
    %58 = vector.extract_strided_slice %39 {offsets = [2, 0, 0], sizes = [16, 16, 32], strides = [1, 1, 1]} : vector<18x18x32xf32> to vector<16x16x32xf32>
    %59 = vector.shape_cast %58 : vector<16x16x32xf32> to vector<256x32xf32>
    %60 = arith.truncf %59 : vector<256x32xf32> to vector<256x32xbf16>
    %61 = vector.extract_strided_slice %39 {offsets = [2, 1, 0], sizes = [16, 16, 32], strides = [1, 1, 1]} : vector<18x18x32xf32> to vector<16x16x32xf32>
    %62 = vector.shape_cast %61 : vector<16x16x32xf32> to vector<256x32xf32>
    %63 = arith.truncf %62 : vector<256x32xf32> to vector<256x32xbf16>
    %64 = vector.extract_strided_slice %39 {offsets = [2, 2, 0], sizes = [16, 16, 32], strides = [1, 1, 1]} : vector<18x18x32xf32> to vector<16x16x32xf32>
    %65 = vector.shape_cast %64 : vector<16x16x32xf32> to vector<256x32xf32>
    %66 = arith.truncf %65 : vector<256x32xf32> to vector<256x32xbf16>
    %67 = tpu.concatenate %42, %45, %48, %51, %54, %57, %60, %63, %66 in 1 : vector<256x32xbf16>, vector<256x32xbf16>, vector<256x32xbf16>, vector<256x32xbf16>, vector<256x32xbf16>, vector<256x32xbf16>, vector<256x32xbf16>, vector<256x32xbf16>, vector<256x32xbf16> -> vector<256x288xbf16>
    %c0_15 = arith.constant 0 : index
    %c0_16 = arith.constant 0 : index
    %68 = vector.load %arg4[%c0_15, %c0_16] : memref<288x32xbf16, #tpu.memory_space<vmem>>, vector<288x32xbf16>
    %cst_17 = arith.constant dense<0.000000e+00> : vector<256x32xf32>
    %69 = tpu.matmul %67, %68, %cst_17 {dimension_numbers = #tpu.dot_dimension_numbers<[1], [0], [0], [1], [0, 0, 1, 1], [], []>} : vector<256x288xbf16>, vector<288x32xbf16>, vector<256x32xf32> -> vector<256x32xf32>
    %c0_18 = arith.constant 0 : index
    %c0_19 = arith.constant 0 : index
    %70 = vector.load %arg5[%c0_18, %c0_19] : memref<1x32xf32, #tpu.memory_space<vmem>>, vector<1x32xf32>
    %71 = vector.broadcast %70 : vector<1x32xf32> to vector<256x32xf32>
    %72 = arith.addf %69, %71 : vector<256x32xf32>
    %c0_20 = arith.constant 0 : index
    %c0_21 = arith.constant 0 : index
    %73 = vector.load %arg6[%c0_20, %c0_21] : memref<1x32xf32, #tpu.memory_space<vmem>>, vector<1x32xf32>
    %c0_22 = arith.constant 0 : index
    %c0_23 = arith.constant 0 : index
    %74 = vector.load %arg7[%c0_22, %c0_23] : memref<1x32xf32, #tpu.memory_space<vmem>>, vector<1x32xf32>
    %75 = vector.shape_cast %72 : vector<256x32xf32> to vector<1x256x32xf32>
    %cst_24 = arith.constant dense<0.000000e+00> : vector<1xf32>
    %76 = vector.multi_reduction <add>, %75, %cst_24 [1, 2] : vector<1x256x32xf32> to vector<1xf32>
    %77 = vector.shape_cast %76 : vector<1xf32> to vector<1x1x1xf32>
    %78 = vector.extract %77[0, 0, 0] : f32 from vector<1x1x1xf32>
    %79 = arith.mulf %72, %72 : vector<256x32xf32>
    %80 = vector.shape_cast %79 : vector<256x32xf32> to vector<1x256x32xf32>
    %cst_25 = arith.constant dense<0.000000e+00> : vector<1xf32>
    %81 = vector.multi_reduction <add>, %80, %cst_25 [1, 2] : vector<1x256x32xf32> to vector<1xf32>
    %82 = vector.shape_cast %81 : vector<1xf32> to vector<1x1x1xf32>
    %83 = vector.extract %82[0, 0, 0] : f32 from vector<1x1x1xf32>
    %cst_26 = arith.constant 8.192000e+03 : f32
    %84 = arith.divf %78, %cst_26 : f32
    %cst_27 = arith.constant 8.192000e+03 : f32
    %85 = arith.divf %83, %cst_27 : f32
    %86 = arith.mulf %84, %84 : f32
    %87 = arith.subf %85, %86 : f32
    %cst_28 = arith.constant 0.000000e+00 : f32
    %88 = arith.maximumf %87, %cst_28 : f32
    %cst_29 = arith.constant 9.99999974E-6 : f32
    %89 = arith.addf %88, %cst_29 : f32
    %90 = math.rsqrt %89 : f32
    %91 = vector.broadcast %84 : f32 to vector<256x32xf32>
    %92 = arith.subf %72, %91 : vector<256x32xf32>
    %93 = vector.broadcast %90 : f32 to vector<256x32xf32>
    %94 = arith.mulf %92, %93 : vector<256x32xf32>
    %95 = vector.broadcast %73 : vector<1x32xf32> to vector<256x32xf32>
    %96 = arith.mulf %94, %95 : vector<256x32xf32>
    %97 = vector.broadcast %74 : vector<1x32xf32> to vector<256x32xf32>
    %98 = arith.addf %96, %97 : vector<256x32xf32>
    %99 = arith.negf %98 : vector<256x32xf32>
    %100 = math.exp %99 : vector<256x32xf32>
    %cst_30 = arith.constant 1.000000e+00 : f32
    %101 = vector.broadcast %cst_30 : f32 to vector<256x32xf32>
    %102 = arith.addf %101, %100 : vector<256x32xf32>
    %103 = arith.divf %101, %102 : vector<256x32xf32>
    %104 = arith.mulf %98, %103 : vector<256x32xf32>
    %105 = vector.shape_cast %104 : vector<256x32xf32> to vector<16x16x32xf32>
    %cst_31 = arith.constant 0.000000e+00 : f32
    %106 = vector.broadcast %cst_31 : f32 to vector<16x1x32xf32>
    %107 = tpu.concatenate %106, %105, %106 in 1 : vector<16x1x32xf32>, vector<16x16x32xf32>, vector<16x1x32xf32> -> vector<16x18x32xf32>
    %cst_32 = arith.constant 0.000000e+00 : f32
    %108 = vector.broadcast %cst_32 : f32 to vector<1x18x32xf32>
    %109 = tpu.concatenate %108, %107, %108 in 0 : vector<1x18x32xf32>, vector<16x18x32xf32>, vector<1x18x32xf32> -> vector<18x18x32xf32>
    %110 = vector.extract_strided_slice %109 {offsets = [0, 0, 0], sizes = [16, 16, 32], strides = [1, 1, 1]} : vector<18x18x32xf32> to vector<16x16x32xf32>
    %111 = vector.shape_cast %110 : vector<16x16x32xf32> to vector<256x32xf32>
    %112 = arith.truncf %111 : vector<256x32xf32> to vector<256x32xbf16>
    %113 = vector.extract_strided_slice %109 {offsets = [0, 1, 0], sizes = [16, 16, 32], strides = [1, 1, 1]} : vector<18x18x32xf32> to vector<16x16x32xf32>
    %114 = vector.shape_cast %113 : vector<16x16x32xf32> to vector<256x32xf32>
    %115 = arith.truncf %114 : vector<256x32xf32> to vector<256x32xbf16>
    %116 = vector.extract_strided_slice %109 {offsets = [0, 2, 0], sizes = [16, 16, 32], strides = [1, 1, 1]} : vector<18x18x32xf32> to vector<16x16x32xf32>
    %117 = vector.shape_cast %116 : vector<16x16x32xf32> to vector<256x32xf32>
    %118 = arith.truncf %117 : vector<256x32xf32> to vector<256x32xbf16>
    %119 = vector.extract_strided_slice %109 {offsets = [1, 0, 0], sizes = [16, 16, 32], strides = [1, 1, 1]} : vector<18x18x32xf32> to vector<16x16x32xf32>
    %120 = vector.shape_cast %119 : vector<16x16x32xf32> to vector<256x32xf32>
    %121 = arith.truncf %120 : vector<256x32xf32> to vector<256x32xbf16>
    %122 = vector.extract_strided_slice %109 {offsets = [1, 1, 0], sizes = [16, 16, 32], strides = [1, 1, 1]} : vector<18x18x32xf32> to vector<16x16x32xf32>
    %123 = vector.shape_cast %122 : vector<16x16x32xf32> to vector<256x32xf32>
    %124 = arith.truncf %123 : vector<256x32xf32> to vector<256x32xbf16>
    %125 = vector.extract_strided_slice %109 {offsets = [1, 2, 0], sizes = [16, 16, 32], strides = [1, 1, 1]} : vector<18x18x32xf32> to vector<16x16x32xf32>
    %126 = vector.shape_cast %125 : vector<16x16x32xf32> to vector<256x32xf32>
    %127 = arith.truncf %126 : vector<256x32xf32> to vector<256x32xbf16>
    %128 = vector.extract_strided_slice %109 {offsets = [2, 0, 0], sizes = [16, 16, 32], strides = [1, 1, 1]} : vector<18x18x32xf32> to vector<16x16x32xf32>
    %129 = vector.shape_cast %128 : vector<16x16x32xf32> to vector<256x32xf32>
    %130 = arith.truncf %129 : vector<256x32xf32> to vector<256x32xbf16>
    %131 = vector.extract_strided_slice %109 {offsets = [2, 1, 0], sizes = [16, 16, 32], strides = [1, 1, 1]} : vector<18x18x32xf32> to vector<16x16x32xf32>
    %132 = vector.shape_cast %131 : vector<16x16x32xf32> to vector<256x32xf32>
    %133 = arith.truncf %132 : vector<256x32xf32> to vector<256x32xbf16>
    %134 = vector.extract_strided_slice %109 {offsets = [2, 2, 0], sizes = [16, 16, 32], strides = [1, 1, 1]} : vector<18x18x32xf32> to vector<16x16x32xf32>
    %135 = vector.shape_cast %134 : vector<16x16x32xf32> to vector<256x32xf32>
    %136 = arith.truncf %135 : vector<256x32xf32> to vector<256x32xbf16>
    %137 = tpu.concatenate %112, %115, %118, %121, %124, %127, %130, %133, %136 in 1 : vector<256x32xbf16>, vector<256x32xbf16>, vector<256x32xbf16>, vector<256x32xbf16>, vector<256x32xbf16>, vector<256x32xbf16>, vector<256x32xbf16>, vector<256x32xbf16>, vector<256x32xbf16> -> vector<256x288xbf16>
    %c0_33 = arith.constant 0 : index
    %c0_34 = arith.constant 0 : index
    %138 = vector.load %arg8[%c0_33, %c0_34] : memref<288x32xbf16, #tpu.memory_space<vmem>>, vector<288x32xbf16>
    %cst_35 = arith.constant dense<0.000000e+00> : vector<256x32xf32>
    %139 = tpu.matmul %137, %138, %cst_35 {dimension_numbers = #tpu.dot_dimension_numbers<[1], [0], [0], [1], [0, 0, 1, 1], [], []>} : vector<256x288xbf16>, vector<288x32xbf16>, vector<256x32xf32> -> vector<256x32xf32>
    %c0_36 = arith.constant 0 : index
    %c0_37 = arith.constant 0 : index
    %140 = vector.load %arg9[%c0_36, %c0_37] : memref<1x32xf32, #tpu.memory_space<vmem>>, vector<1x32xf32>
    %141 = vector.broadcast %140 : vector<1x32xf32> to vector<256x32xf32>
    %142 = arith.addf %139, %141 : vector<256x32xf32>
    %143 = vector.shape_cast %142 : vector<256x32xf32> to vector<16x16x32xf32>
    %144 = arith.addf %1, %143 : vector<16x16x32xf32>
    %c0_38 = arith.constant 0 : index
    %c0_39 = arith.constant 0 : index
    %c0_40 = arith.constant 0 : index
    %c0_41 = arith.constant 0 : index
    %145 = vector.load %arg10[%c0_38, %c0_39, %c0_40, %c0_41] : memref<1x16x16x32xf32, #tpu.memory_space<vmem>>, vector<1x16x16x32xf32>
    %146 = vector.shape_cast %145 : vector<1x16x16x32xf32> to vector<16x16x32xf32>
    %147 = vector.shape_cast %144 : vector<16x16x32xf32> to vector<1x16x16x32xf32>
    tpu.vector_store %arg10[%c0_38, %c0_39, %c0_40, %c0_41], %147 {strides = array<i32>} : memref<1x16x16x32xf32, #tpu.memory_space<vmem>>, vector<1x16x16x32xf32>,
    return
  }
  func.func @transform_0(%arg0: i32) -> (i32, i32, i32, i32) {
    %c0_i32 = arith.constant 0 : i32
    %c0_i32_0 = arith.constant 0 : i32
    %c0_i32_1 = arith.constant 0 : i32
    %c0_i32_2 = arith.constant 0 : i32
    return %arg0, %c0_i32, %c0_i32_0, %c0_i32_1 : i32, i32, i32, i32
  }
  func.func @transform_1(%arg0: i32) -> (i32, i32) {
    %c0_i32 = arith.constant 0 : i32
    %c0_i32_0 = arith.constant 0 : i32
    %c0_i32_1 = arith.constant 0 : i32
    return %c0_i32, %c0_i32_0 : i32, i32
  }
  func.func @transform_2(%arg0: i32) -> (i32, i32) {
    %c0_i32 = arith.constant 0 : i32
    %c0_i32_0 = arith.constant 0 : i32
    %c0_i32_1 = arith.constant 0 : i32
    return %c0_i32, %c0_i32_0 : i32, i32
  }
  func.func @transform_3(%arg0: i32) -> (i32, i32) {
    %c0_i32 = arith.constant 0 : i32
    %c0_i32_0 = arith.constant 0 : i32
    %c0_i32_1 = arith.constant 0 : i32
    return %c0_i32, %c0_i32_0 : i32, i32
  }
  func.func @transform_4(%arg0: i32) -> (i32, i32) {
    %c0_i32 = arith.constant 0 : i32
    %c0_i32_0 = arith.constant 0 : i32
    %c0_i32_1 = arith.constant 0 : i32
    return %c0_i32, %c0_i32_0 : i32, i32
  }
  func.func @transform_5(%arg0: i32) -> (i32, i32) {
    %c0_i32 = arith.constant 0 : i32
    %c0_i32_0 = arith.constant 0 : i32
    %c0_i32_1 = arith.constant 0 : i32
    return %c0_i32, %c0_i32_0 : i32, i32
  }
  func.func @transform_6(%arg0: i32) -> (i32, i32) {
    %c0_i32 = arith.constant 0 : i32
    %c0_i32_0 = arith.constant 0 : i32
    %c0_i32_1 = arith.constant 0 : i32
    return %c0_i32, %c0_i32_0 : i32, i32
  }
  func.func @transform_7(%arg0: i32) -> (i32, i32) {
    %c0_i32 = arith.constant 0 : i32
    %c0_i32_0 = arith.constant 0 : i32
    %c0_i32_1 = arith.constant 0 : i32
    return %c0_i32, %c0_i32_0 : i32, i32
  }
  func.func @transform_8(%arg0: i32) -> (i32, i32) {
    %c0_i32 = arith.constant 0 : i32
    %c0_i32_0 = arith.constant 0 : i32
    %c0_i32_1 = arith.constant 0 : i32
    return %c0_i32, %c0_i32_0 : i32, i32
  }
  func.func @transform_9(%arg0: i32) -> (i32, i32, i32, i32) {
    %c0_i32 = arith.constant 0 : i32
    %c0_i32_0 = arith.constant 0 : i32
    %c0_i32_1 = arith.constant 0 : i32
    %c0_i32_2 = arith.constant 0 : i32
    return %arg0, %c0_i32, %c0_i32_0, %c0_i32_1 : i32, i32, i32, i32
  }
}

</mosaic_0001>

<bundles_post_ra>
// kernel: resnet_block.1
= control target key start
LH: loop header
LB: loop body
LE: loop exit
PB: predicated region body
PF: predicated region fallthrough
CT: control target
= control target key end

     0   :  { %s9183_s0 = inlined_call_operand.vmem [shape: f32[2,16,16,32], index: 0, kind: input, shape index: {}]   ;;  %s9184_s1 = inlined_call_operand.vmem [shape: f32[1,32], index: 1, kind: input, shape index: {}]   ;;  %s9185_s2 = inlined_call_operand.vmem [shape: f32[1,32], index: 2, kind: input, shape index: {}]   ;;  %s9186_s3 = inlined_call_operand.vmem [shape: bf16[288,32], index: 3, kind: input, shape index: {}]   ;;  %s9187_s4 = inlined_call_operand.vmem [shape: f32[1,32], index: 4, kind: input, shape index: {}]   ;;  %s9188_s5 = inlined_call_operand.vmem [shape: f32[1,32], index: 5, kind: input, shape index: {}]   ;;  %s9189_s6 = inlined_call_operand.vmem [shape: f32[1,32], index: 6, kind: input, shape index: {}]   ;;  %s9190_s7 = inlined_call_operand.vmem [shape: bf16[288,32], index: 7, kind: input, shape index: {}]   ;;  %s9191_s8 = inlined_call_operand.vmem [shape: f32[1,32], index: 8, kind: input, shape index: {}]   ;;  %s9192_s9 = inlined_call_operand.hbm [shape: f32[2,16,16,32], index: 9, kind: output, shape index: {}]  }
   0x1   :  { %9266 = sst [smem:[#allocation36_spill]] %s9183_s0 }
   0x2   :  { %9267 = sst [smem:[#allocation37_spill]] %s9184_s1 }
   0x3   :  { %9268 = sst [smem:[#allocation38_spill]] %s9185_s2 }
   0x4   :  { %14 = vsyncpa [#allocation3], 0 }
   0x5   :  { %16 = vsyncpa [#allocation3 + $0x1], 0  ;;  %s5579_s30 = smov 0   ;;  %s5581_s10 = smov 0  }
   0x6   :  { %s5583_s11 = smov 0   ;;  %s5585_s12 = smov 0  }
   0x7 LB: > { %s5600_s13 = sadd.s32 4294967295, %s5518_s12   ;;  %s4581_s14 = sadd.s32 4294967294, %s5518_s12   ;;  %s5518_s12 = sphi %s5585_s12, %s9408_s12   ;;  %s5514_s11 = sphi %s5583_s11, %s9407_s11   ;;  %s5510_s10 = sphi %s5581_s10, %s9406_s10   ;;  %s5506_s30 = sphi %s5579_s30, %s9405_s30  }
   0x8   : > { %s5604_s15 = sadd.s32 1, %s5518_s12   ;;  %s223_s16 = sadd.s32 1, %s5514_s11 }
   0x9   : > { %s220_s17 = ssub.s32 %s5518_s12, %s5604_s15  ;;  %p233_p0 = scmp.ne.s32.totalorder %s5514_s11, %s5510_s10 }
   0xa   : > { %p221_p1 = scmp.eq.s32.totalorder %s220_s17, 0  ;;  %p234_p2 = scmp.eq.s32.totalorder %s5600_s13, 1 }
   0xb   : > { %p239_p3 = scmp.ne.s32.totalorder %s5510_s10, %s5506_s30  ;;  %p240_p4 = scmp.eq.s32.totalorder %s4581_s14, 1 }
   0xc   : > { %s5615_s18 = scalar_select %p221_p1, %s5514_s11, %s223_s16  }
   0xd   : > { %p5617_p5 = por %p234_p2, %p233_p0  ;;  %p5621_p6 = por %p240_p4, %p239_p3 }
   0xe   : > { %p4584_p7 = scmp.ge.s32.totalorder %s5518_s12, 1  ;;  %p290_p8 = scmp.lt.s32.totalorder %s5518_s12, 3 }
  0x10   : > { %p291_p9 = pnand %p4584_p7, %p290_p8 }
  0x12   : > { %294 = sbr.rel (%p291_p9) target bundleno = 1858 (0x742), region = 56 }
  0x17   : > { %p326_p10 = scmp.lt.s32.totalorder %s5600_s13, 1  ;;  %vm366_vm0 = vcmask 261120   ;;  %s9271_s0 = sld [smem:[#allocation36_spill]]  ;;  %vm954_vm1 = vcmask 1040384   ;;  %vm1255_vm2 = vcmask 1045504   ;;  %vm1130_vm3 = vcmask 1046528  }
  0x18   : > { %s9193_s28 = smov 32   ;;  %s9224_s29 = smov 64   ;;  %vm1690_vm4 = vcmask 523264   ;;  %vm1723_vm5 = vcmask 785408  }
  0x19   : > { %s327_s21 = scalar_select %p326_p10, %s5600_s13, 1 }
  0x1a   : > { %s5524_s27 = smov 0.0   ;;  %s9274_s1 = sld [smem:[#allocation37_spill]] }
  0x1b   : > { %s4731_s22 = sshll.u32 %s327_s21, 8  ;;  %s9275_s2 = sld [smem:[#allocation38_spill]] }
  0x1d   : > { %s5632_s25 = scalar_lea.vmem %s9271_s0, %s4731_s22 }
  0x1e   : > { %v5635_v0 = vld [vmem:[%s5632_s25] sm:$0xff]  ;;  %v5638_v1 = vld [vmem:[%s5632_s25 + $0x8] sm:$0xff]  ;;  %v5641_v2 = vld [vmem:[%s5632_s25 + $0x10] sm:$0xff] }
  0x1f   : > { %v5644_v3 = vld [vmem:[%s5632_s25 + $0x18] sm:$0xff]  ;;  %v367_v4 = vsel %vm366_vm0, %v5635_v0, 0.0  ;;  %v368_v5 = vsel %vm366_vm0, %v5638_v1, 0.0  ;;  %v370_v6 = vsel %vm366_vm0, %v5641_v2, 0.0  ;;  %v5653_v7 = vld [vmem:[%s5632_s25 + $0x20] sm:$0xff]  ;;  %v5658_v10 = vld [vmem:[%s5632_s25 + $0x28] sm:$0xff]  ;;  %v439_v31 = vmul.f32 %v5635_v0, %v5635_v0 }
  0x20   : > { %v369_v8 = vadd.f32 %v368_v5, %v367_v4  ;;  %v372_v9 = vsel %vm366_vm0, %v5644_v3, 0.0  ;;  %v374_v12 = vsel %vm366_vm0, %v5653_v7, 0.0  ;;  %v5663_v13 = vld [vmem:[%s5632_s25 + $0x30] sm:$0xff]  ;;  %v5666_v15 = vld [vmem:[%s5632_s25 + $0x38] sm:$0xff]  ;;  %v5669_v16 = vld [vmem:[%s5632_s25 + $0x40] sm:$0xff]  ;;  %v376_v18 = vsel %vm366_vm0, %v5658_v10, 0.0 }
  0x21   : > { %v5672_v17 = vld [vmem:[%s5632_s25 + $0x48] sm:$0xff]  ;;  %v5677_v19 = vld [vmem:[%s5632_s25 + $0x50] sm:$0xff]  ;;  %v5680_v20 = vld [vmem:[%s5632_s25 + $0x58] sm:$0xff]  ;;  %v378_v22 = vsel %vm366_vm0, %v5663_v13, 0.0  ;;  %v380_v24 = vsel %vm366_vm0, %v5666_v15, 0.0  ;;  %v382_v25 = vsel %vm366_vm0, %v5669_v16, 0.0  ;;  %v440_v32 = vmul.f32 %v5638_v1, %v5638_v1 }
  0x22   : > { %v371_v11 = vadd.f32 %v370_v6, %v369_v8  ;;  %v384_v26 = vsel %vm366_vm0, %v5672_v17, 0.0  ;;  %v386_v27 = vsel %vm366_vm0, %v5677_v19, 0.0  ;;  %v388_v28 = vsel %vm366_vm0, %v5680_v20, 0.0  ;;  %v5701_v34 = vld [vmem:[%s5632_s25 + $0x60] sm:$0xff]  ;;  %v5711_v42 = vld [vmem:[%s5632_s25 + $0x68] sm:$0xff]  ;;  %v5714_v45 = vld [vmem:[%s5632_s25 + $0x70] sm:$0xff] }
  0x23   : > { %v441_v33 = vmul.f32 %v5641_v2, %v5641_v2  ;;  %v442_v36 = vmul.f32 %v5644_v3, %v5644_v3  ;;  %v443_v38 = vmul.f32 %v5653_v7, %v5653_v7  ;;  %v471_v39 = vsel %vm366_vm0, %v439_v31, 0.0  ;;  %v5722_v51 = vld [vmem:[%s5632_s25 + $0x78] sm:$0xff]  ;;  %v5725_v52 = vld [vmem:[%s5632_s25 + $0x80] sm:$0xff]  ;;  %v5733_v56 = vld [vmem:[%s5632_s25 + $0x88] sm:$0xff] }
  0x24   : > { %v373_v14 = vadd.f32 %v372_v9, %v371_v11  ;;  %v472_v40 = vsel %vm366_vm0, %v440_v32, 0.0  ;;  %v390_v46 = vsel %vm366_vm0, %v5701_v34, 0.0  ;;  %v444_v47 = vmul.f32 %v5658_v10, %v5658_v10  ;;  %v5740_v61 = vld [vmem:[%s5632_s25 + $0x90] sm:$0xff]  ;;  %v5743_v62 = vld [vmem:[%s5632_s25 + $0x98] sm:$0xff]  ;;  %v5768_v31 = vld [vmem:[%s5632_s25 + $0xa0] sm:$0xff] }
  0x25   : > { %v474_v41 = vsel %vm366_vm0, %v441_v33, 0.0  ;;  %v473_v44 = vadd.f32 %v472_v40, %v471_v39  ;;  %v476_v48 = vsel %vm366_vm0, %v442_v36, 0.0  ;;  %v392_v53 = vsel %vm366_vm0, %v5711_v42, 0.0  ;;  %v5775_v39 = vld [vmem:[%s5632_s25 + $0xa8] sm:$0xff] }
  0x26   : > { %v375_v21 = vadd.f32 %v374_v12, %v373_v14  ;;  %v445_v54 = vmul.f32 %v5663_v13, %v5663_v13  ;;  %v478_v55 = vsel %vm366_vm0, %v443_v38, 0.0  ;;  %v394_v58 = vsel %vm366_vm0, %v5714_v45, 0.0 }
  0x27   : > { %v475_v50 = vadd.f32 %v474_v41, %v473_v44  ;;  %v446_v59 = vmul.f32 %v5666_v15, %v5666_v15  ;;  %v447_v63 = vmul.f32 %v5669_v16, %v5669_v16  ;;  %v448_v4 = vmul.f32 %v5672_v17, %v5672_v17 }
  0x28   : > { %v377_v23 = vadd.f32 %v376_v18, %v375_v21  ;;  %v449_v5 = vmul.f32 %v5677_v19, %v5677_v19  ;;  %v480_v6 = vsel %vm366_vm0, %v444_v47, 0.0  ;;  %v396_v11 = vsel %vm366_vm0, %v5722_v51, 0.0  ;;  %v5783_v47 = vld [vmem:[%s5632_s25 + $0xb0] sm:$0xff] }
  0x29   : > { %v477_v60 = vadd.f32 %v476_v48, %v475_v50  ;;  %v398_v12 = vsel %vm366_vm0, %v5725_v52, 0.0  ;;  %v400_v14 = vsel %vm366_vm0, %v5733_v56, 0.0  ;;  %v482_v18 = vsel %vm366_vm0, %v445_v54, 0.0 }
  0x2a   : > { %v379_v29 = vadd.f32 %v378_v22, %v377_v23  ;;  %v402_v22 = vsel %vm366_vm0, %v5740_v61, 0.0  ;;  %v404_v23 = vsel %vm366_vm0, %v5743_v62, 0.0  ;;  %v451_v38 = vmul.f32 %v5701_v34, %v5701_v34 }
  0x2b   : > { %v479_v9 = vadd.f32 %v478_v55, %v477_v60  ;;  %v452_v44 = vmul.f32 %v5711_v42, %v5711_v42  ;;  %v408_v50 = vsel %vm366_vm0, %v5775_v39, 0.0  ;;  %v5791_v55 = vld [vmem:[%s5632_s25 + $0xb8] sm:$0xff]  ;;  %v454_v60 = vmul.f32 %v5722_v51, %v5722_v51 }
  0x2c   : > { %v381_v30 = vadd.f32 %v380_v24, %v379_v29  ;;  %v494_v54 = vsel %vm366_vm0, %v451_v38, 0.0  ;;  %v5831_v38 = vld [vmem:[%s5632_s25 + $0xe0] sm:$0xff] }
  0x2d   : > { %v481_v24 = vadd.f32 %v480_v6, %v479_v9  ;;  %v455_v9 = vmul.f32 %v5725_v52, %v5725_v52 }
  0x2e   : > { %v383_v35 = vadd.f32 %v382_v25, %v381_v30  ;;  %v484_v25 = vsel %vm366_vm0, %v446_v59, 0.0  ;;  %v410_v59 = vsel %vm366_vm0, %v5783_v47, 0.0 }
  0x2f   : > { %v483_v30 = vadd.f32 %v482_v18, %v481_v24  ;;  %v5815_v24 = vld [vmem:[%s5632_s25 + $0xd0] sm:$0xff] }
  0x30   : > { %v385_v37 = vadd.f32 %v384_v26, %v383_v35  ;;  %v486_v26 = vsel %vm366_vm0, %v447_v63, 0.0  ;;  %v450_v35 = vmul.f32 %v5680_v20, %v5680_v20  ;;  %v496_v63 = vsel %vm366_vm0, %v452_v44, 0.0 }
  0x31   : > { %v485_v33 = vadd.f32 %v484_v25, %v483_v30  ;;  %v5823_v30 = vld [vmem:[%s5632_s25 + $0xd8] sm:$0xff]  ;;  %v459_v44 = vmul.f32 %v5768_v31, %v5768_v31 }
  0x32   : > { %v387_v43 = vadd.f32 %v386_v27, %v385_v37  ;;  %v488_v27 = vsel %vm366_vm0, %v448_v4, 0.0  ;;  %v5799_v4 = vld [vmem:[%s5632_s25 + $0xc0] sm:$0xff] }
  0x33   : > { %v487_v37 = vadd.f32 %v486_v26, %v485_v33 }
  0x34   : > { %v389_v49 = vadd.f32 %v388_v28, %v387_v43  ;;  %v490_v28 = vsel %vm366_vm0, %v449_v5, 0.0  ;;  %v406_v43 = vsel %vm366_vm0, %v5768_v31, 0.0 }
  0x35   : > { %v489_v41 = vadd.f32 %v488_v27, %v487_v37 }
  0x36   : > { %v391_v57 = vadd.f32 %v390_v46, %v389_v49  ;;  %v492_v46 = vsel %vm366_vm0, %v450_v35, 0.0  ;;  %v418_v35 = vsel %vm366_vm0, %v5815_v24, 0.0 }
  0x37   : > { %v491_v49 = vadd.f32 %v490_v28, %v489_v41  ;;  %v457_v28 = vmul.f32 %v5740_v61, %v5740_v61 }
  0x38   : > { %v393_v8 = vadd.f32 %v392_v53, %v391_v57  ;;  %v453_v53 = vmul.f32 %v5714_v45, %v5714_v45 }
  0x3a   : > { %v395_v21 = vadd.f32 %v394_v58, %v393_v8  ;;  %v493_v58 = vadd.f32 %v492_v46, %v491_v49  ;;  %v412_v8 = vsel %vm366_vm0, %v5791_v55, 0.0  ;;  %v506_v46 = vsel %vm366_vm0, %v457_v28, 0.0 }
  0x3c   : > { %v397_v29 = vadd.f32 %v396_v11, %v395_v21  ;;  %v495_v6 = vadd.f32 %v494_v54, %v493_v58  ;;  %v498_v11 = vsel %vm366_vm0, %v453_v53, 0.0  ;;  %v414_v21 = vsel %vm366_vm0, %v5799_v4, 0.0  ;;  %v5847_v58 = vld [vmem:[%s5632_s25 + $0xf0] sm:$0xff] }
  0x3d   : > { %v422_v53 = vsel %vm366_vm0, %v5831_v38, 0.0  ;;  %v460_v54 = vmul.f32 %v5775_v39, %v5775_v39 }
  0x3e   : > { %v399_v32 = vadd.f32 %v398_v12, %v397_v29  ;;  %v5807_v12 = vld [vmem:[%s5632_s25 + $0xc8] sm:$0xff]  ;;  %v497_v18 = vadd.f32 %v496_v63, %v495_v6  ;;  %v502_v29 = vsel %vm366_vm0, %v455_v9, 0.0  ;;  %v510_v6 = vsel %vm366_vm0, %v459_v44, 0.0 }
  0x3f   : > { %v416_v27 = vsel %vm366_vm0, %v5807_v12, 0.0 }
  0x40   : > { %v401_v36 = vadd.f32 %v400_v14, %v399_v32  ;;  %v499_v26 = vadd.f32 %v498_v11, %v497_v18  ;;  %v462_v18 = vmul.f32 %v5791_v55, %v5791_v55 }
  0x42   : > { %v403_v40 = vadd.f32 %v402_v22, %v401_v36  ;;  %v456_v22 = vmul.f32 %v5733_v56, %v5733_v56  ;;  %v458_v36 = vmul.f32 %v5743_v62, %v5743_v62 }
  0x44   : > { %v405_v48 = vadd.f32 %v404_v23, %v403_v40  ;;  %v500_v23 = vsel %vm366_vm0, %v454_v60, 0.0  ;;  %v504_v37 = vsel %vm366_vm0, %v456_v22, 0.0 }
  0x45   : > { %v501_v33 = vadd.f32 %v500_v23, %v499_v26  ;;  %v463_v26 = vmul.f32 %v5799_v4, %v5799_v4 }
  0x46   : > { %v407_v57 = vadd.f32 %v406_v43, %v405_v48  ;;  %v420_v43 = vsel %vm366_vm0, %v5823_v30, 0.0  ;;  %v5839_v48 = vld [vmem:[%s5632_s25 + $0xe8] sm:$0xff] }
  0x47   : > { %v503_v41 = vadd.f32 %v502_v29, %v501_v33  ;;  %v424_v63 = vsel %vm366_vm0, %v5839_v48, 0.0  ;;  %v516_v33 = vsel %vm366_vm0, %v462_v18, 0.0 }
  0x48   : > { %v409_v5 = vadd.f32 %v408_v50, %v407_v57  ;;  %v508_v57 = vsel %vm366_vm0, %v458_v36, 0.0 }
  0x49   : > { %v505_v50 = vadd.f32 %v504_v37, %v503_v41  ;;  %v465_v37 = vmul.f32 %v5815_v24, %v5815_v24 }
  0x4a   : > { %v411_v14 = vadd.f32 %v410_v59, %v409_v5  ;;  %v461_v5 = vmul.f32 %v5783_v47, %v5783_v47 }
  0x4b   : > { %v507_v60 = vadd.f32 %v506_v46, %v505_v50  ;;  %v522_v50 = vsel %vm366_vm0, %v465_v37, 0.0 }
  0x4c   : > { %v413_v25 = vadd.f32 %v412_v8, %v411_v14  ;;  %v5855_v8 = vld [vmem:[%s5632_s25 + $0xf8] sm:$0xff]  ;;  %v426_v14 = vsel %vm366_vm0, %v5847_v58, 0.0 }
  0x4d   : > { %v509_v11 = vadd.f32 %v508_v57, %v507_v60  ;;  %v469_v60 = vmul.f32 %v5847_v58, %v5847_v58 }
  0x4e   : > { %v415_v32 = vadd.f32 %v414_v21, %v413_v25  ;;  %v512_v21 = vsel %vm366_vm0, %v460_v54, 0.0  ;;  %v428_v25 = vsel %vm366_vm0, %v5855_v8, 0.0  ;;  %v468_v54 = vmul.f32 %v5839_v48, %v5839_v48 }
  0x4f   : > { %v511_v23 = vadd.f32 %v510_v6, %v509_v11  ;;  %v470_v6 = vmul.f32 %v5855_v8, %v5855_v8 }
  0x50   : > { %v417_v40 = vadd.f32 %v416_v27, %v415_v32  ;;  %v514_v27 = vsel %vm366_vm0, %v461_v5, 0.0  ;;  %v464_v32 = vmul.f32 %v5807_v12, %v5807_v12 }
  0x51   : > { %v513_v29 = vadd.f32 %v512_v21, %v511_v23  ;;  %v532_v21 = vsel %vm366_vm0, %v470_v6, 0.0 }
  0x52   : > { %v419_v49 = vadd.f32 %v418_v35, %v417_v40  ;;  %v518_v40 = vsel %vm366_vm0, %v463_v26, 0.0  ;;  %v520_v44 = vsel %vm366_vm0, %v464_v32, 0.0 }
  0x53   : > { %v515_v36 = vadd.f32 %v514_v27, %v513_v29 }
  0x54   : > { %v421_v59 = vadd.f32 %v420_v43, %v419_v49  ;;  %v466_v43 = vmul.f32 %v5823_v30, %v5823_v30  ;;  %v467_v49 = vmul.f32 %v5831_v38, %v5831_v38 }
  0x55   : > { %v517_v41 = vadd.f32 %v516_v33, %v515_v36 }
  0x56   : > { %v423_v9 = vadd.f32 %v422_v53, %v421_v59  ;;  %v524_v57 = vsel %vm366_vm0, %v466_v43, 0.0 }
  0x57   : > { %v519_v46 = vadd.f32 %v518_v40, %v517_v41 }
  0x58   : > { %v425_v22 = vadd.f32 %v424_v63, %v423_v9  ;;  %v526_v63 = vsel %vm366_vm0, %v467_v49, 0.0  ;;  %v528_v9 = vsel %vm366_vm0, %v468_v54, 0.0  ;;  %v5128_v54 = vld [vmem:[%s9186_s3 + $0x88] sm:$0xff]  }
  0x59   : > { %v521_v53 = vadd.f32 %v520_v44, %v519_v46  ;;  %v5520_v44 = vmov 0.0   ;;  %4993 = vmatprep.subr.bf16.mxu1 %v5128_v54 }
  0x5a   : > { %v427_v28 = vadd.f32 %v426_v14, %v425_v22  ;;  %v530_v14 = vsel %vm366_vm0, %v469_v60, 0.0  ;;  %v1131_v46 = vrot.slane %v5520_v44, 1  ;;  %v1256_v49 = vrot.slane %v5520_v44, 2  ;;  %4994 = vmatpush3.bf16.msra.mxu1 %v5128_v54  ;;  %v5129_v60 = vld [vmem:[%s9186_s3 + $0x80] sm:$0xff]  }
  0x5b   : > { %v523_v59 = vadd.f32 %v522_v50, %v521_v53  ;;  %4995 = vmatprep.subr.bf16.mxu1 %v5129_v60 }
  0x5c   : > { %v429_v35 = vadd.f32 %v428_v25, %v427_v28  ;;  %v5890_v53 = vpack.c.bf16 %v1131_v46, %v1131_v46 }
  0x5d   : > { %v525_v5 = vadd.f32 %v524_v57, %v523_v59  ;;  %v5897_v57 = vpack.c.bf16 %v1256_v49, %v1256_v49  ;;  %v5523_v59 = vmov 0.0|0.0  }
  0x5e   : > { %430 = vadd.xlane.f32.xlu0 %v429_v35  ;;  %9272 = vst [vmem:[#allocation5_spill] sm:$0xff] %v5890_v53  ;;  %1415 = vrot.lane.b32.xlu1 %v5890_v53, %s9193_s28 }
  0x5f   : > { %v527_v11 = vadd.f32 %v526_v63, %v525_v5  ;;  %9273 = vst [vmem:[#allocation6_spill] sm:$0xff] %v5897_v57  ;;  %4996 = vmatpush3.bf16.msra.mxu1 %v5129_v60  ;;  %v5994_v60 = vld [vmem:[%s9275_s2] ss:$0 sm:$0xff] }
  0x61   : > { %v529_v18 = vadd.f32 %v528_v9, %v527_v11 }
  0x62   : > { %1463 = vrot.lane.b32.xlu1 %v5897_v57, %s9224_s29 }
  0x63   : > { %v531_v22 = vadd.f32 %v530_v14, %v529_v18 }
  0x65   : > { %v533_v23 = vadd.f32 %v532_v21, %v531_v22 }
  0x66   : > { %1607 = vrot.lane.b32.xlu1 %v5523_v59, %s9224_s29 }
  0x67   : > { %534 = vadd.xlane.f32.xlu0 %v533_v23 }
  0xe7   : > { %v431_v25 = vpop.xlane.xlu0 %430 }
  0xe8   : > { %v432_v26 = vrot.slane %v431_v25, 4 }
  0xea   : > { %v433_v27 = vadd.f32 %v432_v26, %v431_v25 }
  0xec   : > { %v434_v28 = vrot.slane %v433_v27, 2 }
  0xee   : > { %v435_v29 = vadd.f32 %v434_v28, %v433_v27 }
  0xf0   : > { %v436_v32 = vrot.slane %v435_v29, 1  ;;  %v535_v35 = vpop.xlane.xlu0 %534 }
  0xf1   : > { %v536_v36 = vrot.slane %v535_v35, 4 }
  0xf2   : > { %v437_v33 = vadd.f32 %v436_v32, %v435_v29 }
  0xf3   : > { %v537_v37 = vadd.f32 %v536_v36, %v535_v35 }
  0xf4   : > { %5069 = vpush %v437_v33  ;;  %v5969_v33 = vld [vmem:[%s9274_s1] ss:$0 sm:$0xff] }
  0xf5   : > { %v538_v40 = vrot.slane %v537_v37, 2 }
  0xf7   : > { %v539_v41 = vadd.f32 %v538_v40, %v537_v37 }
  0xf9   : > { %v540_v43 = vrot.slane %v539_v41, 1 }
  0xfb   : > { %v541_v50 = vadd.f32 %v540_v43, %v539_v41 }
  0xfd   : > { %5071 = vpush %v541_v50 }
 0x125   : > { %s5070_s17 = spop %5069 }
 0x126   : > { %s545_s21 = smul.f32 0.00012207031, %s5070_s17 }
 0x128   : > { %s549_s22 = smul.f32 %s545_s21, %s545_s21  ;;  %v5906_v6 = vstv %s545_s21  ;;  %s9222_s21 = smov 96  }
 0x129   : > { %v583_v14 = vsub.f32 %v5815_v24, %v5906_v6  ;;  %v584_v18 = vsub.f32 %v5823_v30, %v5906_v6  ;;  %v585_v21 = vsub.f32 %v5831_v38, %v5906_v6  ;;  %v586_v22 = vsub.f32 %v5839_v48, %v5906_v6 }
 0x12a   : > { %v587_v23 = vsub.f32 %v5847_v58, %v5906_v6  ;;  %v588_v25 = vsub.f32 %v5855_v8, %v5906_v6  ;;  %v559_v26 = vsub.f32 %v5641_v2, %v5906_v6  ;;  %v560_v24 = vsub.f32 %v5644_v3, %v5906_v6 }
 0x12b   : > { %v557_v30 = vsub.f32 %v5635_v0, %v5906_v6  ;;  %v558_v38 = vsub.f32 %v5638_v1, %v5906_v6  ;;  %v561_v48 = vsub.f32 %v5653_v7, %v5906_v6  ;;  %v562_v58 = vsub.f32 %v5658_v10, %v5906_v6 }
 0x12c   : > { %v563_v8 = vsub.f32 %v5663_v13, %v5906_v6  ;;  %v564_v2 = vsub.f32 %v5666_v15, %v5906_v6  ;;  %v565_v3 = vsub.f32 %v5669_v16, %v5906_v6  ;;  %v566_v0 = vsub.f32 %v5672_v17, %v5906_v6 }
 0x12d   : > { %v567_v1 = vsub.f32 %v5677_v19, %v5906_v6  ;;  %v568_v7 = vsub.f32 %v5680_v20, %v5906_v6  ;;  %v569_v10 = vsub.f32 %v5701_v34, %v5906_v6  ;;  %v570_v13 = vsub.f32 %v5711_v42, %v5906_v6 }
 0x12e   : > { %s5072_s23 = spop %5071  ;;  %v571_v15 = vsub.f32 %v5714_v45, %v5906_v6  ;;  %v572_v16 = vsub.f32 %v5722_v51, %v5906_v6  ;;  %v573_v17 = vsub.f32 %v5725_v52, %v5906_v6  ;;  %v574_v27 = vsub.f32 %v5733_v56, %v5906_v6 }
 0x12f   : > { %s548_s24 = smul.f32 0.00012207031, %s5072_s23  ;;  %v575_v28 = vsub.f32 %v5740_v61, %v5906_v6  ;;  %v576_v29 = vsub.f32 %v5743_v62, %v5906_v6  ;;  %v577_v32 = vsub.f32 %v5768_v31, %v5906_v6  ;;  %v578_v36 = vsub.f32 %v5775_v39, %v5906_v6 }
 0x131   : > { %s550_s26 = ssub.f32 %s548_s24, %s549_s22  ;;  %s5526_s22 = smov [#allocation2]  }
 0x133   : > { %s551_s28 = smax.f32 %s5524_s27, %s550_s26 }
 0x134   : > { %s552_s0 = sadd.f32 1e-05, %s551_s28  ;;  %s9321_s28 = smov 32  }
 0x136   : > { %v553_v63 = vstv %s552_s0 }
 0x137   : > { %5164 = vrsqrt.f32 %v553_v63 }
 0x144   : > { %v5165_v5 = vpop.eup %5164 }
 0x145   : > { %5073 = vpush %v5165_v5 }
 0x176   : > { %s5074_s0 = spop %5073 }
 0x177   : > { %v5971_v35 = vstv %s5074_s0 }
 0x178   : > { %v5980_v41 = vmul.f32 %v5971_v35, %v583_v14  ;;  %v5983_v43 = vmul.f32 %v5971_v35, %v584_v18  ;;  %v618_v44 = vmul.f32 %v5971_v35, %v585_v21  ;;  %v619_v46 = vmul.f32 %v5971_v35, %v586_v22 }
 0x179   : > { %v620_v49 = vmul.f32 %v5971_v35, %v587_v23  ;;  %v621_v50 = vmul.f32 %v5971_v35, %v588_v25  ;;  %v592_v54 = vmul.f32 %v5971_v35, %v559_v26  ;;  %v593_v59 = vmul.f32 %v5971_v35, %v560_v24 }
 0x17a   : > { %v5997_v63 = vmul.f32 %v5969_v33, %v618_v44  ;;  %v6000_v5 = vmul.f32 %v5969_v33, %v619_v46  ;;  %v590_v14 = vmul.f32 %v5971_v35, %v557_v30  ;;  %v591_v18 = vmul.f32 %v5971_v35, %v558_v38 }
 0x17b   : > { %v658_v21 = vmul.f32 %v5969_v33, %v620_v49  ;;  %v659_v22 = vmul.f32 %v5969_v33, %v621_v50  ;;  %v630_v23 = vmul.f32 %v5969_v33, %v592_v54  ;;  %v631_v25 = vmul.f32 %v5969_v33, %v593_v59 }
 0x17c   : > { %v628_v26 = vmul.f32 %v5969_v33, %v590_v14  ;;  %v629_v24 = vmul.f32 %v5969_v33, %v591_v18  ;;  %v594_v44 = vmul.f32 %v5971_v35, %v561_v48  ;;  %v595_v46 = vmul.f32 %v5971_v35, %v562_v58 }
 0x17d   : > { %v6013_v30 = vadd.f32 %v5994_v60, %v658_v21  ;;  %v6016_v38 = vadd.f32 %v5994_v60, %v659_v22  ;;  %v6019_v49 = vadd.f32 %v5994_v60, %v630_v23  ;;  %v6022_v50 = vadd.f32 %v5994_v60, %v631_v25 }
 0x17e   : > { %v6025_v54 = vadd.f32 %v5994_v60, %v628_v26  ;;  %v6028_v59 = vadd.f32 %v5994_v60, %v629_v24  ;;  %v632_v48 = vmul.f32 %v5969_v33, %v594_v44  ;;  %v633_v58 = vmul.f32 %v5969_v33, %v595_v46 }
 0x17f   : > { %v4620_v14 = vmul.f32 -1.442695, %v6013_v30  ;;  %v4621_v18 = vmul.f32 -1.442695, %v6016_v38  ;;  %v4592_v21 = vmul.f32 -1.442695, %v6019_v49  ;;  %v596_v22 = vmul.f32 %v5971_v35, %v563_v8 }
 0x180   : > { %v4593_v23 = vmul.f32 -1.442695, %v6022_v50  ;;  %v4590_v25 = vmul.f32 -1.442695, %v6025_v54  ;;  %v4591_v26 = vmul.f32 -1.442695, %v6028_v59  ;;  %v6040_v24 = vadd.f32 %v5994_v60, %v632_v48 }
 0x181   : > { %5166 = vpow2.f32 %v4620_v14  ;;  %v6043_v44 = vadd.f32 %v5994_v60, %v633_v58  ;;  %v597_v46 = vmul.f32 %v5971_v35, %v564_v2  ;;  %v634_v11 = vmul.f32 %v5969_v33, %v596_v22 }
 0x182   : > { %5168 = vpow2.f32 %v4621_v18  ;;  %v4594_v8 = vmul.f32 -1.442695, %v6040_v24  ;;  %v598_v9 = vmul.f32 %v5971_v35, %v565_v3  ;;  %v599_v40 = vmul.f32 %v5971_v35, %v566_v0 }
 0x183   : > { %5170 = vpow2.f32 %v4592_v21  ;;  %v4595_v37 = vmul.f32 -1.442695, %v6043_v44  ;;  %v635_v48 = vmul.f32 %v5969_v33, %v597_v46  ;;  %v6053_v14 = vadd.f32 %v5994_v60, %v634_v11 }
 0x184   : > { %5172 = vpow2.f32 %v4593_v23  ;;  %v636_v2 = vmul.f32 %v5969_v33, %v598_v9  ;;  %v637_v58 = vmul.f32 %v5969_v33, %v599_v40  ;;  %v600_v3 = vmul.f32 %v5971_v35, %v567_v1 }
 0x185   : > { %5174 = vpow2.f32 %v4590_v25  ;;  %v6062_v0 = vadd.f32 %v5994_v60, %v635_v48  ;;  %v4596_v18 = vmul.f32 -1.442695, %v6053_v14  ;;  %v601_v11 = vmul.f32 %v5971_v35, %v568_v7 }
 0x186   : > { %5176 = vpow2.f32 %v4591_v26  ;;  %v6070_v9 = vadd.f32 %v5994_v60, %v636_v2  ;;  %v6073_v40 = vadd.f32 %v5994_v60, %v637_v58  ;;  %v638_v19 = vmul.f32 %v5969_v33, %v600_v3 }
 0x187   : > { %5178 = vpow2.f32 %v4594_v8  ;;  %v4597_v1 = vmul.f32 -1.442695, %v6062_v0  ;;  %v639_v21 = vmul.f32 %v5969_v33, %v601_v11  ;;  %v602_v20 = vmul.f32 %v5971_v35, %v569_v10 }
 0x188   : > { %5180 = vpow2.f32 %v4595_v37  ;;  %v4598_v7 = vmul.f32 -1.442695, %v6070_v9  ;;  %v4599_v22 = vmul.f32 -1.442695, %v6073_v40  ;;  %v6085_v23 = vadd.f32 %v5994_v60, %v638_v19 }
 0x189   : > { %5182 = vpow2.f32 %v4596_v18  ;;  %v6088_v25 = vadd.f32 %v5994_v60, %v639_v21  ;;  %v603_v26 = vmul.f32 %v5971_v35, %v570_v13  ;;  %v640_v34 = vmul.f32 %v5969_v33, %v602_v20 }
 0x18a   : > { %5184 = vpow2.f32 %v4597_v1  ;;  %v4600_v10 = vmul.f32 -1.442695, %v6085_v23  ;;  %v604_v37 = vmul.f32 %v5971_v35, %v571_v15  ;;  %v605_v46 = vmul.f32 %v5971_v35, %v572_v16 }
 0x18b   : > { %5186 = vpow2.f32 %v4598_v7  ;;  %v4601_v42 = vmul.f32 -1.442695, %v6088_v25  ;;  %v641_v13 = vmul.f32 %v5969_v33, %v603_v26  ;;  %v6107_v8 = vadd.f32 %v5994_v60, %v640_v34 }
 0x18c   : > { %5188 = vpow2.f32 %v4599_v22  ;;  %v642_v48 = vmul.f32 %v5969_v33, %v604_v37  ;;  %v643_v45 = vmul.f32 %v5969_v33, %v605_v46  ;;  %v606_v51 = vmul.f32 %v5971_v35, %v573_v17 }
 0x18d   : > { %5190 = vpow2.f32 %v4600_v10  ;;  %v6116_v15 = vadd.f32 %v5994_v60, %v641_v13  ;;  %v4602_v16 = vmul.f32 -1.442695, %v6107_v8  ;;  %v607_v2 = vmul.f32 %v5971_v35, %v574_v27 }
 0x18e   : > { %v5167_v58 = vpop.eup %5166  ;;  %5192 = vpow2.f32 %v4601_v42  ;;  %v6124_v3 = vadd.f32 %v5994_v60, %v642_v48  ;;  %v6127_v52 = vadd.f32 %v5994_v60, %v643_v45  ;;  %v644_v17 = vmul.f32 %v5969_v33, %v606_v51 }
 0x18f   : > { %v5169_v18 = vpop.eup %5168  ;;  %v824_v11 = vadd.f32 1.0, %v5167_v58  ;;  %5194 = vpow2.f32 %v4602_v16  ;;  %v6131_v19 = vmul.f32 -1.442695, %v6116_v15  ;;  %v645_v56 = vmul.f32 %v5969_v33, %v607_v2 }
 0x190   : > { %v5171_v1 = vpop.eup %5170  ;;  %v825_v27 = vadd.f32 1.0, %v5169_v18  ;;  %v6135_v21 = vmul.f32 -1.442695, %v6124_v3  ;;  %v6138_v20 = vmul.f32 -1.442695, %v6127_v52  ;;  %v6141_v7 = vadd.f32 %v5994_v60, %v644_v17 }
 0x191   : > { %v5173_v22 = vpop.eup %5172  ;;  %5196 = vrcp.f32 %v824_v11  ;;  %v796_v26 = vadd.f32 1.0, %v5171_v1  ;;  %v6144_v34 = vadd.f32 %v5994_v60, %v645_v56  ;;  %v608_v10 = vmul.f32 %v5971_v35, %v575_v28 }
 0x192   : > { %v5175_v37 = vpop.eup %5174  ;;  %5198 = vrcp.f32 %v825_v27  ;;  %v797_v46 = vadd.f32 1.0, %v5173_v22  ;;  %v6151_v42 = vmul.f32 -1.442695, %v6141_v7  ;;  %v609_v13 = vmul.f32 %v5971_v35, %v576_v29 }
 0x193   : > { %v5177_v48 = vpop.eup %5176  ;;  %5200 = vrcp.f32 %v796_v26  ;;  %v794_v45 = vadd.f32 1.0, %v5175_v37  ;;  %v6158_v51 = vmul.f32 -1.442695, %v6144_v34  ;;  %v646_v61 = vmul.f32 %v5969_v33, %v608_v10 }
 0x194   : > { %v5179_v28 = vpop.eup %5178  ;;  %5202 = vrcp.f32 %v797_v46  ;;  %v795_v16 = vadd.f32 1.0, %v5177_v48  ;;  %v647_v2 = vmul.f32 %v5969_v33, %v609_v13  ;;  %v610_v62 = vmul.f32 %v5971_v35, %v577_v32 }
 0x195   : > { %v5181_v58 = vpop.eup %5180  ;;  %5204 = vrcp.f32 %v794_v45  ;;  %v798_v29 = vadd.f32 1.0, %v5179_v28  ;;  %v6167_v17 = vadd.f32 %v5994_v60, %v646_v61  ;;  %v611_v18 = vmul.f32 %v5971_v35, %v578_v36 }
 0x196   : > { %v5183_v11 = vpop.eup %5182  ;;  %5206 = vrcp.f32 %v795_v16  ;;  %v799_v56 = vadd.f32 1.0, %v5181_v58  ;;  %v6174_v1 = vadd.f32 %v5994_v60, %v647_v2  ;;  %v648_v31 = vmul.f32 %v5969_v33, %v610_v62 }
 0x197   : > { %v5185_v32 = vpop.eup %5184  ;;  %5208 = vrcp.f32 %v798_v29  ;;  %v800_v27 = vadd.f32 1.0, %v5183_v11  ;;  %v6178_v22 = vmul.f32 -1.442695, %v6167_v17  ;;  %v649_v26 = vmul.f32 %v5969_v33, %v611_v18 }
 0x198   : > { %v5187_v10 = vpop.eup %5186  ;;  %5210 = vrcp.f32 %v799_v56  ;;  %v801_v39 = vadd.f32 1.0, %v5185_v32  ;;  %v6182_v36 = vmul.f32 -1.442695, %v6174_v1  ;;  %v6185_v37 = vadd.f32 %v5994_v60, %v648_v31 }
 0x199   : > { %v5189_v46 = vpop.eup %5188  ;;  %5212 = vrcp.f32 %v800_v27  ;;  %v802_v13 = vadd.f32 1.0, %v5187_v10  ;;  %v6188_v48 = vadd.f32 %v5994_v60, %v649_v26  ;;  %v9277_v45 = vsub.f32 %v5783_v47, %v5906_v6 }
 0x19a   : > { %v5191_v28 = vpop.eup %5190  ;;  %5214 = vrcp.f32 %v801_v39  ;;  %v803_v16 = vadd.f32 1.0, %v5189_v46  ;;  %v6195_v2 = vmul.f32 -1.442695, %v6185_v37  ;;  %v9278_v62 = vsub.f32 %v5791_v55, %v5906_v6 }
 0x19b   : > { %9276 = vst [vmem:[#allocation7_spill] sm:$0xff] %v6188_v48  ;;  %v612_v61 = vmul.f32 %v5971_v35, %v9277_v45  ;;  %v5193_v29 = vpop.eup %5192  ;;  %5216 = vrcp.f32 %v802_v13  ;;  %v804_v18 = vadd.f32 1.0, %v5191_v28  ;;  %v6202_v11 = vmul.f32 -1.442695, %v6188_v48 }
 0x19c   : > { %v613_v58 = vmul.f32 %v5971_v35, %v9278_v62  ;;  %v5195_v56 = vpop.eup %5194  ;;  %5218 = vrcp.f32 %v803_v16  ;;  %v805_v31 = vadd.f32 1.0, %v5193_v29  ;;  %v9279_v27 = vsub.f32 %v5799_v4, %v5906_v6 }
 0x19d   : > { %v650_v47 = vmul.f32 %v5969_v33, %v612_v61  ;;  %5220 = vrcp.f32 %v804_v18  ;;  %v806_v26 = vadd.f32 1.0, %v5195_v56  ;;  %v9281_v39 = vsub.f32 %v5807_v12, %v5906_v6 }
 0x19e   : > { %v651_v32 = vmul.f32 %v5969_v33, %v613_v58  ;;  %v614_v55 = vmul.f32 %v5971_v35, %v9279_v27  ;;  %v6217_v13 = vpop.eup %5196  ;;  %5222 = vrcp.f32 %v805_v31  ;;  %v654_v61 = vmul.f32 %v5969_v33, %v5980_v41 }
 0x19f   : > { %v6211_v10 = vadd.f32 %v5994_v60, %v650_v47  ;;  %v615_v46 = vmul.f32 %v5971_v35, %v9281_v39  ;;  %v6225_v28 = vpop.eup %5198  ;;  %5224 = vpow2.f32 %v6131_v19  ;;  %v655_v35 = vmul.f32 %v5969_v33, %v5983_v43 }
 0x1a0   : > { %v6220_v45 = vadd.f32 %v5994_v60, %v651_v32  ;;  %v652_v4 = vmul.f32 %v5969_v33, %v614_v55  ;;  %v5201_v16 = vpop.eup %5200  ;;  %5226 = vrcp.f32 %v806_v26  ;;  %v6241_v41 = vadd.f32 %v5994_v60, %v654_v61 }
 0x1a1   : > { %9280 = vst [vmem:[#allocation8_spill] sm:$0xff] %v6211_v10  ;;  %v6229_v12 = vmul.f32 -1.442695, %v6211_v10  ;;  %v653_v6 = vmul.f32 %v5969_v33, %v615_v46  ;;  %v5203_v19 = vpop.eup %5202  ;;  %v892_v29 = vmul.f32 %v5201_v16, %v6019_v49  ;;  %5228 = vpow2.f32 %v6135_v21 }
 0x1a2   : > { %9282 = vst [vmem:[#allocation9_spill] sm:$0xff] %v6220_v45  ;;  %v6235_v62 = vmul.f32 -1.442695, %v6220_v45  ;;  %v6238_v58 = vadd.f32 %v5994_v60, %v652_v4  ;;  %9284 = vst [vmem:[#allocation11_spill] sm:$0xff] %v6241_v41  ;;  %v6249_v33 = vadd.f32 %v5994_v60, %v655_v35  ;;  %v5205_v43 = vpop.eup %5204  ;;  %v893_v47 = vmul.f32 %v5203_v19, %v6022_v50 }
 0x1a3   : > { %v6246_v18 = vadd.f32 %v5994_v60, %v653_v6  ;;  %5230 = vpow2.f32 %v6138_v20  ;;  %v6257_v31 = vmul.f32 -1.442695, %v6241_v41  ;;  %v5207_v49 = vpop.eup %5206  ;;  %v958_v32 = vrot.slane %v892_v29, 7 }
 0x1a4   : > { %9283 = vst [vmem:[#allocation10_spill] sm:$0xff] %v6238_v58  ;;  %9286 = vst [vmem:[#allocation13_spill] sm:$0xff] %v6249_v33  ;;  %v6254_v56 = vmul.f32 -1.442695, %v6238_v58  ;;  %v890_v21 = vmul.f32 %v5205_v43, %v6025_v54  ;;  %5232 = vpow2.f32 %v6151_v42  ;;  %v5209_v55 = vpop.eup %5208  ;;  %v959_v26 = vrot.slane %v893_v47, 7 }
 0x1a5   : > { %9285 = vst [vmem:[#allocation12_spill] sm:$0xff] %v6246_v18  ;;  %v6262_v27 = vmul.f32 -1.442695, %v6246_v18  ;;  %v6265_v50 = vmul.f32 %v5207_v49, %v6028_v59  ;;  %5234 = vpow2.f32 %v6158_v51  ;;  %v6269_v20 = vmul.f32 -1.442695, %v6249_v33  ;;  %v5211_v39 = vpop.eup %5210 }
 0x1a6   : > { %v6272_v46 = vsel %vm954_vm1, 0.0, %v958_v32  ;;  %v955_v54 = vrot.slane %v890_v21, 7  ;;  %v894_v42 = vmul.f32 %v5209_v55, %v6040_v24  ;;  %5236 = vpow2.f32 %v6178_v22  ;;  %v5213_v4 = vpop.eup %5212 }
 0x1a7   : > { %v6277_v61 = vsel %vm954_vm1, %v958_v32, %v959_v26  ;;  %v1263_v51 = vrot.slane %v6272_v46, 2  ;;  %v9195_v6 = vrot.slane %v6265_v50, 7  ;;  %v5215_v35 = vpop.eup %5214  ;;  %v6299_v32 = vsel %vm954_vm1, %v959_v26, 0.0 }
 0x1a8   : > { %v6284_v16 = vpack.c.bf16 %v6277_v61, %v6272_v46  ;;  %v1264_v24 = vrot.slane %v6277_v61, 2  ;;  %v6289_v22 = vsel %vm954_vm1, 0.0, %v955_v54  ;;  %v5217_v29 = vpop.eup %5216  ;;  %v1266_v49 = vrot.slane %v6299_v32, 2 }
 0x1a9   : > { %v6294_v43 = vsel %vm954_vm1, %v955_v54, %v9195_v6  ;;  %v5219_v21 = vpop.eup %5218  ;;  %v895_v26 = vmul.f32 %v5211_v39, %v6043_v44  ;;  %v961_v6 = vrot.slane %v894_v42, 7  ;;  %v896_v53 = vmul.f32 %v5213_v4, %v6053_v14 }
 0x1aa   : > { %9287 = vst [vmem:[#allocation14_spill] sm:$0xff] %v6284_v16  ;;  %1577 = vrot.lane.b32.xlu0 %v6284_v16, %s9224_s29  ;;  %v6305_v55 = vpack.c.bf16 %v6294_v43, %v6289_v22  ;;  %v1265_v19 = vsel %vm1255_vm2, %v1263_v51, %v1264_v24  ;;  %v5221_v47 = vpop.eup %5220  ;;  %v897_v33 = vmul.f32 %v5215_v35, %v6062_v0 }
 0x1ab   : > { %v5223_v57 = vpop.eup %5222  ;;  %v898_v59 = vmul.f32 %v5217_v29, %v6070_v9  ;;  %v899_v54 = vmul.f32 %v5219_v21, %v6073_v40  ;;  %v6319_v51 = vmul.f32 %v5221_v47, %v6085_v23  ;;  %v1267_v44 = vsel %vm1255_vm2, %v1264_v24, %v1266_v49 }
 0x1ac   : > { %9288 = vst [vmem:[#allocation15_spill] sm:$0xff] %v6305_v55  ;;  %1511 = vrot.lane.b32.xlu1 %v6305_v55, %s9222_s21  ;;  %v5225_v41 = vpop.eup %5224  ;;  %v962_v39 = vrot.slane %v895_v26, 7  ;;  %v6323_v14 = vsel %vm954_vm1, 0.0, %v961_v6  ;;  %v964_v42 = vrot.slane %v896_v53, 7  ;;  %v6325_v18 = vpack.c.bf16 %v1267_v44, %v1265_v19 }
 0x1ad   : > { %v5227_v4 = vpop.eup %5226  ;;  %v1268_v0 = vrot.slane %v6323_v14, 2  ;;  %v965_v9 = vrot.slane %v897_v33, 7  ;;  %v967_v40 = vrot.slane %v898_v59, 7  ;;  %v968_v53 = vrot.slane %v899_v54, 7 }
 0x1ae   : > { %9289 = vst [vmem:[#allocation16_spill] sm:$0xff] %v6325_v18  ;;  %1513 = vrot.lane.b32.xlu0 %v6284_v16, %s9222_s21  ;;  %v5229_v23 = vpop.eup %5228  ;;  %v6331_v35 = vsel %vm954_vm1, %v961_v6, %v962_v39  ;;  %v6334_v24 = vsel %vm954_vm1, %v962_v39, 0.0  ;;  %v6337_v29 = vsel %vm954_vm1, 0.0, %v964_v42  ;;  %4997 = vmatprep.mubr.msk.bf16.mxu1 %vm366_vm0, %v6325_v18 }
 0x1af   : > { %v1269_v47 = vrot.slane %v6331_v35, 2  ;;  %v1271_v33 = vrot.slane %v6334_v24, 2  ;;  %v6345_v59 = vpack.c.bf16 %v6331_v35, %v6323_v14  ;;  %v6348_v6 = vsel %vm954_vm1, %v964_v42, %v965_v9 }
 0x1b0   : > { %v5231_v19 = vpop.eup %5230  ;;  %v6351_v21 = vsel %vm954_vm1, %v965_v9, 0.0  ;;  %v1273_v54 = vrot.slane %v6337_v29, 2  ;;  %v1274_v26 = vrot.slane %v6348_v6, 2  ;;  %v6357_v44 = vpack.c.bf16 %v6348_v6, %v6337_v29 }
 0x1b1   : > { %9290 = vst [vmem:[#allocation17_spill] sm:$0xff] %v6345_v59  ;;  %v5233_v49 = vpop.eup %5232  ;;  %v1270_v16 = vsel %vm1255_vm2, %v1268_v0, %v1269_v47  ;;  %v1272_v55 = vsel %vm1255_vm2, %v1269_v47, %v1271_v33  ;;  %1579 = vrot.lane.b32.xlu1 %v6345_v59, %s9224_s29  ;;  %v1276_v42 = vrot.slane %v6351_v21, 2  ;;  %v6367_v9 = vsel %vm954_vm1, %v967_v40, %v968_v53 }
 0x1b2   : > { %v5235_v39 = vpop.eup %5234  ;;  %1515 = vrot.lane.b32.xlu0 %v6345_v59, %s9222_s21  ;;  %v6369_v58 = vpack.c.bf16 %v1272_v55, %v1270_v16  ;;  %v1275_v45 = vsel %vm1255_vm2, %v1273_v54, %v1274_v26  ;;  %v6373_v0 = vsel %vm954_vm1, 0.0, %v967_v40  ;;  %v6376_v47 = vsel %vm954_vm1, %v968_v53, 0.0 }
 0x1b3   : > { %v5237_v18 = vpop.eup %5236  ;;  %v1277_v33 = vsel %vm1255_vm2, %v1274_v26, %v1276_v42  ;;  %v1278_v10 = vrot.slane %v6373_v0, 2  ;;  %v1279_v59 = vrot.slane %v6367_v9, 2  ;;  %v1281_v48 = vrot.slane %v6376_v47, 2 }
 0x1b4   : > { %4998 = vmatmul.mubr.msk.bf16.vlgmr.msra.gmra.mxu1 %vm366_vm0, %v6369_v58  ;;  %v6384_v16 = vpack.c.bf16 %v1277_v33, %v1275_v45  ;;  %v6388_v55 = vpack.c.bf16 %v6367_v9, %v6373_v0  ;;  %v901_v40 = vmul.f32 %v5223_v57, %v6088_v25  ;;  %v970_v53 = vrot.slane %v6319_v51, 7 }
 0x1b5   : > { %1581 = vrot.lane.b32.xlu1 %v6357_v44, %s9224_s29  ;;  %v1280_v54 = vsel %vm1255_vm2, %v1278_v10, %v1279_v59  ;;  %v1282_v26 = vsel %vm1255_vm2, %v1279_v59, %v1281_v48  ;;  %v807_v45 = vadd.f32 1.0, %v5225_v41  ;;  %v6399_v42 = vmul.f32 %v5227_v4, %v6107_v8 }
 0x1b6   : > { %9291 = vst [vmem:[#allocation18_spill] sm:$0xff] %v6388_v55  ;;  %1517 = vrot.lane.b32.xlu0 %v6357_v44, %s9222_s21  ;;  %5001 = vmatprep.mubr.msk.bf16.mxu1 %vm366_vm0, %v6384_v16  ;;  %v6403_v57 = vpack.c.bf16 %v1282_v26, %v1280_v54  ;;  %v971_v25 = vrot.slane %v901_v40, 7  ;;  %v6406_v51 = vsel %vm954_vm1, 0.0, %v970_v53  ;;  %v808_v33 = vadd.f32 1.0, %v5229_v23 }
 0x1b7   : > { %v1283_v10 = vrot.slane %v6406_v51, 2  ;;  %5238 = vrcp.f32 %v807_v45  ;;  %v973_v48 = vrot.slane %v6399_v42, 7  ;;  %v809_v59 = vadd.f32 1.0, %v5231_v19 }
 0x1b8   : > { %v6411_v41 = vsel %vm954_vm1, %v970_v53, %v971_v25  ;;  %v6414_v8 = vsel %vm954_vm1, %v971_v25, 0.0  ;;  %5240 = vrcp.f32 %v808_v33  ;;  %v810_v4 = vadd.f32 1.0, %v5233_v49 }
 0x1b9   : > { %1583 = vrot.lane.b32.xlu1 %v6388_v55, %s9224_s29  ;;  %v1284_v40 = vrot.slane %v6411_v41, 2  ;;  %v1286_v23 = vrot.slane %v6414_v8, 2  ;;  %v6424_v19 = vpack.c.bf16 %v6411_v41, %v6406_v51  ;;  %v6429_v53 = vsel %vm954_vm1, 0.0, %v973_v48 }
 0x1ba   : > { %1519 = vrot.lane.b32.xlu0 %v6388_v55, %s9222_s21  ;;  %v1288_v49 = vrot.slane %v6429_v53, 2  ;;  %5242 = vrcp.f32 %v809_v59  ;;  %v811_v54 = vadd.f32 1.0, %v5235_v39  ;;  %v812_v26 = vadd.f32 1.0, %v5237_v18 }
 0x1bb   : > { %v1285_v45 = vsel %vm1255_vm2, %v1283_v10, %v1284_v40  ;;  %v1287_v25 = vsel %vm1255_vm2, %v1284_v40, %v1286_v23  ;;  %5244 = vrcp.f32 %v810_v4  ;;  %v6436_v33 = vadd.f32 %v5994_v60, %v5997_v63 }
 0x1bc   : > { %5002 = vmatmul.mubr.msk.bf16.gmra.mxu1 %vm366_vm0, %v6403_v57  ;;  %v6440_v55 = vpack.c.bf16 %v1287_v25, %v1285_v45  ;;  %5246 = vrcp.f32 %v811_v54  ;;  %v6444_v59 = vadd.f32 %v5994_v60, %v6000_v5  ;;  %v920_v18 = vmul.f32 %v6217_v13, %v6013_v30 }
 0x1bd   : > { %1585 = vrot.lane.b32.xlu1 %v6424_v19, %s9224_s29  ;;  %5248 = vpow2.f32 %v6182_v36  ;;  %v4618_v63 = vmul.f32 -1.442695, %v6436_v33  ;;  %v921_v39 = vmul.f32 %v6225_v28, %v6016_v38  ;;  %v9292_v10 = vrot.slane %v6265_v50, 7 }
 0x1be   : > { %1521 = vrot.lane.b32.xlu0 %v6424_v19, %s9222_s21  ;;  %5005 = vmatprep.mubr.msk.bf16.mxu1 %vm366_vm0, %v6440_v55  ;;  %5250 = vrcp.f32 %v812_v26  ;;  %v4619_v5 = vmul.f32 -1.442695, %v6444_v59  ;;  %v1000_v30 = vrot.slane %v920_v18, 7  ;;  %v9293_v13 = vrot.slane %v6294_v43, 2 }
 0x1bf   : > { %v6459_v60 = vsel %vm954_vm1, %v9292_v10, 0.0  ;;  %v9294_v36 = vrot.slane %v6289_v22, 2  ;;  %5252 = vpow2.f32 %v6195_v2  ;;  %v1001_v38 = vrot.slane %v921_v39, 7 }
 0x1c0   : > { %v1261_v28 = vrot.slane %v6459_v60, 2  ;;  %v9295_v50 = vrot.slane %v6277_v61, 1  ;;  %v9296_v40 = vrot.slane %v6272_v46, 1  ;;  %5254 = vpow2.f32 %v6202_v11 }
 0x1c1   : > { %v1260_v4 = vsel %vm1255_vm2, %v9294_v36, %v9293_v13  ;;  %v6478_v54 = vsel %vm954_vm1, 0.0, %v1000_v30  ;;  %v1141_v26 = vrot.slane %v6299_v32, 1  ;;  %v1143_v45 = vrot.slane %v6323_v14, 1 }
 0x1c2   : > { %v1140_v23 = vsel %vm1130_vm3, %v9296_v40, %v9295_v50  ;;  %5256 = vpow2.f32 %v6229_v12  ;;  %v6484_v2 = vsel %vm954_vm1, %v1000_v30, %v1001_v38  ;;  %v6487_v25 = vsel %vm954_vm1, %v1001_v38, 0.0 }
 0x1c3   : > { %v1391_v46 = vrot.slane %v6478_v54, 2  ;;  %5258 = vpow2.f32 %v6235_v62  ;;  %v1392_v11 = vrot.slane %v6484_v2, 2  ;;  %v1394_v18 = vrot.slane %v6487_v25, 2 }
 0x1c4   : > { %v6495_v32 = vpack.c.bf16 %v6484_v2, %v6478_v54  ;;  %5260 = vpow2.f32 %v6254_v56  ;;  %v9297_v12 = vmov %v9293_v13  ;;  %v9298_v39 = vmov %v9295_v50  ;;  %v5239_v30 = vpop.eup %5238 }
 0x1c5   : > { %v1262_v14 = vsel %vm1255_vm2, %v9297_v12, %v1261_v28  ;;  %v1142_v10 = vsel %vm1130_vm3, %v9298_v39, %v1141_v26  ;;  %v1144_v62 = vrot.slane %v6331_v35, 1  ;;  %5262 = vpow2.f32 %v6262_v27  ;;  %v5241_v56 = vpop.eup %5240 }
 0x1c6   : > { %v1393_v13 = vsel %vm1255_vm2, %v1391_v46, %v1392_v11  ;;  %v1395_v36 = vsel %vm1255_vm2, %v1392_v11, %v1394_v18  ;;  %v6508_v38 = vpack.c.bf16 %v1262_v14, %v1260_v4  ;;  %v903_v50 = vmul.f32 %v5239_v30, %v6116_v15 }
 0x1c7   : > { %5264 = vpow2.f32 %v6257_v31  ;;  %v6512_v28 = vpack.c.bf16 %v1395_v36, %v1393_v13  ;;  %v6514_v61 = vpack.c.bf16 %v1142_v10, %v1140_v23  ;;  %v904_v35 = vmul.f32 %v5241_v56, %v6124_v3  ;;  %v5243_v26 = vpop.eup %5242 }
 0x1c8   : > { %5266 = vpow2.f32 %v6269_v20  ;;  %v1145_v27 = vsel %vm1130_vm3, %v1143_v45, %v1144_v62  ;;  %v1146_v40 = vrot.slane %v6334_v24, 1  ;;  %v974_v4 = vrot.slane %v903_v50, 7  ;;  %v5245_v11 = vpop.eup %5244 }
 0x1c9   : > { %5268 = vpow2.f32 %v4618_v63  ;;  %v9299_v46 = vrot.slane %v6294_v43, 1  ;;  %v9300_v15 = vrot.slane %v6289_v22, 1  ;;  %v905_v3 = vmul.f32 %v5243_v26, %v6127_v52  ;;  %v5247_v24 = vpop.eup %5246 }
 0x1ca   : > { %v976_v20 = vrot.slane %v904_v35, 7  ;;  %5270 = vpow2.f32 %v4619_v5  ;;  %v1147_v45 = vsel %vm1130_vm3, %v1144_v62, %v1146_v40  ;;  %v6533_v63 = vsel %vm954_vm1, %v973_v48, %v974_v4  ;;  %v5249_v14 = vpop.eup %5248 }
 0x1cb   : > { %v6525_v31 = vsel %vm1130_vm3, %v9300_v15, %v9299_v46  ;;  %v6536_v22 = vsel %vm954_vm1, %v974_v4, 0.0  ;;  %v906_v18 = vmul.f32 %v5245_v11, %v6141_v7  ;;  %v6539_v12 = vpack.c.bf16 %v1147_v45, %v1145_v27  ;;  %v5251_v10 = vpop.eup %5250 }
 0x1cc   : > { %v1289_v52 = vrot.slane %v6533_v63, 2  ;;  %v1291_v5 = vrot.slane %v6536_v22, 2  ;;  %v6545_v39 = vpack.c.bf16 %v6533_v63, %v6429_v53  ;;  %v977_v42 = vrot.slane %v905_v3, 7  ;;  %v5253_v13 = vpop.eup %5252 }
 0x1cd   : > { %v6548_v48 = vsel %vm954_vm1, 0.0, %v976_v20  ;;  %v907_v62 = vmul.f32 %v5247_v24, %v6144_v34  ;;  %v979_v30 = vrot.slane %v906_v18, 7  ;;  %v813_v7 = vadd.f32 1.0, %v5249_v14  ;;  %v5255_v34 = vpop.eup %5254 }
 0x1ce   : > { %9301 = vst [vmem:[#allocation19_spill] sm:$0xff] %v6545_v39  ;;  %v1290_v36 = vsel %vm1255_vm2, %v1288_v49, %v1289_v52  ;;  %v1292_v56 = vsel %vm1255_vm2, %v1289_v52, %v1291_v5  ;;  %1587 = vrot.lane.b32.xlu1 %v6545_v39, %s9224_s29  ;;  %v6558_v50 = vsel %vm954_vm1, %v976_v20, %v977_v42  ;;  %v6561_v35 = vsel %vm954_vm1, %v977_v42, 0.0 }
 0x1cf   : > { %1523 = vrot.lane.b32.xlu0 %v6545_v39, %s9222_s21  ;;  %v6565_v27 = vpack.c.bf16 %v1292_v56, %v1290_v36  ;;  %v1293_v40 = vrot.slane %v6548_v48, 2  ;;  %v1294_v49 = vrot.slane %v6558_v50, 2  ;;  %v1296_v26 = vrot.slane %v6561_v35, 2  ;;  %v5257_v4 = vpop.eup %5256 }
 0x1d0   : > { %v6572_v46 = vpack.c.bf16 %v6558_v50, %v6548_v48  ;;  %v980_v15 = vrot.slane %v907_v62, 7  ;;  %v6575_v11 = vsel %vm954_vm1, 0.0, %v979_v30  ;;  %5272 = vrcp.f32 %v813_v7  ;;  %v5259_v3 = vpop.eup %5258 }
 0x1d1   : > { %5006 = vmatmul.mubr.msk.bf16.gmra.mxu1 %vm366_vm0, %v6565_v27  ;;  %v1295_v20 = vsel %vm1255_vm2, %v1293_v40, %v1294_v49  ;;  %v1297_v45 = vsel %vm1255_vm2, %v1294_v49, %v1296_v26  ;;  %v1298_v24 = vrot.slane %v6575_v11, 2  ;;  %v6583_v18 = vmul.f32 %v5251_v10, %v6167_v17  ;;  %v5261_v14 = vpop.eup %5260 }
 0x1d2   : > { %9302 = vst [vmem:[#allocation20_spill] sm:$0xff] %v6572_v46  ;;  %v6585_v52 = vpack.c.bf16 %v1297_v45, %v1295_v20  ;;  %1589 = vrot.lane.b32.xlu1 %v6572_v46, %s9224_s29  ;;  %v6590_v5 = vsel %vm954_vm1, %v979_v30, %v980_v15  ;;  %v6593_v42 = vsel %vm954_vm1, %v980_v15, 0.0  ;;  %v814_v62 = vadd.f32 1.0, %v5253_v13  ;;  %v5263_v7 = vpop.eup %5262 }
 0x1d3   : > { %1525 = vrot.lane.b32.xlu0 %v6572_v46, %s9222_s21  ;;  %v1299_v17 = vrot.slane %v6590_v5, 2  ;;  %v1301_v10 = vrot.slane %v6593_v42, 2  ;;  %v6601_v36 = vpack.c.bf16 %v6590_v5, %v6575_v11  ;;  %v9213_v56 = vrot.slane %v6583_v18, 7 }
 0x1d4   : > { %v5265_v30 = vpop.eup %5264  ;;  %5009 = vmatprep.mubr.msk.bf16.mxu1 %vm366_vm0, %v6585_v52  ;;  %v815_v40 = vadd.f32 1.0, %v5255_v34  ;;  %5274 = vrcp.f32 %v814_v62  ;;  %v816_v49 = vadd.f32 1.0, %v5257_v4  ;;  %v817_v26 = vadd.f32 1.0, %v5259_v3 }
 0x1d5   : > { %v5267_v13 = vpop.eup %5266  ;;  %v1300_v15 = vsel %vm1255_vm2, %v1298_v24, %v1299_v17  ;;  %v1302_v20 = vsel %vm1255_vm2, %v1299_v17, %v1301_v10  ;;  %v818_v45 = vadd.f32 1.0, %v5261_v14  ;;  %v6613_v46 = vsel %vm954_vm1, 0.0, %v9213_v56 }
 0x1d6   : > { %v5269_v23 = vpop.eup %5268  ;;  %1591 = vrot.lane.b32.xlu1 %v6601_v36, %s9224_s29  ;;  %5276 = vrcp.f32 %v815_v40  ;;  %v819_v34 = vadd.f32 1.0, %v5263_v7  ;;  %v6617_v3 = vpack.c.bf16 %v1302_v20, %v1300_v15  ;;  %v820_v24 = vadd.f32 1.0, %v5265_v30 }
 0x1d7   : > { %1527 = vrot.lane.b32.xlu0 %v6601_v36, %s9222_s21  ;;  %v5271_v4 = vpop.eup %5270  ;;  %5278 = vrcp.f32 %v816_v49  ;;  %v821_v14 = vadd.f32 1.0, %v5267_v13  ;;  %v822_v62 = vadd.f32 1.0, %v5269_v23  ;;  %v9303_v17 = vrot.slane %v6459_v60, 1 }
 0x1d8   : > { %5280 = vrcp.f32 %v817_v26  ;;  %v9304_v10 = vrot.slane %v6294_v43, 1  ;;  %v1148_v39 = vrot.slane %v6337_v29, 1  ;;  %v1149_v30 = vrot.slane %v6348_v6, 1  ;;  %v5130_v6 = vld [vmem:[%s9186_s3 + $0x78] sm:$0xff]  }
 0x1d9   : > { %5010 = vmatmul.mubr.msk.bf16.gmra.mxu1 %vm366_vm0, %v6617_v3  ;;  %5282 = vrcp.f32 %v818_v45  ;;  %v1151_v40 = vrot.slane %v6351_v21, 1  ;;  %v1153_v60 = vrot.slane %v6373_v0, 1  ;;  %v1154_v43 = vrot.slane %v6367_v9, 1  ;;  %v5131_v21 = vld [vmem:[%s9186_s3 + $0x38] sm:$0xff]   ;;  %4733 = vmatprep.subr.bf16.mxu0 %v5130_v6 }
 0x1da   : > { %v1137_v56 = vsel %vm1130_vm3, %v9304_v10, %v9303_v17  ;;  %5284 = vrcp.f32 %v819_v34  ;;  %v1156_v23 = vrot.slane %v6376_v47, 1  ;;  %v823_v49 = vadd.f32 1.0, %v5271_v4  ;;  %4734 = vmatpush3.bf16.msra.mxu0 %v5131_v21 }
 0x1db   : > { %v6628_v7 = vpack.c.bf16 %v1137_v56, %v6525_v31  ;;  %v1150_v29 = vsel %vm1130_vm3, %v1148_v39, %v1149_v30  ;;  %v1152_v26 = vsel %vm1130_vm3, %v1149_v30, %v1151_v40  ;;  %v1158_v13 = vrot.slane %v6406_v51, 1 }
 0x1dc   : > { %5286 = vrcp.f32 %v820_v24  ;;  %v6644_v0 = vpack.c.bf16 %v1152_v26, %v1150_v29  ;;  %v1155_v9 = vsel %vm1130_vm3, %v1153_v60, %v1154_v43  ;;  %v1157_v47 = vsel %vm1130_vm3, %v1154_v43, %v1156_v23  ;;  %v5134_v29 = vld [vmem:[%s9186_s3 + $0x68] sm:$0xff]  }
 0x1dd   : > { %v5273_v31 = vpop.eup %5272  ;;  %5288 = vrcp.f32 %v821_v14  ;;  %v6648_v39 = vpack.c.bf16 %v1157_v47, %v1155_v9  ;;  %v1159_v51 = vrot.slane %v6411_v41, 1  ;;  %v1161_v56 = vrot.slane %v6414_v8, 1  ;;  %v5132_v41 = vld [vmem:[%s9186_s3 + $0x70] sm:$0xff]  }
 0x1de   : > { %v909_v15 = vmul.f32 %v5273_v31, %v6174_v1  ;;  %v1303_v20 = vrot.slane %v6613_v46, 2  ;;  %5290 = vrcp.f32 %v822_v62  ;;  %v1163_v4 = vrot.slane %v6429_v53, 1  ;;  %v5133_v8 = vld [vmem:[%s9186_s3 + $0x30] sm:$0xff]   ;;  %4735 = vmatprep.subr.bf16.mxu0 %v5132_v41 }
 0x1df   : > { %5292 = vrcp.f32 %v823_v49  ;;  %v1160_v45 = vsel %vm1130_vm3, %v1158_v13, %v1159_v51  ;;  %v1162_v34 = vsel %vm1130_vm3, %v1159_v51, %v1161_v56  ;;  %v1164_v14 = vrot.slane %v6533_v63, 1  ;;  %4736 = vmatpush3.bf16.msra.mxu0 %v5133_v8  ;;  %v9306_v13 = vld [vmem:[#allocation7_spill] sm:$0xff] }
 0x1e0   : > { %v983_v1 = vrot.slane %v909_v15, 7  ;;  %v6663_v24 = vpack.c.bf16 %v1162_v34, %v1160_v45  ;;  %v1166_v62 = vrot.slane %v6536_v22, 1  ;;  %v1168_v10 = vrot.slane %v6548_v48, 1  ;;  %v9307_v15 = vld [vmem:[#allocation8_spill] sm:$0xff]  ;;  %4737 = vmatprep.subr.bf16.mxu0 %v5134_v29 }
 0x1e1   : > { %v5275_v17 = vpop.eup %5274  ;;  %v1169_v53 = vrot.slane %v6558_v50, 1  ;;  %v1171_v30 = vrot.slane %v6561_v35, 1  ;;  %v9305_v60 = vrot.slane %v6583_v18, 7  ;;  %v1165_v22 = vsel %vm1130_vm3, %v1163_v4, %v1164_v14  ;;  %v9310_v29 = vld [vmem:[#allocation12_spill] sm:$0xff] }
 0x1e2   : > { %v6677_v23 = vsel %vm954_vm1, %v983_v1, 0.0  ;;  %v910_v63 = vmul.f32 %v5275_v17, %v6185_v37  ;;  %v1167_v18 = vsel %vm1130_vm3, %v1164_v14, %v1166_v62  ;;  %v5135_v37 = vld [vmem:[%s9186_s3 + $0x28] sm:$0xff]  }
 0x1e3   : > { %v6674_v43 = vsel %vm954_vm1, %v9305_v60, %v983_v1  ;;  %v5277_v48 = vpop.eup %5276  ;;  %v1306_v35 = vrot.slane %v6677_v23, 2  ;;  %v6695_v9 = vpack.c.bf16 %v1167_v18, %v1165_v22  ;;  %v6698_v47 = vsel %vm1130_vm3, %v1168_v10, %v1169_v53  ;;  %v9309_v60 = vld [vmem:[#allocation10_spill] sm:$0xff]  ;;  %4738 = vmatpush3.bf16.msra.mxu0 %v5135_v37 }
 0x1e4   : > { %v1304_v50 = vrot.slane %v6674_v43, 2  ;;  %v6685_v49 = vpack.c.bf16 %v6674_v43, %v6613_v46  ;;  %v5279_v26 = vpop.eup %5278  ;;  %v911_v6 = vmul.f32 %v5277_v48, %v9306_v13  ;;  %v985_v21 = vrot.slane %v910_v63, 7  ;;  %v5136_v48 = vld [vmem:[%s9186_s3 + $0x60] sm:$0xff]  }
 0x1e5   : > { %v5281_v31 = vpop.eup %5280  ;;  %v912_v45 = vmul.f32 %v5279_v26, %v9307_v15  ;;  %v1172_v22 = vsel %vm1130_vm3, %v1169_v53, %v1171_v30  ;;  %v5137_v53 = vld [vmem:[%s9186_s3 + $0x20] sm:$0xff]   ;;  %4739 = vmatprep.subr.bf16.mxu0 %v5136_v48 }
 0x1e6   : > { %v1305_v51 = vsel %vm1255_vm2, %v1303_v20, %v1304_v50  ;;  %v1307_v56 = vsel %vm1255_vm2, %v1304_v50, %v1306_v35  ;;  %1593 = vrot.lane.b32.xlu1 %v6685_v49, %s9224_s29  ;;  %1529 = vrot.lane.b32.xlu0 %v6685_v49, %s9222_s21  ;;  %v5283_v4 = vpop.eup %5282  ;;  %v986_v8 = vrot.slane %v911_v6, 7  ;;  %v6711_v1 = vsel %vm954_vm1, 0.0, %v985_v21  ;;  %v9308_v20 = vld [vmem:[#allocation9_spill] sm:$0xff] }
 0x1e7   : > { %v6708_v41 = vpack.c.bf16 %v1307_v56, %v1305_v51  ;;  %v913_v14 = vmul.f32 %v5281_v31, %v9308_v20  ;;  %v5285_v62 = vpop.eup %5284  ;;  %v1308_v17 = vrot.slane %v6711_v1, 2  ;;  %v988_v10 = vrot.slane %v912_v45, 7  ;;  %4740 = vmatpush3.bf16.msra.mxu0 %v5137_v53 }
 0x1e8   : > { %v914_v63 = vmul.f32 %v5283_v4, %v9309_v60  ;;  %v6723_v50 = vsel %vm954_vm1, %v985_v21, %v986_v8  ;;  %v6726_v35 = vsel %vm954_vm1, %v986_v8, 0.0  ;;  %v915_v26 = vmul.f32 %v5285_v62, %v9310_v29  ;;  %v5139_v29 = vld [vmem:[%s9186_s3 + $0x18] sm:$0xff]  }
 0x1e9   : > { %5013 = vmatprep.mubr.msk.bf16.mxu1 %vm366_vm0, %v6708_v41  ;;  %v989_v18 = vrot.slane %v913_v14, 7  ;;  %v5287_v30 = vpop.eup %5286  ;;  %v1309_v37 = vrot.slane %v6723_v50, 2  ;;  %v1311_v13 = vrot.slane %v6726_v35, 2  ;;  %v6736_v6 = vpack.c.bf16 %v6723_v50, %v6711_v1 }
 0x1ea   : > { %v6739_v21 = vsel %vm954_vm1, 0.0, %v988_v10  ;;  %v5289_v31 = vpop.eup %5288  ;;  %v991_v45 = vrot.slane %v914_v63, 7  ;;  %v992_v48 = vrot.slane %v915_v26, 7 }
 0x1eb   : > { %9311 = vst [vmem:[#allocation7_spill] sm:$0xff] %v6736_v6  ;;  %v6742_v51 = vsel %vm954_vm1, %v988_v10, %v989_v18  ;;  %v6745_v56 = vsel %vm954_vm1, %v989_v18, 0.0  ;;  %v1313_v15 = vrot.slane %v6739_v21, 2  ;;  %v5291_v4 = vpop.eup %5290  ;;  %v1310_v8 = vsel %vm1255_vm2, %v1308_v17, %v1309_v37  ;;  %1595 = vrot.lane.b32.xlu1 %v6736_v6, %s9224_s29  ;;  %1531 = vrot.lane.b32.xlu0 %v6736_v6, %s9222_s21  ;;  %v5138_v10 = vld [vmem:[%s9186_s3 + $0x58] sm:$0xff]   ;;  %v9314_v6 = vld [vmem:[#allocation13_spill] sm:$0xff] }
 0x1ec   : > { %v1312_v20 = vsel %vm1255_vm2, %v1309_v37, %v1311_v13  ;;  %v1314_v14 = vrot.slane %v6742_v51, 2  ;;  %v1316_v62 = vrot.slane %v6745_v56, 2  ;;  %v5293_v60 = vpop.eup %5292  ;;  %v6763_v17 = vpack.c.bf16 %v6742_v51, %v6739_v21  ;;  %4741 = vmatprep.subr.bf16.mxu0 %v5138_v10  ;;  %v5140_v10 = vld [vmem:[%s9186_s3 + $0x50] sm:$0xff]  }
 0x1ed   : > { %v6759_v63 = vpack.c.bf16 %v1312_v20, %v1310_v8  ;;  %v6766_v18 = vsel %vm954_vm1, 0.0, %v991_v45  ;;  %v9313_v20 = vld [vmem:[#allocation11_spill] sm:$0xff]  ;;  %v6780_v53 = vsel %vm954_vm1, %v991_v45, %v992_v48  ;;  %v6783_v34 = vsel %vm954_vm1, %v992_v48, 0.0  ;;  %4742 = vmatpush3.bf16.msra.mxu0 %v5139_v29 }
 0x1ee   : > { %9312 = vst [vmem:[#allocation8_spill] sm:$0xff] %v6763_v17  ;;  %v1315_v37 = vsel %vm1255_vm2, %v1313_v15, %v1314_v14  ;;  %v1317_v13 = vsel %vm1255_vm2, %v1314_v14, %v1316_v62  ;;  %v1318_v8 = vrot.slane %v6766_v18, 2  ;;  %v916_v40 = vmul.f32 %v5287_v30, %v9313_v20  ;;  %4743 = vmatprep.subr.bf16.mxu0 %v5140_v10 }
 0x1ef   : > { %5014 = vmatmul.mubr.msk.bf16.gmra.mxu1 %vm366_vm0, %v6759_v63  ;;  %v6777_v26 = vpack.c.bf16 %v1317_v13, %v1315_v37  ;;  %v917_v15 = vmul.f32 %v5289_v31, %v9314_v6  ;;  %1597 = vrot.lane.b32.xlu1 %v6763_v17, %s9224_s29  ;;  %v1319_v14 = vrot.slane %v6780_v53, 2  ;;  %v1321_v30 = vrot.slane %v6783_v34, 2 }
 0x1f0   : > { %1533 = vrot.lane.b32.xlu0 %v6763_v17, %s9222_s21  ;;  %v6794_v62 = vpack.c.bf16 %v6780_v53, %v6766_v18  ;;  %v994_v45 = vrot.slane %v916_v40, 7  ;;  %v918_v31 = vmul.f32 %v5291_v4, %v6436_v33  ;;  %v919_v48 = vmul.f32 %v5293_v60, %v6444_v59  ;;  %v5141_v40 = vld [vmem:[%s9186_s3 + $0x10] sm:$0xff]  }
 0x1f1   : > { %5017 = vmatprep.mubr.msk.bf16.mxu1 %vm366_vm0, %v6777_v26  ;;  %v995_v6 = vrot.slane %v917_v15, 7  ;;  %v6804_v37 = vpack.c.bf16 %v1172_v22, %v6698_v47  ;;  %v1320_v13 = vsel %vm1255_vm2, %v1318_v8, %v1319_v14  ;;  %v1322_v20 = vsel %vm1255_vm2, %v1319_v14, %v1321_v30  ;;  %v5142_v30 = vld [vmem:[%s9186_s3 + $0x48] sm:$0xff]   ;;  %4744 = vmatpush3.bf16.msra.mxu0 %v5141_v40 }
 0x1f2   : > { %9315 = vst [vmem:[#allocation9_spill] sm:$0xff] %v6794_v62  ;;  %v6812_v17 = vsel %vm954_vm1, 0.0, %v994_v45  ;;  %v9316_v15 = vrot.slane %v6590_v5, 1  ;;  %v9317_v33 = vrot.slane %v6575_v11, 1  ;;  %v6819_v47 = vpack.c.bf16 %v1322_v20, %v1320_v13  ;;  %v5143_v20 = vld [vmem:[%s9186_s3 + $0x8] sm:$0xff]   ;;  %4745 = vmatprep.subr.bf16.mxu0 %v5142_v30 }
 0x1f3   : > { %v6822_v22 = vsel %vm954_vm1, %v994_v45, %v995_v6  ;;  %v6825_v4 = vsel %vm954_vm1, %v995_v6, 0.0  ;;  %v1323_v60 = vrot.slane %v6812_v17, 2  ;;  %1599 = vrot.lane.b32.xlu1 %v6794_v62, %s9224_s29  ;;  %v997_v14 = vrot.slane %v918_v31, 7 }
 0x1f4   : > { %v1175_v59 = vsel %vm1130_vm3, %v9317_v33, %v9316_v15  ;;  %v1324_v29 = vrot.slane %v6822_v22, 2  ;;  %v1326_v11 = vrot.slane %v6825_v4, 2  ;;  %1535 = vrot.lane.b32.xlu0 %v6794_v62, %s9222_s21  ;;  %v6836_v8 = vpack.c.bf16 %v6822_v22, %v6812_v17 }
 0x1f5   : > { %v998_v45 = vrot.slane %v919_v48, 7  ;;  %v1176_v10 = vrot.slane %v6593_v42, 1  ;;  %v1178_v6 = vrot.slane %v6613_v46, 1  ;;  %v1179_v13 = vrot.slane %v6674_v43, 1  ;;  %4746 = vmatpush3.bf16.msra.mxu0 %v5143_v20 }
 0x1f6   : > { %9318 = vst [vmem:[#allocation10_spill] sm:$0xff] %v6836_v8  ;;  %v1325_v15 = vsel %vm1255_vm2, %v1323_v60, %v1324_v29  ;;  %v1327_v31 = vsel %vm1255_vm2, %v1324_v29, %v1326_v11  ;;  %v6850_v33 = vsel %vm954_vm1, 0.0, %v997_v14  ;;  %v1181_v48 = vrot.slane %v6677_v23, 1 }
 0x1f7   : > { %5018 = vmatmul.mubr.msk.bf16.gmra.mxu1 %vm366_vm0, %v6819_v47  ;;  %v6855_v46 = vpack.c.bf16 %v1327_v31, %v1325_v15  ;;  %v999_v42 = vsel %vm954_vm1, %v997_v14, %v998_v45  ;;  %v1081_v43 = vsel %vm954_vm1, %v998_v45, 0.0  ;;  %v1328_v40 = vrot.slane %v6850_v33, 2  ;;  %1601 = vrot.lane.b32.xlu1 %v6836_v8, %s9224_s29  ;;  %v5144_v14 = vld [vmem:[%s9186_s3 + $0x40] sm:$0xff]  }
 0x1f8   : > { %v1329_v60 = vrot.slane %v999_v42, 2  ;;  %v1331_v29 = vrot.slane %v1081_v43, 2  ;;  %1537 = vrot.lane.b32.xlu0 %v6836_v8, %s9222_s21  ;;  %v6865_v23 = vpack.c.bf16 %v999_v42, %v6850_v33  ;;  %v9320_v11 = vrot.slane %v6590_v5, 1  ;;  %v5145_v5 = vld [vmem:[%s9186_s3] sm:$0xff]   ;;  %4747 = vmatprep.subr.bf16.mxu0 %v5144_v14 }
 0x1f9   : > { %5021 = vmatprep.mubr.msk.bf16.mxu1 %vm366_vm0, %v6855_v46  ;;  %v1180_v15 = vsel %vm1130_vm3, %v1178_v6, %v1179_v13  ;;  %v1182_v31 = vsel %vm1130_vm3, %v1179_v13, %v1181_v48  ;;  %v1183_v8 = vrot.slane %v6711_v1, 1  ;;  %v1186_v6 = vrot.slane %v6726_v35, 1  ;;  %4748 = vmatpush3.bf16.msra.mxu0 %v5145_v5 }
 0x1fa   : > { %9319 = vst [vmem:[#allocation12_spill] sm:$0xff] %v6865_v23  ;;  %v1177_v30 = vsel %vm1130_vm3, %v9320_v11, %v1176_v10  ;;  %v1330_v10 = vsel %vm1255_vm2, %v1328_v40, %v1329_v60  ;;  %v1332_v11 = vsel %vm1255_vm2, %v1329_v60, %v1331_v29  ;;  %v6885_v62 = vpack.c.bf16 %v1182_v31, %v1180_v15 }
 0x1fb   : > { %v6875_v45 = vpack.c.bf16 %v1177_v30, %v1175_v59  ;;  %v1184_v59 = vrot.slane %v6723_v50, 1  ;;  %v6888_v30 = vpack.c.bf16 %v1332_v11, %v1330_v10  ;;  %v1188_v1 = vrot.slane %v6739_v21, 1  ;;  %1603 = vrot.lane.b32.xlu1 %v6865_v23, %s9224_s29 }
 0x1fc   : > { %v1189_v13 = vrot.slane %v6742_v51, 1  ;;  %1539 = vrot.lane.b32.xlu0 %v6865_v23, %s9222_s21  ;;  %v1191_v48 = vrot.slane %v6745_v56, 1  ;;  %v1193_v50 = vrot.slane %v6766_v18, 1  ;;  %v1194_v40 = vrot.slane %v6780_v53, 1 }
 0x1fd   : > { %v1185_v20 = vsel %vm1130_vm3, %v1183_v8, %v1184_v59  ;;  %v1187_v35 = vsel %vm1130_vm3, %v1184_v59, %v1186_v6  ;;  %v1196_v51 = vrot.slane %v6783_v34, 1  ;;  %v1198_v60 = vrot.slane %v6812_v17, 1 }
 0x1fe   : > { %v1190_v21 = vsel %vm1130_vm3, %v1188_v1, %v1189_v13  ;;  %v6905_v29 = vpack.c.bf16 %v1187_v35, %v1185_v20  ;;  %v1192_v14 = vsel %vm1130_vm3, %v1189_v13, %v1191_v48  ;;  %v1195_v8 = vsel %vm1130_vm3, %v1193_v50, %v1194_v40 }
 0x1ff   : > { %v1199_v56 = vrot.slane %v6822_v22, 1  ;;  %5022 = vmatmul.mubr.msk.bf16.gmra.mxu1 %vm366_vm0, %v6888_v30  ;;  %v6912_v18 = vpack.c.bf16 %v1192_v14, %v1190_v21  ;;  %v1197_v53 = vsel %vm1130_vm3, %v1194_v40, %v1196_v51  ;;  %v1201_v34 = vrot.slane %v6825_v4, 1  ;;  %1605 = vrot.lane.b32.xlu1 %v6495_v32, %s9224_s29 }
 0x200   : > { %v1203_v17 = vrot.slane %v6850_v33, 1  ;;  %5025 = vmatprep.mubr.msk.bf16.mxu1 %vm366_vm0, %v6512_v28  ;;  %v6921_v15 = vpack.c.bf16 %v1197_v53, %v1195_v8  ;;  %v1204_v31 = vrot.slane %v999_v42, 1  ;;  %v1206_v5 = vrot.slane %v1081_v43, 1  ;;  %1465 = vrot.lane.b32.xlu0 %v6508_v38, %s9224_s29 }
 0x201   : > { %v1200_v22 = vsel %vm1130_vm3, %v1198_v60, %v1199_v56  ;;  %v1202_v10 = vsel %vm1130_vm3, %v1199_v56, %v1201_v34  ;;  %v1383_v4 = vrot.slane %v6478_v54, 1  ;;  %v1384_v33 = vrot.slane %v6484_v2, 1  ;;  %v9322_v2 = vld [vmem:[#allocation6_spill] sm:$0xff] }
 0x202   : > { %v1386_v11 = vrot.slane %v6487_v25, 1  ;;  %v6930_v59 = vpack.c.bf16 %v1202_v10, %v1200_v22  ;;  %v1205_v6 = vsel %vm1130_vm3, %v1203_v17, %v1204_v31  ;;  %v1207_v1 = vsel %vm1130_vm3, %v1204_v31, %v1206_v5  ;;  %v9323_v25 = vld [vmem:[#allocation16_spill] sm:$0xff] }
 0x203   : > { %v6934_v13 = vpack.c.bf16 %v1207_v1, %v1205_v6  ;;  %v1385_v42 = vsel %vm1130_vm3, %v1383_v4, %v1384_v33  ;;  %1544 = vrot.lane.b32.xlu1 %v6508_v38, %s9321_s28  ;;  %v6964_v38 = vpop.permute.xlu1 %1415 }
 0x204   : > { %v1387_v43 = vsel %vm1130_vm3, %v1384_v33, %v1386_v11  ;;  %1419 = vrot.lane.b32.xlu0 %v6514_v61, %s9321_s28 }
 0x205   : > { %v6940_v54 = vpack.c.bf16 %v1387_v43, %v1385_v42 }
 0x207   : > { %5026 = vmatmul.mubr.msk.bf16.gmra.mxu1 %vm366_vm0, %v9322_v2  ;;  %1610 = vrot.lane.b32.xlu1 %v6514_v61, %s9222_s21  ;;  %v6972_v20 = vpop.permute.xlu1 %1463 }
 0x208   : > { %1467 = vrot.lane.b32.xlu0 %v9323_v25, %s9224_s29 }
 0x20b   : > { %1546 = vrot.lane.b32.xlu1 %v9323_v25, %s9321_s28 }
 0x20c   : > { %1421 = vrot.lane.b32.xlu0 %v6539_v12, %s9321_s28 }
 0x20f   : > { %1417 = vrot.lane.b32.xlu1 %v6628_v7, %s9321_s28 }
 0x210   : > { %1469 = vrot.lane.b32.xlu0 %v6369_v58, %s9224_s29 }
 0x213   : > { %1612 = vrot.lane.b32.xlu1 %v6539_v12, %s9222_s21 }
 0x214   : > { %1423 = vrot.lane.b32.xlu0 %v6644_v0, %s9321_s28 }
 0x217   : > { %1548 = vrot.lane.b32.xlu1 %v6369_v58, %s9321_s28  ;;  %v6978_v58 = vpop.permute.xlu1 %1607 }
 0x218   : > { %1471 = vrot.lane.b32.xlu0 %v6384_v16, %s9224_s29  ;;  %9324 = vst [vmem:[#allocation11_spill] sm:$0xff] %v6978_v58 }
 0x21b   : > { %1614 = vrot.lane.b32.xlu1 %v6644_v0, %s9222_s21 }
 0x21c   : > { %1425 = vrot.lane.b32.xlu0 %v6648_v39, %s9321_s28  ;;  %v6980_v48 = vpop.permute.xlu0 %1577 }
 0x21e   : > { %v6988_v50 = vpop.permute.xlu1 %1511 }
 0x21f   : > { %1550 = vrot.lane.b32.xlu1 %v6384_v16, %s9321_s28 }
 0x220   : > { %1473 = vrot.lane.b32.xlu0 %v6403_v57, %s9224_s29  ;;  %v6990_v40 = vpop.permute.xlu0 %1513 }
 0x223   : > { %1616 = vrot.lane.b32.xlu1 %v6648_v39, %s9222_s21  ;;  %v6998_v16 = vpop.permute.xlu1 %1579 }
 0x224   : > { %1427 = vrot.lane.b32.xlu0 %v6663_v24, %s9321_s28  ;;  %v7000_v35 = vpop.permute.xlu0 %1515 }
 0x227   : > { %1552 = vrot.lane.b32.xlu1 %v6403_v57, %s9321_s28  ;;  %v7008_v57 = vpop.permute.xlu1 %1581 }
 0x228   : > { %1475 = vrot.lane.b32.xlu0 %v6440_v55, %s9224_s29  ;;  %v7010_v21 = vpop.permute.xlu0 %1517 }
 0x22b   : > { %1618 = vrot.lane.b32.xlu1 %v6663_v24, %s9222_s21 }
 0x22c   : > { %1429 = vrot.lane.b32.xlu0 %v6695_v9, %s9321_s28  ;;  %v7020_v51 = vpop.permute.xlu0 %1519 }
 0x22f   : > { %1554 = vrot.lane.b32.xlu1 %v6440_v55, %s9321_s28  ;;  %v7018_v55 = vpop.permute.xlu1 %1583 }
 0x230   : > { %1477 = vrot.lane.b32.xlu0 %v6565_v27, %s9224_s29  ;;  %v7030_v14 = vpop.permute.xlu0 %1521 }
 0x233   : > { %1620 = vrot.lane.b32.xlu1 %v6695_v9, %s9222_s21  ;;  %v7028_v60 = vpop.permute.xlu1 %1585 }
 0x234   : > { %1431 = vrot.lane.b32.xlu0 %v6804_v37, %s9321_s28 }
 0x237   : > { %1556 = vrot.lane.b32.xlu1 %v6565_v27, %s9321_s28 }
 0x238   : > { %1479 = vrot.lane.b32.xlu0 %v6585_v52, %s9224_s29 }
 0x23b   : > { %1622 = vrot.lane.b32.xlu1 %v6804_v37, %s9222_s21 }
 0x23c   : > { %1433 = vrot.lane.b32.xlu0 %v6875_v45, %s9321_s28 }
 0x23f   : > { %1558 = vrot.lane.b32.xlu1 %v6585_v52, %s9321_s28 }
 0x240   : > { %1481 = vrot.lane.b32.xlu0 %v6617_v3, %s9224_s29  ;;  %v7038_v27 = vpop.permute.xlu1 %1587 }
 0x241   : > { %v7040_v8 = vpop.permute.xlu0 %1523 }
 0x243   : > { %1624 = vrot.lane.b32.xlu1 %v6875_v45, %s9222_s21 }
 0x244   : > { %1435 = vrot.lane.b32.xlu0 %v6885_v62, %s9321_s28  ;;  %v7048_v52 = vpop.permute.xlu1 %1589 }
 0x245   : > { %v7050_v56 = vpop.permute.xlu0 %1525 }
 0x247   : > { %1560 = vrot.lane.b32.xlu1 %v6617_v3, %s9321_s28 }
 0x248   : > { %1483 = vrot.lane.b32.xlu0 %v6708_v41, %s9224_s29  ;;  %v7058_v3 = vpop.permute.xlu1 %1591 }
 0x249   : > { %v7060_v53 = vpop.permute.xlu0 %1527 }
 0x24b   : > { %1626 = vrot.lane.b32.xlu1 %v6885_v62, %s9222_s21 }
 0x24c   : > { %1437 = vrot.lane.b32.xlu0 %v6905_v29, %s9321_s28 }
 0x24f   : > { %1562 = vrot.lane.b32.xlu1 %v6708_v41, %s9321_s28 }
 0x250   : > { %1485 = vrot.lane.b32.xlu0 %v6759_v63, %s9224_s29 }
 0x253   : > { %1628 = vrot.lane.b32.xlu1 %v6905_v29, %s9222_s21 }
 0x254   : > { %1439 = vrot.lane.b32.xlu0 %v6912_v18, %s9321_s28 }
 0x257   : > { %1564 = vrot.lane.b32.xlu1 %v6759_v63, %s9321_s28 }
 0x258   : > { %v7068_v34 = vpop.permute.xlu1 %1593  ;;  %v7070_v17 = vpop.permute.xlu0 %1529  ;;  %1487 = vrot.lane.b32.xlu0 %v6777_v26, %s9224_s29 }
 0x25b   : > { %1630 = vrot.lane.b32.xlu1 %v6912_v18, %s9222_s21 }
 0x25c   : > { %1441 = vrot.lane.b32.xlu0 %v6921_v15, %s9321_s28 }
 0x25d   : > { %v7078_v41 = vpop.permute.xlu1 %1595  ;;  %v7080_v22 = vpop.permute.xlu0 %1531 }
 0x25f   : > { %1566 = vrot.lane.b32.xlu1 %v6777_v26, %s9321_s28 }
 0x260   : > { %1489 = vrot.lane.b32.xlu0 %v6819_v47, %s9224_s29 }
 0x261   : > { %v7086_v63 = vpop.permute.xlu1 %1597 }
 0x262   : > { %v7088_v31 = vpop.permute.xlu0 %1533 }
 0x263   : > { %1632 = vrot.lane.b32.xlu1 %v6921_v15, %s9222_s21 }
 0x264   : > { %1443 = vrot.lane.b32.xlu0 %v6930_v59, %s9321_s28 }
 0x265   : > { %v7094_v5 = vpop.permute.xlu1 %1599 }
 0x266   : > { %v7096_v10 = vpop.permute.xlu0 %1535 }
 0x267   : > { %1568 = vrot.lane.b32.xlu1 %v6819_v47, %s9321_s28 }
 0x268   : > { %1491 = vrot.lane.b32.xlu0 %v6855_v46, %s9224_s29 }
 0x269   : > { %v7102_v26 = vpop.permute.xlu1 %1601 }
 0x26a   : > { %v7104_v4 = vpop.permute.xlu0 %1537 }
 0x26b   : > { %1634 = vrot.lane.b32.xlu1 %v6930_v59, %s9222_s21 }
 0x26c   : > { %1445 = vrot.lane.b32.xlu0 %v6934_v13, %s9321_s28 }
 0x26d   : > { %v7110_v33 = vpop.permute.xlu1 %1603 }
 0x26e   : > { %v7112_v11 = vpop.permute.xlu0 %1539 }
 0x26f   : > { %1570 = vrot.lane.b32.xlu1 %v6855_v46, %s9321_s28  ;;  %v1644_v46 = vsel %vm366_vm0, 0.0|0.0, %v6964_v38 }
 0x270   : > { %1493 = vrot.lane.b32.xlu0 %v6888_v30, %s9224_s29 }
 0x271   : > { %v7118_v47 = vpop.permute.xlu1 %1605 }
 0x272   : > { %v1466_v6 = vpop.permute.xlu0 %1465 }
 0x273   : > { %1636 = vrot.lane.b32.xlu1 %v6934_v13, %s9222_s21 }
 0x274   : > { %1541 = vrot.lane.b32.xlu0 %v6495_v32, %s9222_s21  ;;  %v7134_v32 = vsel %vm1690_vm4, %v1644_v46, %v6972_v20 }
 0x275   : > { %v1545_v1 = vpop.permute.xlu1 %1544  ;;  %9325 = vst [vmem:[#allocation13_spill] sm:$0xff] %v7134_v32 }
 0x276   : > { %v1774_v42 = vsel %vm366_vm0, %v6628_v7, %v1545_v1  ;;  %v1420_v43 = vpop.permute.xlu0 %1419 }
 0x277   : > { %1572 = vrot.lane.b32.xlu1 %v6888_v30, %s9321_s28  ;;  %v1821_v2 = vsel %vm1690_vm4, %v1774_v42, %v6980_v48  ;;  %v1725_v30 = vsel %vm1723_vm5, %v7134_v32, %v6988_v50 }
 0x279   : > { %v1611_v25 = vpop.permute.xlu1 %1610 }
 0x27a   : > { %v1853_v58 = vsel %vm1723_vm5, %v1821_v2, %v1611_v25  ;;  %v1468_v7 = vpop.permute.xlu0 %1467  ;;  %v9326_v2 = vld [vmem:[#allocation15_spill] sm:$0xff] }
 0x27b   : > { %1638 = vrot.lane.b32.xlu1 %v6940_v54, %s9222_s21  ;;  %2131 = vmatprep.mubr.bf16.mxu0 %v1853_v58  ;;  %v9327_v58 = vld [vmem:[#allocation5_spill] sm:$0xff] }
 0x27c   : > { %2132 = vmatmul.mubr.bf16.vlgmr.msra.gmra.mxu0 %v1725_v30 }
 0x27d   : > { %v1547_v38 = vpop.permute.xlu1 %1546 }
 0x27e   : > { %v1422_v1 = vpop.permute.xlu0 %1421  ;;  %v1777_v20 = vsel %vm366_vm0, %v6514_v61, %v1547_v38 }
 0x27f   : > { %1574 = vrot.lane.b32.xlu1 %v6512_v28, %s9321_s28  ;;  %v1823_v30 = vsel %vm1690_vm4, %v1777_v20, %v6998_v16 }
 0x281   : > { %v1418_v48 = vpop.permute.xlu1 %1417 }
 0x282   : > { %v1647_v42 = vsel %vm366_vm0, %v9326_v2, %v1418_v48  ;;  %v1470_v46 = vpop.permute.xlu0 %1469 }
 0x283   : > { %1640 = vrot.lane.b32.xlu1 %v9327_v58, %s9222_s21  ;;  %v1694_v25 = vsel %vm1690_vm4, %v1647_v42, %v1466_v6  ;;  %v9328_v58 = vld [vmem:[#allocation14_spill] sm:$0xff] }
 0x284   : > { %v1728_v61 = vsel %vm1723_vm5, %v1694_v25, %v6990_v40  ;;  %v1650_v6 = vsel %vm366_vm0, %v9328_v58, %v1420_v43  ;;  %v9329_v43 = vld [vmem:[#allocation17_spill] sm:$0xff] }
 0x285   : > { %v1613_v50 = vpop.permute.xlu1 %1612  ;;  %v1696_v42 = vsel %vm1690_vm4, %v1650_v6, %v1468_v7  ;;  %v1653_v7 = vsel %vm366_vm0, %v9329_v43, %v1422_v1 }
 0x286   : > { %v1856_v32 = vsel %vm1723_vm5, %v1823_v30, %v1613_v50  ;;  %v1424_v28 = vpop.permute.xlu0 %1423  ;;  %v1731_v40 = vsel %vm1723_vm5, %v1696_v42, %v7000_v35  ;;  %v1698_v30 = vsel %vm1690_vm4, %v1653_v7, %v1470_v46 }
 0x287   : > { %2139 = vmatprep.mubr.bf16.mxu0 %v1856_v32  ;;  %v1734_v35 = vsel %vm1723_vm5, %v1698_v30, %v7010_v21  ;;  %v1656_v1 = vsel %vm366_vm0, %v6357_v44, %v1424_v28  ;;  %v9330_v44 = vld [vmem:[#allocation18_spill] sm:$0xff] }
 0x288   : > { %2140 = vmatmul.mubr.bf16.gmra.mxu0 %v1728_v61 }
 0x289   : > { %v1549_v38 = vpop.permute.xlu1 %1548 }
 0x28a   : > { %v1780_v48 = vsel %vm366_vm0, %v6539_v12, %v1549_v38  ;;  %v1472_v2 = vpop.permute.xlu0 %1471 }
 0x28b   : > { %v1825_v16 = vsel %vm1690_vm4, %v1780_v48, %v7008_v57  ;;  %v1700_v46 = vsel %vm1690_vm4, %v1656_v1, %v1472_v2 }
 0x28c   : > { %v1737_v21 = vsel %vm1723_vm5, %v1700_v46, %v7020_v51 }
 0x28d   : > { %v1615_v23 = vpop.permute.xlu1 %1614 }
 0x28e   : > { %v1859_v32 = vsel %vm1723_vm5, %v1825_v16, %v1615_v23  ;;  %v1426_v20 = vpop.permute.xlu0 %1425 }
 0x28f   : > { %2147 = vmatprep.mubr.bf16.mxu0 %v1859_v32  ;;  %v1659_v28 = vsel %vm366_vm0, %v9330_v44, %v1426_v20 }
 0x290   : > { %2148 = vmatmul.mubr.bf16.gmra.mxu0 %v1731_v40 }
 0x291   : > { %v1551_v25 = vpop.permute.xlu1 %1550 }
 0x292   : > { %v1783_v12 = vsel %vm366_vm0, %v6644_v0, %v1551_v25  ;;  %v1474_v50 = vpop.permute.xlu0 %1473 }
 0x293   : > { %v1827_v23 = vsel %vm1690_vm4, %v1783_v12, %v7018_v55  ;;  %v1702_v2 = vsel %vm1690_vm4, %v1659_v28, %v1474_v50 }
 0x294   : > { %v1740_v51 = vsel %vm1723_vm5, %v1702_v2, %v7030_v14 }
 0x295   : > { %v1617_v61 = vpop.permute.xlu1 %1616 }
 0x296   : > { %v1862_v57 = vsel %vm1723_vm5, %v1827_v23, %v1617_v61  ;;  %v1428_v38 = vpop.permute.xlu0 %1427 }
 0x297   : > { %2155 = vmatprep.mubr.bf16.mxu0 %v1862_v57  ;;  %v1662_v20 = vsel %vm366_vm0, %v6424_v19, %v1428_v38  ;;  %v9331_v19 = vld [vmem:[#allocation19_spill] sm:$0xff] }
 0x298   : > { %2156 = vmatmul.mubr.bf16.gmra.mxu0 %v1734_v35 }
 0x299   : > { %v1553_v48 = vpop.permute.xlu1 %1552 }
 0x29a   : > { %v1786_v0 = vsel %vm366_vm0, %v6648_v39, %v1553_v48  ;;  %v1476_v58 = vpop.permute.xlu0 %1475 }
 0x29b   : > { %v1829_v55 = vsel %vm1690_vm4, %v1786_v0, %v7028_v60  ;;  %v1704_v50 = vsel %vm1690_vm4, %v1662_v20, %v1476_v58 }
 0x29c   : > { %v1743_v14 = vsel %vm1723_vm5, %v1704_v50, %v7040_v8 }
 0x29d   : > { %v1619_v6 = vpop.permute.xlu1 %1618 }
 0x29e   : > { %v1865_v42 = vsel %vm1723_vm5, %v1829_v55, %v1619_v6  ;;  %v1430_v16 = vpop.permute.xlu0 %1429 }
 0x29f   : > { %2163 = vmatprep.mubr.bf16.mxu0 %v1865_v42  ;;  %v1665_v38 = vsel %vm366_vm0, %v9331_v19, %v1430_v16  ;;  %v9332_v42 = vld [vmem:[#allocation20_spill] sm:$0xff] }
 0x2a0   : > { %2164 = vmatmul.mubr.bf16.gmra.mxu0 %v1737_v21 }
 0x2a1   : > { %v1555_v32 = vpop.permute.xlu1 %1554 }
 0x2a2   : > { %v1789_v39 = vsel %vm366_vm0, %v6663_v24, %v1555_v32  ;;  %v1478_v40 = vpop.permute.xlu0 %1477 }
 0x2a3   : > { %v1831_v60 = vsel %vm1690_vm4, %v1789_v39, %v7038_v27  ;;  %v1706_v0 = vsel %vm1690_vm4, %v1665_v38, %v1478_v40 }
 0x2a4   : > { %v1746_v8 = vsel %vm1723_vm5, %v1706_v0, %v7050_v56 }
 0x2a5   : > { %v1621_v25 = vpop.permute.xlu1 %1620 }
 0x2a6   : > { %v1868_v12 = vsel %vm1723_vm5, %v1831_v60, %v1621_v25  ;;  %v1432_v43 = vpop.permute.xlu0 %1431 }
 0x2a7   : > { %2171 = vmatprep.mubr.bf16.mxu0 %v1868_v12  ;;  %v1668_v16 = vsel %vm366_vm0, %v9332_v42, %v1432_v43 }
 0x2a8   : > { %2172 = vmatmul.mubr.bf16.gmra.mxu0 %v1740_v51 }
 0x2a9   : > { %v1557_v7 = vpop.permute.xlu1 %1556 }
 0x2aa   : > { %v1792_v24 = vsel %vm366_vm0, %v6695_v9, %v1557_v7  ;;  %v1480_v30 = vpop.permute.xlu0 %1479 }
 0x2ab   : > { %v1833_v27 = vsel %vm1690_vm4, %v1792_v24, %v7048_v52  ;;  %v1708_v21 = vsel %vm1690_vm4, %v1668_v16, %v1480_v30 }
 0x2ac   : > { %v1749_v56 = vsel %vm1723_vm5, %v1708_v21, %v7060_v53 }
 0x2ad   : > { %v1623_v61 = vpop.permute.xlu1 %1622 }
 0x2ae   : > { %v1871_v23 = vsel %vm1723_vm5, %v1833_v27, %v1623_v61  ;;  %v1434_v57 = vpop.permute.xlu0 %1433  ;;  %v9333_v27 = vld [vmem:[#allocation7_spill] sm:$0xff] }
 0x2af   : > { %2179 = vmatprep.mubr.bf16.mxu0 %v1871_v23  ;;  %v1671_v2 = vsel %vm366_vm0, %v6601_v36, %v1434_v57 }
 0x2b0   : > { %2180 = vmatmul.mubr.bf16.gmra.mxu0 %v1743_v14 }
 0x2b1   : > { %v1559_v35 = vpop.permute.xlu1 %1558 }
 0x2b2   : > { %v1795_v9 = vsel %vm366_vm0, %v6804_v37, %v1559_v35  ;;  %v1482_v48 = vpop.permute.xlu0 %1481 }
 0x2b3   : > { %v1835_v52 = vsel %vm1690_vm4, %v1795_v9, %v7058_v3  ;;  %v1710_v25 = vsel %vm1690_vm4, %v1671_v2, %v1482_v48  ;;  %v9334_v48 = vld [vmem:[#allocation8_spill] sm:$0xff] }
 0x2b4   : > { %v1752_v53 = vsel %vm1723_vm5, %v1710_v25, %v7070_v17  ;;  %v9337_v2 = vld [vmem:[#allocation12_spill] sm:$0xff] }
 0x2b5   : > { %v1625_v58 = vpop.permute.xlu1 %1624 }
 0x2b6   : > { %v1874_v1 = vsel %vm1723_vm5, %v1835_v52, %v1625_v58  ;;  %v1436_v46 = vpop.permute.xlu0 %1435 }
 0x2b7   : > { %2187 = vmatprep.mubr.bf16.mxu0 %v1874_v1  ;;  %v1674_v36 = vsel %vm366_vm0, %v6685_v49, %v1436_v46 }
 0x2b8   : > { %2188 = vmatmul.mubr.bf16.gmra.mxu0 %v1746_v8  ;;  %v9335_v8 = vld [vmem:[#allocation9_spill] sm:$0xff] }
 0x2b9   : > { %v1561_v6 = vpop.permute.xlu1 %1560 }
 0x2ba   : > { %v1798_v37 = vsel %vm366_vm0, %v6875_v45, %v1561_v6  ;;  %v1484_v55 = vpop.permute.xlu0 %1483 }
 0x2bb   : > { %v1837_v3 = vsel %vm1690_vm4, %v1798_v37, %v7068_v34  ;;  %v1712_v24 = vsel %vm1690_vm4, %v1674_v36, %v1484_v55 }
 0x2bc   : > { %v1755_v17 = vsel %vm1723_vm5, %v1712_v24, %v7080_v22 }
 0x2bd   : > { %v1627_v32 = vpop.permute.xlu1 %1626 }
 0x2be   : > { %v1877_v39 = vsel %vm1723_vm5, %v1837_v3, %v1627_v32  ;;  %v1438_v40 = vpop.permute.xlu0 %1437  ;;  %v9336_v32 = vld [vmem:[#allocation10_spill] sm:$0xff] }
 0x2bf   : > { %2195 = vmatprep.mubr.bf16.mxu0 %v1877_v39  ;;  %v1677_v49 = vsel %vm366_vm0, %v9333_v27, %v1438_v40 }
 0x2c0   : > { %2196 = vmatmul.mubr.bf16.gmra.mxu0 %v1749_v56 }
 0x2c1   : > { %v1563_v44 = vpop.permute.xlu1 %1562 }
 0x2c2   : > { %v1801_v45 = vsel %vm366_vm0, %v6885_v62, %v1563_v44  ;;  %v1486_v28 = vpop.permute.xlu0 %1485 }
 0x2c3   : > { %v1839_v34 = vsel %vm1690_vm4, %v1801_v45, %v7078_v41  ;;  %v1714_v23 = vsel %vm1690_vm4, %v1677_v49, %v1486_v28 }
 0x2c4   : > { %v1758_v22 = vsel %vm1723_vm5, %v1714_v23, %v7088_v31 }
 0x2c5   : > { %v1629_v60 = vpop.permute.xlu1 %1628 }
 0x2c6   : > { %v1880_v12 = vsel %vm1723_vm5, %v1839_v34, %v1629_v60  ;;  %v1440_v43 = vpop.permute.xlu0 %1439  ;;  %v9339_v34 = vld [vmem:[#allocation11_spill] sm:$0xff] }
 0x2c7   : > { %2203 = vmatprep.mubr.bf16.mxu0 %v1880_v12  ;;  %v1680_v19 = vsel %vm366_vm0, %v9334_v48, %v1440_v43 }
 0x2c8   : > { %2204 = vmatmul.mubr.bf16.gmra.mxu0 %v1752_v53 }
 0x2c9   : > { %v1565_v51 = vpop.permute.xlu1 %1564 }
 0x2ca   : > { %v1804_v62 = vsel %vm366_vm0, %v6905_v29, %v1565_v51  ;;  %v1488_v7 = vpop.permute.xlu0 %1487 }
 0x2cb   : > { %v1841_v41 = vsel %vm1690_vm4, %v1804_v62, %v7086_v63  ;;  %v1716_v38 = vsel %vm1690_vm4, %v1680_v19, %v1488_v7  ;;  %v4999_v62 = vpop.f32.mrf.mxu1 }
 0x2cc   : > { %v1761_v31 = vsel %vm1723_vm5, %v1716_v38, %v7096_v10 }
 0x2cd   : > { %v1631_v30 = vpop.permute.xlu1 %1630  ;;  %v2294_v36 = vpop.f32.mrf.mxu1 }
 0x2ce   : > { %v1883_v20 = vsel %vm1723_vm5, %v1841_v41, %v1631_v30  ;;  %v1442_v50 = vpop.permute.xlu0 %1441 }
 0x2cf   : > { %2211 = vmatprep.mubr.bf16.mxu0 %v1883_v20  ;;  %v1683_v6 = vsel %vm366_vm0, %v9335_v8, %v1442_v50  ;;  %v5000_v30 = vpop.f32.mrf.mxu1 }
 0x2d0   : > { %2212 = vmatmul.mubr.bf16.gmra.mxu0 %v1755_v17 }
 0x2d1   : > { %v1567_v61 = vpop.permute.xlu1 %1566  ;;  %v2297_v17 = vpop.f32.mrf.mxu1 }
 0x2d2   : > { %v1807_v29 = vsel %vm366_vm0, %v6912_v18, %v1567_v61  ;;  %v1490_v14 = vpop.permute.xlu0 %1489 }
 0x2d3   : > { %v1843_v63 = vsel %vm1690_vm4, %v1807_v29, %v7094_v5  ;;  %v1718_v37 = vsel %vm1690_vm4, %v1683_v6, %v1490_v14  ;;  %v7298_v29 = vpop.f32.mrf.mxu1 }
 0x2d4   : > { %v1764_v10 = vsel %vm1723_vm5, %v1718_v37, %v7104_v4 }
 0x2d5   : > { %v1633_v57 = vpop.permute.xlu1 %1632  ;;  %v2310_v23 = vpop.f32.mrf.mxu1 }
 0x2d6   : > { %v1886_v35 = vsel %vm1723_vm5, %v1843_v63, %v1633_v57  ;;  %v1444_v0 = vpop.permute.xlu0 %1443 }
 0x2d7   : > { %2219 = vmatprep.mubr.bf16.mxu0 %v1886_v35  ;;  %v1686_v3 = vsel %vm366_vm0, %v9336_v32, %v1444_v0  ;;  %v7300_v14 = vpop.f32.mrf.mxu1 }
 0x2d8   : > { %2220 = vmatmul.mubr.bf16.gmra.mxu0 %v1758_v22 }
 0x2d9   : > { %v1569_v9 = vpop.permute.xlu1 %1568 }
 0x2da   : > { %v1810_v18 = vsel %vm366_vm0, %v6921_v15, %v1569_v9  ;;  %v1492_v46 = vpop.permute.xlu0 %1491  ;;  %v7302_v9 = vpop.f32.mrf.mxu1 }
 0x2db   : > { %v1845_v5 = vsel %vm1690_vm4, %v1810_v18, %v7102_v26  ;;  %v1720_v39 = vsel %vm1690_vm4, %v1686_v3, %v1492_v46 }
 0x2dc   : > { %v1767_v4 = vsel %vm1723_vm5, %v1720_v39, %v7112_v11  ;;  %v7304_v19 = vpop.f32.mrf.mxu1  ;;  %v7337_v39 = vld [vmem:[%s9187_s4] ss:$0 sm:$0xff] }
 0x2dd   : > { %v1635_v58 = vpop.permute.xlu1 %1634 }
 0x2de   : > { %v1889_v52 = vsel %vm1723_vm5, %v1845_v5, %v1635_v58  ;;  %v1446_v16 = vpop.permute.xlu0 %1445  ;;  %v7306_v58 = vpop.f32.mrf.mxu1 }
 0x2df   : > { %2227 = vmatprep.mubr.bf16.mxu0 %v1889_v52  ;;  %v1689_v25 = vsel %vm366_vm0, %v9337_v2, %v1446_v16 }
 0x2e0   : > { %2228 = vmatmul.mubr.bf16.gmra.mxu0 %v1761_v31  ;;  %v7308_v31 = vpop.f32.mrf.mxu1 }
 0x2e1   : > { %v1571_v1 = vpop.permute.xlu1 %1570 }
 0x2e2   : > { %v1813_v15 = vsel %vm366_vm0, %v6930_v59, %v1571_v1  ;;  %v1494_v56 = vpop.permute.xlu0 %1493 }
 0x2e3   : > { %v1847_v26 = vsel %vm1690_vm4, %v1813_v15, %v7110_v33  ;;  %v1722_v12 = vsel %vm1690_vm4, %v1689_v25, %v1494_v56  ;;  %v7310_v15 = vpop.f32.mrf.mxu1 }
 0x2e5   : > { %v1637_v55 = vpop.permute.xlu1 %1636  ;;  %v7316_v37 = vpop.f32.mrf.mxu1 }
 0x2e6   : > { %v1892_v42 = vsel %vm1723_vm5, %v1847_v26, %v1637_v55  ;;  %v1542_v28 = vpop.permute.xlu0 %1541 }
 0x2e7   : > { %2235 = vmatprep.mubr.bf16.mxu0 %v1892_v42  ;;  %v1770_v11 = vsel %vm1723_vm5, %v1722_v12, %v1542_v28  ;;  %v7322_v42 = vpop.f32.mrf.mxu1 }
 0x2e8   : > { %2236 = vmatmul.mubr.bf16.gmra.mxu0 %v1764_v10 }
 0x2e9   : > { %v1573_v21 = vpop.permute.xlu1 %1572 }
 0x2ea   : > { %v1816_v59 = vsel %vm366_vm0, %v6934_v13, %v1573_v21  ;;  %v7328_v21 = vpop.f32.mrf.mxu1 }
 0x2eb   : > { %v1849_v33 = vsel %vm1690_vm4, %v1816_v59, %v7118_v47 }
 0x2ed   : > { %v1639_v40 = vpop.permute.xlu1 %1638 }
 0x2ee   : > { %v1895_v44 = vsel %vm1723_vm5, %v1849_v33, %v1639_v40  ;;  %v7339_v33 = vpop.f32.mrf.mxu1 }
 0x2ef   : > { %2243 = vmatprep.mubr.bf16.mxu0 %v1895_v44 }
 0x2f0   : > { %2244 = vmatmul.mubr.bf16.gmra.mxu0 %v1767_v4  ;;  %v7348_v25 = vpop.f32.mrf.mxu1 }
 0x2f1   : > { %v1575_v45 = vpop.permute.xlu1 %1574 }
 0x2f2   : > { %v1819_v13 = vsel %vm366_vm0, %v6940_v54, %v1575_v45 }
 0x2f3   : > { %v1851_v47 = vsel %vm1690_vm4, %v1819_v13, %v9339_v34 }
 0x2f5   : > { %v7290_v60 = vpop.permute.xlu1 %1640 }
 0x2f6   : > { %9338 = vst [vmem:[#allocation16_spill] sm:$0xff] %v7290_v60  ;;  %v1898_v43 = vsel %vm1723_vm5, %v1851_v47, %v7290_v60 }
 0x2f7   : > { %2251 = vmatprep.mubr.bf16.mxu0 %v1898_v43 }
 0x2f8   : > { %2252 = vmatmul.mubr.bf16.gmra.mxu0 %v1770_v11 }
 0x33c   : > { %v4749_v53 = vpop.f32.mrf.mxu0 }
 0x33e   : > { %v4750_v54 = vpop.f32.mrf.mxu0 }
 0x33f   : > { %v4751_v51 = vadd.f32 %v4750_v54, %v4749_v53 }
 0x340   : > { %v4752_v7 = vpop.f32.mrf.mxu0 }
 0x341   : > { %v2134_v45 = vadd.f32 %v4751_v51, %v7337_v39 }
 0x342   : > { %v4753_v24 = vpop.f32.mrf.mxu0 }
 0x343   : > { %v4754_v32 = vadd.f32 %v4753_v24, %v4752_v7  ;;  %v7355_v53 = vadd.f32 %v2294_v36, %v2134_v45 }
 0x345   : > { %v2137_v4 = vadd.f32 %v4754_v32, %v7337_v39 }
 0x347   : > { %v7353_v43 = vadd.f32 %v2297_v17, %v2137_v4 }
 0x348   : > { %v4755_v41 = vpop.f32.mrf.mxu0 }
 0x349   : > { %v2496_v17 = vmul.f32 %v7353_v43, %v7353_v43 }
 0x34a   : > { %v4756_v20 = vpop.f32.mrf.mxu0 }
 0x34b   : > { %v4757_v40 = vadd.f32 %v4756_v20, %v4755_v41  ;;  %v7362_v41 = vpop.f32.mrf.mxu1  ;;  %v2528_v32 = vsel %vm366_vm0, %v2496_v17, 0.0 }
 0x34c   : > { %v4758_v50 = vpop.f32.mrf.mxu0 }
 0x34d   : > { %v2142_v28 = vadd.f32 %v4757_v40, %v7337_v39 }
 0x34e   : > { %v4759_v61 = vpop.f32.mrf.mxu0 }
 0x34f   : > { %v4760_v56 = vadd.f32 %v4759_v61, %v4758_v50  ;;  %v7359_v7 = vadd.f32 %v4999_v62, %v2142_v28 }
 0x350   : > { %v4761_v27 = vpop.f32.mrf.mxu0 }
 0x351   : > { %v2145_v47 = vadd.f32 %v4760_v56, %v7337_v39 }
 0x352   : > { %v4762_v49 = vpop.f32.mrf.mxu0 }
 0x353   : > { %v4763_v2 = vadd.f32 %v4762_v49, %v4761_v27  ;;  %v7364_v20 = vadd.f32 %v5000_v30, %v2145_v47  ;;  %v2495_v27 = vmul.f32 %v7355_v53, %v7355_v53  ;;  %v2497_v30 = vmul.f32 %v7359_v7, %v7359_v7 }
 0x354   : > { %v4764_v57 = vpop.f32.mrf.mxu0 }
 0x355   : > { %v2150_v51 = vadd.f32 %v4763_v2, %v7337_v39  ;;  %v2527_v4 = vsel %vm366_vm0, %v2495_v27, 0.0 }
 0x356   : > { %v4765_v63 = vpop.f32.mrf.mxu0 }
 0x357   : > { %v4766_v11 = vadd.f32 %v4765_v63, %v4764_v57  ;;  %v2424_v57 = vsel %vm366_vm0, %v7353_v43, 0.0  ;;  %v7379_v63 = vadd.f32 %v2310_v23, %v2150_v51  ;;  %v2426_v23 = vsel %vm366_vm0, %v7359_v7, 0.0 }
 0x358   : > { %v4767_v35 = vpop.f32.mrf.mxu0  ;;  %v2428_v51 = vsel %vm366_vm0, %v7364_v20, 0.0 }
 0x359   : > { %v2153_v36 = vadd.f32 %v4766_v11, %v7337_v39  ;;  %v2530_v11 = vsel %vm366_vm0, %v2497_v30, 0.0 }
 0x35a   : > { %v4768_v22 = vpop.f32.mrf.mxu0 }
 0x35b   : > { %v4769_v24 = vadd.f32 %v4768_v22, %v4767_v35  ;;  %v7382_v22 = vpop.f32.mrf.mxu1  ;;  %v7395_v40 = vadd.f32 %v7302_v9, %v2153_v36  ;;  %v2430_v36 = vsel %vm366_vm0, %v7379_v63, 0.0 }
 0x35c   : > { %v4770_v18 = vpop.f32.mrf.mxu0 }
 0x35d   : > { %v2158_v35 = vadd.f32 %v4769_v24, %v7337_v39  ;;  %v2499_v24 = vmul.f32 %v7379_v63, %v7379_v63  ;;  %v2500_v27 = vmul.f32 %v7395_v40, %v7395_v40 }
 0x35e   : > { %v4771_v48 = vpop.f32.mrf.mxu0 }
 0x35f   : > { %v4772_v50 = vadd.f32 %v4771_v48, %v4770_v18  ;;  %v2423_v18 = vsel %vm366_vm0, %v7355_v53, 0.0  ;;  %v2498_v48 = vmul.f32 %v7364_v20, %v7364_v20  ;;  %v7407_v9 = vadd.f32 %v7298_v29, %v2158_v35 }
 0x360   : > { %v4773_v38 = vpop.f32.mrf.mxu0  ;;  %v2425_v45 = vadd.f32 %v2424_v57, %v2423_v18 }
 0x361   : > { %v2532_v17 = vsel %vm366_vm0, %v2498_v48, 0.0  ;;  %v2534_v48 = vsel %vm366_vm0, %v2499_v24, 0.0 }
 0x362   : > { %v4774_v0 = vpop.f32.mrf.mxu0 }
 0x363   : > { %v4775_v62 = vadd.f32 %v4774_v0, %v4773_v38  ;;  %v2161_v38 = vadd.f32 %v4772_v50, %v7337_v39  ;;  %v2427_v50 = vadd.f32 %v2426_v23, %v2425_v45 }
 0x364   : > { %v4776_v5 = vpop.f32.mrf.mxu0 }
 0x365   : > { %v2166_v28 = vadd.f32 %v4775_v62, %v7337_v39  ;;  %v2429_v30 = vadd.f32 %v2428_v51, %v2427_v50 }
 0x366   : > { %v4777_v52 = vpop.f32.mrf.mxu0 }
 0x367   : > { %v4778_v56 = vadd.f32 %v4777_v52, %v4776_v5  ;;  %v7409_v5 = vpop.f32.mrf.mxu1  ;;  %v2529_v52 = vadd.f32 %v2528_v32, %v2527_v4  ;;  %v7425_v35 = vadd.f32 %v7306_v58, %v2166_v28  ;;  %v2501_v32 = vmul.f32 %v7407_v9, %v7407_v9 }
 0x368   : > { %v4779_v1 = vpop.f32.mrf.mxu0  ;;  %v2431_v58 = vadd.f32 %v2430_v36, %v2429_v30  ;;  %v2536_v28 = vsel %vm366_vm0, %v2500_v27, 0.0 }
 0x369   : > { %v2169_v29 = vadd.f32 %v4778_v56, %v7337_v39  ;;  %v2531_v57 = vadd.f32 %v2530_v11, %v2529_v52  ;;  %v2503_v24 = vmul.f32 %v7425_v35, %v7425_v35  ;;  %v2438_v30 = vsel %vm366_vm0, %v7425_v35, 0.0 }
 0x36a   : > { %v4780_v46 = vpop.f32.mrf.mxu0 }
 0x36b   : > { %v4781_v2 = vadd.f32 %v4780_v46, %v4779_v1  ;;  %v7413_v1 = vadd.f32 %v7300_v14, %v2161_v38  ;;  %v2432_v38 = vsel %vm366_vm0, %v7395_v40, 0.0  ;;  %v2533_v23 = vadd.f32 %v2532_v17, %v2531_v57 }
 0x36c   : > { %v7312_v8 = vpop.f32.mrf.mxu0  ;;  %v7449_v11 = vadd.f32 %v7310_v15, %v2169_v29  ;;  %v2433_v51 = vadd.f32 %v2432_v38, %v2431_v58 }
 0x36d   : > { %v2174_v14 = vadd.f32 %v4781_v2, %v7337_v39  ;;  %v2502_v56 = vmul.f32 %v7413_v1, %v7413_v1  ;;  %v2434_v2 = vsel %vm366_vm0, %v7407_v9, 0.0  ;;  %v2436_v50 = vsel %vm366_vm0, %v7413_v1, 0.0 }
 0x36e   : > { %v7314_v6 = vpop.f32.mrf.mxu0  ;;  %v2435_v29 = vadd.f32 %v2434_v2, %v2433_v51  ;;  %v2440_v58 = vsel %vm366_vm0, %v7449_v11, 0.0 }
 0x36f   : > { %v4784_v62 = vadd.f32 %v7314_v6, %v7312_v8  ;;  %v7437_v6 = vpop.f32.mrf.mxu1  ;;  %v7455_v52 = vadd.f32 %v7304_v19, %v2174_v14  ;;  %v2504_v14 = vmul.f32 %v7449_v11, %v7449_v11 }
 0x370   : > { %v7318_v55 = vpop.f32.mrf.mxu0  ;;  %v2437_v38 = vadd.f32 %v2436_v50, %v2435_v29 }
 0x371   : > { %v7463_v36 = vpop.f32.mrf.mxu1  ;;  %v2544_v51 = vsel %vm366_vm0, %v2504_v14, 0.0 }
 0x372   : > { %v7320_v26 = vpop.f32.mrf.mxu0 }
 0x373   : > { %v4787_v8 = vadd.f32 %v7320_v26, %v7318_v55  ;;  %v2177_v55 = vadd.f32 %v4784_v62, %v7337_v39  ;;  %v2535_v26 = vadd.f32 %v2534_v48, %v2533_v23  ;;  %v2540_v62 = vsel %vm366_vm0, %v2502_v56, 0.0 }
 0x374   : > { %v7324_v10 = vpop.f32.mrf.mxu0 }
 0x375   : > { %v2182_v17 = vadd.f32 %v4787_v8, %v7337_v39  ;;  %v2537_v27 = vadd.f32 %v2536_v28, %v2535_v26  ;;  %v7472_v48 = vadd.f32 %v7308_v31, %v2177_v55  ;;  %v2505_v8 = vmul.f32 %v7455_v52, %v7455_v52 }
 0x376   : > { %v7326_v16 = vpop.f32.mrf.mxu0  ;;  %v2439_v28 = vadd.f32 %v2438_v30, %v2437_v38 }
 0x377   : > { %v4790_v4 = vadd.f32 %v7326_v16, %v7324_v10  ;;  %v2538_v16 = vsel %vm366_vm0, %v2501_v32, 0.0  ;;  %v2542_v32 = vsel %vm366_vm0, %v2503_v24, 0.0  ;;  %v7482_v56 = vadd.f32 %v7322_v42, %v2182_v17 }
 0x378   : > { %v7330_v59 = vpop.f32.mrf.mxu0  ;;  %v2442_v42 = vsel %vm366_vm0, %v7455_v52, 0.0  ;;  %v2506_v24 = vmul.f32 %v7472_v48, %v7472_v48  ;;  %v2546_v50 = vsel %vm366_vm0, %v2505_v8, 0.0 }
 0x379   : > { %v2185_v19 = vadd.f32 %v4790_v4, %v7337_v39 }
 0x37a   : > { %v7332_v3 = vpop.f32.mrf.mxu0  ;;  %v2548_v14 = vsel %vm366_vm0, %v2506_v24, 0.0 }
 0x37b   : > { %v4793_v15 = vadd.f32 %v7332_v3, %v7330_v59  ;;  %v2539_v3 = vadd.f32 %v2538_v16, %v2537_v27  ;;  %v7490_v2 = vadd.f32 %v7339_v33, %v2185_v19  ;;  %v2441_v16 = vadd.f32 %v2440_v58, %v2439_v28 }
 0x37c   : > { %v7341_v44 = vpop.f32.mrf.mxu0 }
 0x37d   : > { %v2190_v31 = vadd.f32 %v4793_v15, %v7337_v39  ;;  %v2443_v19 = vadd.f32 %v2442_v42, %v2441_v16  ;;  %v2508_v30 = vmul.f32 %v7490_v2, %v7490_v2 }
 0x37e   : > { %v7345_v13 = vpop.f32.mrf.mxu0 }
 0x37f   : > { %v4796_v59 = vadd.f32 %v7345_v13, %v7341_v44  ;;  %v7487_v44 = vpop.f32.mrf.mxu1  ;;  %v2541_v13 = vadd.f32 %v2540_v62, %v2539_v3  ;;  %v7508_v15 = vadd.f32 %v7316_v37, %v2190_v31 }
 0x380   : > { %v7351_v12 = vpop.f32.mrf.mxu0 }
 0x381   : > { %v7511_v29 = vpop.f32.mrf.mxu1  ;;  %v2509_v28 = vmul.f32 %v7508_v15, %v7508_v15  ;;  %v2450_v42 = vsel %vm366_vm0, %v7508_v15, 0.0 }
 0x382   : > { %v7357_v54 = vpop.f32.mrf.mxu0 }
 0x383   : > { %v4799_v4 = vadd.f32 %v7357_v54, %v7351_v12  ;;  %v2193_v12 = vadd.f32 %v4796_v59, %v7337_v39  ;;  %v2543_v54 = vadd.f32 %v2542_v32, %v2541_v13  ;;  %v2446_v59 = vsel %vm366_vm0, %v7482_v56, 0.0 }
 0x384   : > { %v7366_v61 = vpop.f32.mrf.mxu0  ;;  %v2448_v13 = vsel %vm366_vm0, %v7490_v2, 0.0 }
 0x385   : > { %v2198_v27 = vadd.f32 %v4799_v4, %v7337_v39  ;;  %v2545_v62 = vadd.f32 %v2544_v51, %v2543_v54  ;;  %v7520_v37 = vadd.f32 %v7328_v21, %v2193_v12  ;;  %v2552_v51 = vsel %vm366_vm0, %v2508_v30, 0.0 }
 0x386   : > { %v7373_v49 = vpop.f32.mrf.mxu0 }
 0x387   : > { %v4802_v55 = vadd.f32 %v7373_v49, %v7366_v61  ;;  %v2444_v61 = vsel %vm366_vm0, %v7472_v48, 0.0  ;;  %v2507_v49 = vmul.f32 %v7482_v56, %v7482_v56  ;;  %v2547_v38 = vadd.f32 %v2546_v50, %v2545_v62 }
 0x388   : > { %v7389_v0 = vpop.f32.mrf.mxu0  ;;  %v2445_v32 = vadd.f32 %v2444_v61, %v2443_v19  ;;  %v7532_v21 = vadd.f32 %v7362_v41, %v2198_v27  ;;  %v2510_v24 = vmul.f32 %v7520_v37, %v7520_v37 }
 0x389   : > { %v2550_v4 = vsel %vm366_vm0, %v2507_v49, 0.0  ;;  %v2452_v49 = vsel %vm366_vm0, %v7520_v37, 0.0 }
 0x38a   : > { %v7399_v47 = vpop.f32.mrf.mxu0  ;;  %v2511_v27 = vmul.f32 %v7532_v21, %v7532_v21 }
 0x38b   : > { %v4805_v33 = vadd.f32 %v7399_v47, %v7389_v0  ;;  %v2201_v0 = vadd.f32 %v4802_v55, %v7337_v39  ;;  %v7534_v55 = vpop.f32.mrf.mxu1 }
 0x38c   : > { %v7415_v46 = vpop.f32.mrf.mxu0 }
 0x38d   : > { %v2206_v8 = vadd.f32 %v4805_v33, %v7337_v39  ;;  %v2390_v19 = vpop.f32.mrf.mxu1 }
 0x38e   : > { %v7428_v18 = vpop.f32.mrf.mxu0 }
 0x38f   : > { %v4808_v3 = vadd.f32 %v7428_v18, %v7415_v46  ;;  %v2549_v46 = vadd.f32 %v2548_v14, %v2547_v38  ;;  %v2447_v18 = vadd.f32 %v2446_v59, %v2445_v32  ;;  %v7546_v50 = vadd.f32 %v7348_v25, %v2206_v8 }
 0x390   : > { %v7443_v45 = vpop.f32.mrf.mxu0  ;;  %v2556_v14 = vsel %vm366_vm0, %v2510_v24, 0.0  ;;  %v2454_v59 = vsel %vm366_vm0, %v7532_v21, 0.0 }
 0x391   : > { %v2209_v12 = vadd.f32 %v4808_v3, %v7337_v39  ;;  %v2551_v54 = vadd.f32 %v2550_v4, %v2549_v46  ;;  %v2449_v16 = vadd.f32 %v2448_v13, %v2447_v18  ;;  %v5024_v13 = vpop.f32.mrf.mxu1 }
 0x392   : > { %v4810_v10 = vpop.f32.mrf.mxu0 }
 0x393   : > { %v4811_v58 = vadd.f32 %v4810_v10, %v7443_v45  ;;  %v7538_v45 = vadd.f32 %v7409_v5, %v2201_v0  ;;  %v2554_v5 = vsel %vm366_vm0, %v2509_v28, 0.0  ;;  %v2553_v30 = vadd.f32 %v2552_v51, %v2551_v54 }
 0x394   : > { %v4812_v57 = vpop.f32.mrf.mxu0  ;;  %v7560_v3 = vadd.f32 %v7382_v22, %v2209_v12 }
 0x395   : > { %v2214_v33 = vadd.f32 %v4811_v58, %v7337_v39  ;;  %v2555_v32 = vadd.f32 %v2554_v5, %v2553_v30  ;;  %v2558_v58 = vsel %vm366_vm0, %v2511_v27, 0.0 }
 0x396   : > { %v4813_v23 = vpop.f32.mrf.mxu0  ;;  %v2514_v24 = vmul.f32 %v7560_v3, %v7560_v3  ;;  %v2460_v5 = vsel %vm366_vm0, %v7560_v3, 0.0 }
 0x397   : > { %v4814_v41 = vadd.f32 %v4813_v23, %v4812_v57  ;;  %v2451_v57 = vadd.f32 %v2450_v42, %v2449_v16  ;;  %v2512_v23 = vmul.f32 %v7538_v45, %v7538_v45  ;;  %v7566_v8 = vadd.f32 %v7463_v36, %v2214_v33 }
 0x398   : > { %v4815_v26 = vpop.f32.mrf.mxu0  ;;  %v2557_v28 = vadd.f32 %v2556_v14, %v2555_v32  ;;  %v2458_v36 = vsel %vm366_vm0, %v7546_v50, 0.0 }
 0x399   : > { %v2217_v38 = vadd.f32 %v4814_v41, %v7337_v39  ;;  %v2560_v18 = vsel %vm366_vm0, %v2512_v23, 0.0  ;;  %v2515_v33 = vmul.f32 %v7566_v8, %v7566_v8  ;;  %v2462_v14 = vsel %vm366_vm0, %v7566_v8, 0.0 }
 0x39a   : > { %v4816_v17 = vpop.f32.mrf.mxu0  ;;  %v2559_v54 = vadd.f32 %v2558_v58, %v2557_v28 }
 0x39b   : > { %v4817_v62 = vadd.f32 %v4816_v17, %v4815_v26  ;;  %v2453_v26 = vadd.f32 %v2452_v49, %v2451_v57  ;;  %v2513_v17 = vmul.f32 %v7546_v50, %v7546_v50  ;;  %v7579_v12 = vadd.f32 %v7511_v29, %v2217_v38  ;;  %v2393_v29 = vpop.f32.mrf.mxu1 }
 0x39c   : > { %v4818_v47 = vpop.f32.mrf.mxu0  ;;  %v2561_v30 = vadd.f32 %v2560_v18, %v2559_v54 }
 0x39d   : > { %v2222_v4 = vadd.f32 %v4817_v62, %v7337_v39  ;;  %v2455_v46 = vadd.f32 %v2454_v59, %v2453_v26  ;;  %v2562_v16 = vsel %vm366_vm0, %v2513_v17, 0.0  ;;  %v2516_v59 = vmul.f32 %v7579_v12, %v7579_v12 }
 0x39e   : > { %v4819_v31 = vpop.f32.mrf.mxu0  ;;  %v2563_v38 = vadd.f32 %v2562_v16, %v2561_v30  ;;  %v2566_v26 = vsel %vm366_vm0, %v2515_v33, 0.0  ;;  %v2464_v58 = vsel %vm366_vm0, %v7579_v12, 0.0 }
 0x39f   : > { %v4820_v25 = vadd.f32 %v4819_v31, %v4818_v47  ;;  %v2456_v31 = vsel %vm366_vm0, %v7538_v45, 0.0  ;;  %v7587_v49 = vadd.f32 %v7437_v6, %v2222_v4 }
 0x3a0   : > { %v4821_v10 = vpop.f32.mrf.mxu0 }
 0x3a1   : > { %v2225_v51 = vadd.f32 %v4820_v25, %v7337_v39 }
 0x3a2   : > { %v4822_v61 = vpop.f32.mrf.mxu0 }
 0x3a3   : > { %v4823_v22 = vadd.f32 %v4822_v61, %v4821_v10  ;;  %v2457_v10 = vadd.f32 %v2456_v31, %v2455_v46  ;;  %v7591_v23 = vadd.f32 %v7487_v44, %v2225_v51  ;;  %v7601_v44 = vpop.f32.mrf.mxu1  ;;  %v2517_v31 = vmul.f32 %v7587_v49, %v7587_v49 }
 0x3a4   : > { %v4824_v0 = vpop.f32.mrf.mxu0 }
 0x3a5   : > { %v2230_v27 = vadd.f32 %v4823_v22, %v7337_v39  ;;  %v2459_v57 = vadd.f32 %v2458_v36, %v2457_v10  ;;  %v2518_v18 = vmul.f32 %v7591_v23, %v7591_v23  ;;  %v2466_v36 = vsel %vm366_vm0, %v7587_v49, 0.0  ;;  %v2406_v33 = vpop.f32.mrf.mxu1 }
 0x3a6   : > { %v4825_v47 = vpop.f32.mrf.mxu0 }
 0x3a7   : > { %v4826_v41 = vadd.f32 %v4825_v47, %v4824_v0  ;;  %v2564_v0 = vsel %vm366_vm0, %v2514_v24, 0.0  ;;  %v2461_v32 = vadd.f32 %v2460_v5, %v2459_v57  ;;  %v7607_v4 = vadd.f32 %v2390_v19, %v2230_v27 }
 0x3a8   : > { %v4827_v42 = vpop.f32.mrf.mxu0  ;;  %v2565_v28 = vadd.f32 %v2564_v0, %v2563_v38  ;;  %v2468_v5 = vsel %vm366_vm0, %v7591_v23, 0.0  ;;  %v2572_v57 = vsel %vm366_vm0, %v2518_v18, 0.0 }
 0x3a9   : > { %v2233_v6 = vadd.f32 %v4826_v41, %v7337_v39  ;;  %v2463_v46 = vadd.f32 %v2462_v14, %v2461_v32  ;;  %v2519_v27 = vmul.f32 %v7607_v4, %v7607_v4 }
 0x3aa   : > { %v4828_v61 = vpop.f32.mrf.mxu0  ;;  %v2567_v54 = vadd.f32 %v2566_v26, %v2565_v28 }
 0x3ab   : > { %v4829_v62 = vadd.f32 %v4828_v61, %v4827_v42  ;;  %v2568_v42 = vsel %vm366_vm0, %v2516_v59, 0.0  ;;  %v7614_v24 = vadd.f32 %v2393_v29, %v2233_v6  ;;  %v2465_v10 = vadd.f32 %v2464_v58, %v2463_v46 }
 0x3ac   : > { %v4830_v25 = vpop.f32.mrf.mxu0  ;;  %v2570_v61 = vsel %vm366_vm0, %v2517_v31, 0.0  ;;  %v2569_v29 = vadd.f32 %v2568_v42, %v2567_v54 }
 0x3ad   : > { %v2238_v17 = vadd.f32 %v4829_v62, %v7337_v39  ;;  %v2467_v30 = vadd.f32 %v2466_v36, %v2465_v10  ;;  %v2520_v0 = vmul.f32 %v7614_v24, %v7614_v24  ;;  %v2472_v58 = vsel %vm366_vm0, %v7614_v24, 0.0 }
 0x3ae   : > { %v4831_v47 = vpop.f32.mrf.mxu0  ;;  %v2571_v6 = vadd.f32 %v2570_v61, %v2569_v29 }
 0x3af   : > { %v4832_v22 = vadd.f32 %v4831_v47, %v4830_v25  ;;  %v7618_v19 = vadd.f32 %v7534_v55, %v2238_v17  ;;  %v2470_v55 = vsel %vm366_vm0, %v7607_v4, 0.0  ;;  %v2469_v38 = vadd.f32 %v2468_v5, %v2467_v30  ;;  %v5028_v17 = vpop.f32.mrf.mxu1 }
 0x3b0   : > { %v4833_v51 = vpop.f32.mrf.mxu0  ;;  %v2574_v47 = vsel %vm366_vm0, %v2519_v27, 0.0  ;;  %v2573_v28 = vadd.f32 %v2572_v57, %v2571_v6  ;;  %v2576_v18 = vsel %vm366_vm0, %v2520_v0, 0.0 }
 0x3b1   : > { %v2241_v41 = vadd.f32 %v4832_v22, %v7337_v39  ;;  %v2521_v32 = vmul.f32 %v7618_v19, %v7618_v19 }
 0x3b2   : > { %v4834_v16 = vpop.f32.mrf.mxu0 }
 0x3b3   : > { %v4835_v62 = vadd.f32 %v4834_v16, %v4833_v51  ;;  %v7630_v14 = vadd.f32 %v5024_v13, %v2241_v41  ;;  %v2471_v13 = vadd.f32 %v2470_v55, %v2469_v38  ;;  %v2474_v51 = vsel %vm366_vm0, %v7618_v19, 0.0  ;;  %v2409_v16 = vpop.f32.mrf.mxu1 }
 0x3b4   : > { %v4836_v25 = vpop.f32.mrf.mxu0  ;;  %v2575_v41 = vadd.f32 %v2574_v47, %v2573_v28  ;;  %v2578_v10 = vsel %vm366_vm0, %v2521_v32, 0.0 }
 0x3b5   : > { %v2246_v59 = vadd.f32 %v4835_v62, %v7337_v39  ;;  %v2522_v42 = vmul.f32 %v7630_v14, %v7630_v14  ;;  %v2473_v54 = vadd.f32 %v2472_v58, %v2471_v13  ;;  %v2476_v61 = vsel %vm366_vm0, %v7630_v14, 0.0 }
 0x3b6   : > { %v4837_v26 = vpop.f32.mrf.mxu0  ;;  %v2577_v29 = vadd.f32 %v2576_v18, %v2575_v41 }
 0x3b7   : > { %v7638_v31 = vadd.f32 %v2406_v33, %v2246_v59  ;;  %v4838_v22 = vadd.f32 %v4837_v26, %v4836_v25  ;;  %v2475_v30 = vadd.f32 %v2474_v51, %v2473_v54  ;;  %v2580_v59 = vsel %vm366_vm0, %v2522_v42, 0.0 }
 0x3b8   : > { %v4839_v46 = vpop.f32.mrf.mxu0  ;;  %v2579_v32 = vadd.f32 %v2578_v10, %v2577_v29 }
 0x3b9   : > { %v2249_v36 = vadd.f32 %v4838_v22, %v7337_v39  ;;  %v2523_v5 = vmul.f32 %v7638_v31, %v7638_v31  ;;  %v2478_v25 = vsel %vm366_vm0, %v7638_v31, 0.0  ;;  %v2477_v6 = vadd.f32 %v2476_v61, %v2475_v30 }
 0x3ba   : > { %v4840_v33 = vpop.f32.mrf.mxu0  ;;  %v2581_v13 = vadd.f32 %v2580_v59, %v2579_v32 }
 0x3bb   : > { %v7651_v27 = vadd.f32 %v2409_v16, %v2249_v36  ;;  %v4841_v62 = vadd.f32 %v4840_v33, %v4839_v46  ;;  %v2582_v26 = vsel %vm366_vm0, %v2523_v5, 0.0  ;;  %v2479_v28 = vadd.f32 %v2478_v25, %v2477_v6 }
 0x3bc   : > { %v4842_v57 = vpop.f32.mrf.mxu0  ;;  %v2583_v41 = vadd.f32 %v2582_v26, %v2581_v13  ;;  %v5146_v13 = vld [vmem:[%s9190_s7 + $0x88] sm:$0xff]  }
 0x3bd   : > { %v2524_v55 = vmul.f32 %v7651_v27, %v7651_v27  ;;  %v2254_v0 = vadd.f32 %v4841_v62, %v7337_v39  ;;  %v2480_v47 = vsel %vm366_vm0, %v7651_v27, 0.0  ;;  %5029 = vmatprep.subr.bf16.mxu0 %v5146_v13 }
 0x3be   : > { %v4843_v38 = vpop.f32.mrf.mxu0  ;;  %v2481_v36 = vadd.f32 %v2480_v47, %v2479_v28  ;;  %5030 = vmatpush3.bf16.msra.mxu0 %v5146_v13 }
 0x3bf   : > { %v7663_v58 = vadd.f32 %v7601_v44, %v2254_v0  ;;  %v4844_v22 = vadd.f32 %v4843_v38, %v4842_v57  ;;  %v2584_v42 = vsel %vm366_vm0, %v2524_v55, 0.0 }
 0x3c0   : > { %v2585_v16 = vadd.f32 %v2584_v42, %v2583_v41 }
 0x3c1   : > { %v2257_v46 = vadd.f32 %v4844_v22, %v7337_v39  ;;  %v2482_v18 = vsel %vm366_vm0, %v7663_v58, 0.0  ;;  %v2525_v51 = vmul.f32 %v7663_v58, %v7663_v58 }
 0x3c2   : > { %v2483_v10 = vadd.f32 %v2482_v18, %v2481_v36 }
 0x3c3   : > { %v7671_v54 = vadd.f32 %v5028_v17, %v2257_v46  ;;  %v2586_v44 = vsel %vm366_vm0, %v2525_v51, 0.0  ;;  %v5147_v46 = vld [vmem:[%s9190_s7 + $0x80] sm:$0xff]  }
 0x3c4   : > { %v2587_v5 = vadd.f32 %v2586_v44, %v2585_v16  ;;  %5031 = vmatprep.subr.bf16.mxu0 %v5147_v46 }
 0x3c5   : > { %v2484_v33 = vsel %vm366_vm0, %v7671_v54, 0.0  ;;  %v2526_v39 = vmul.f32 %v7671_v54, %v7671_v54  ;;  %5032 = vmatpush3.bf16.msra.mxu0 %v5147_v46 }
 0x3c6   : > { %v2485_v61 = vadd.f32 %v2484_v33, %v2483_v10 }
 0x3c7   : > { %v2588_v62 = vsel %vm366_vm0, %v2526_v39, 0.0 }
 0x3c8   : > { %2486 = vadd.xlane.f32.xlu1 %v2485_v61  ;;  %v2589_v29 = vadd.f32 %v2588_v62, %v2587_v5 }
 0x3ca   : > { %2590 = vadd.xlane.f32.xlu0 %v2589_v29 }
 0x451   : > { %v2487_v30 = vpop.xlane.xlu1 %2486 }
 0x452   : > { %v2488_v17 = vrot.slane %v2487_v30, 4 }
 0x453   : > { %v2591_v57 = vpop.xlane.xlu0 %2590 }
 0x454   : > { %v2489_v25 = vadd.f32 %v2488_v17, %v2487_v30  ;;  %v2592_v55 = vrot.slane %v2591_v57, 4 }
 0x456   : > { %v2490_v0 = vrot.slane %v2489_v25, 2  ;;  %v2593_v59 = vadd.f32 %v2592_v55, %v2591_v57 }
 0x458   : > { %v2594_v6 = vrot.slane %v2593_v59, 2  ;;  %v2491_v38 = vadd.f32 %v2490_v0, %v2489_v25 }
 0x45a   : > { %v2492_v32 = vrot.slane %v2491_v38, 1  ;;  %v2595_v26 = vadd.f32 %v2594_v6, %v2593_v59 }
 0x45c   : > { %v2493_v47 = vadd.f32 %v2492_v32, %v2491_v38  ;;  %v2596_v22 = vrot.slane %v2595_v26, 1  ;;  %v7780_v38 = vld [vmem:[%s9189_s6] ss:$0 sm:$0xff] }
 0x45e   : > { %5075 = vpush %v2493_v47  ;;  %v2597_v28 = vadd.f32 %v2596_v22, %v2595_v26 }
 0x460   : > { %5077 = vpush %v2597_v28 }
 0x48f   : > { %s5076_s26 = spop %5075 }
 0x490   : > { %s2601_s0 = smul.f32 0.00012207031, %s5076_s26 }
 0x491   : > { %s5078_s14 = spop %5077 }
 0x492   : > { %s2605_s16 = smul.f32 %s2601_s0, %s2601_s0  ;;  %v7686_v42 = vstv %s2601_s0 }
 0x493   : > { %s2604_s21 = smul.f32 0.00012207031, %s5078_s14  ;;  %v2613_v36 = vsub.f32 %v7355_v53, %v7686_v42  ;;  %v2614_v41 = vsub.f32 %v7353_v43, %v7686_v42  ;;  %v2615_v44 = vsub.f32 %v7359_v7, %v7686_v42  ;;  %v2616_v10 = vsub.f32 %v7364_v20, %v7686_v42  ;;  %s4732_s14 = sshll.u32 %s5600_s13, 12 }
 0x494   : > { %v2617_v16 = vsub.f32 %v7379_v63, %v7686_v42  ;;  %v2618_v33 = vsub.f32 %v7395_v40, %v7686_v42  ;;  %v2619_v39 = vsub.f32 %v7407_v9, %v7686_v42  ;;  %v2620_v43 = vsub.f32 %v7413_v1, %v7686_v42 }
 0x495   : > { %s2606_s29 = ssub.f32 %s2604_s21, %s2605_s16  ;;  %v2621_v53 = vsub.f32 %v7425_v35, %v7686_v42  ;;  %v2643_v7 = vsub.f32 %v7663_v58, %v7686_v42  ;;  %v2644_v20 = vsub.f32 %v7671_v54, %v7686_v42  ;;  %v2622_v63 = vsub.f32 %v7449_v11, %v7686_v42  ;;  %s9343_s21 = smov 64  }
 0x496   : > { %v2623_v40 = vsub.f32 %v7455_v52, %v7686_v42  ;;  %v2624_v9 = vsub.f32 %v7472_v48, %v7686_v42  ;;  %v2625_v1 = vsub.f32 %v7482_v56, %v7686_v42  ;;  %v2626_v35 = vsub.f32 %v7490_v2, %v7686_v42  ;;  %s9356_s16 = smov 96  }
 0x497   : > { %s2607_s1 = smax.f32 %s5524_s27, %s2606_s29  ;;  %v2627_v58 = vsub.f32 %v7508_v15, %v7686_v42  ;;  %v2628_v11 = vsub.f32 %v7520_v37, %v7686_v42  ;;  %v2629_v52 = vsub.f32 %v7532_v21, %v7686_v42  ;;  %v2630_v48 = vsub.f32 %v7538_v45, %v7686_v42  ;;  %s9132_s29 = scalar_lea.hbm %s9192_s9, %s4732_s14 }
 0x498   : > { %s2608_s2 = sadd.f32 1e-05, %s2607_s1  ;;  %v2631_v56 = vsub.f32 %v7546_v50, %v7686_v42  ;;  %v2632_v2 = vsub.f32 %v7560_v3, %v7686_v42  ;;  %v2633_v15 = vsub.f32 %v7566_v8, %v7686_v42  ;;  %v2634_v62 = vsub.f32 %v7579_v12, %v7686_v42  ;;  %v7752_v8 = vld [vmem:[%s9188_s5] ss:$0 sm:$0xff] }
 0x499   : > { %v2635_v37 = vsub.f32 %v7587_v49, %v7686_v42  ;;  %v2636_v21 = vsub.f32 %v7591_v23, %v7686_v42  ;;  %v2637_v45 = vsub.f32 %v7607_v4, %v7686_v42  ;;  %v2638_v50 = vsub.f32 %v7614_v24, %v7686_v42 }
 0x49a   : > { %v2609_v18 = vstv %s2608_s2  ;;  %v2639_v12 = vsub.f32 %v7618_v19, %v7686_v42  ;;  %v2640_v49 = vsub.f32 %v7630_v14, %v7686_v42  ;;  %v2641_v24 = vsub.f32 %v7638_v31, %v7686_v42 }
 0x49b   : > { %5294 = vrsqrt.f32 %v2609_v18 }
 0x4a8   : > { %v5295_v51 = vpop.eup %5294 }
 0x4a9   : > { %5079 = vpush %v5295_v51 }
 0x4da   : > { %s5080_s17 = spop %5079 }
 0x4db   : > { %v7702_v61 = vstv %s5080_s17 }
 0x4dc   : > { %v2676_v54 = vmul.f32 %v7702_v61, %v2643_v7  ;;  %v2677_v5 = vmul.f32 %v7702_v61, %v2644_v20  ;;  %v2649_v3 = vmul.f32 %v7702_v61, %v2616_v10  ;;  %v2650_v23 = vmul.f32 %v7702_v61, %v2617_v16 }
 0x4dd   : > { %v2651_v4 = vmul.f32 %v7702_v61, %v2618_v33  ;;  %v7763_v29 = vmul.f32 %v7702_v61, %v2613_v36  ;;  %v7766_v30 = vmul.f32 %v7702_v61, %v2614_v41  ;;  %v2652_v17 = vmul.f32 %v7702_v61, %v2619_v39 }
 0x4de   : > { %v2648_v19 = vmul.f32 %v7702_v61, %v2615_v44  ;;  %v2653_v57 = vmul.f32 %v7702_v61, %v2620_v43  ;;  %v2654_v14 = vmul.f32 %v7702_v61, %v2621_v53  ;;  %v2655_v25 = vmul.f32 %v7702_v61, %v2622_v63 }
 0x4df   : > { %v2656_v55 = vmul.f32 %v7702_v61, %v2623_v40  ;;  %v2657_v0 = vmul.f32 %v7702_v61, %v2624_v9  ;;  %v2658_v59 = vmul.f32 %v7702_v61, %v2625_v1  ;;  %v2687_v6 = vmul.f32 %v7752_v8, %v2649_v3 }
 0x4e0   : > { %v2688_v32 = vmul.f32 %v7752_v8, %v2650_v23  ;;  %v2689_v26 = vmul.f32 %v7752_v8, %v2651_v4  ;;  %v7785_v47 = vmul.f32 %v7752_v8, %v2676_v54  ;;  %v2715_v22 = vmul.f32 %v7752_v8, %v2677_v5 }
 0x4e1   : > { %v2659_v28 = vmul.f32 %v7702_v61, %v2626_v35  ;;  %v2660_v13 = vmul.f32 %v7702_v61, %v2627_v58  ;;  %v2661_v46 = vmul.f32 %v7702_v61, %v2628_v11  ;;  %v2690_v18 = vmul.f32 %v7752_v8, %v2652_v17 }
 0x4e2   : > { %v2662_v51 = vmul.f32 %v7702_v61, %v2629_v52  ;;  %v2663_v36 = vmul.f32 %v7702_v61, %v2630_v48  ;;  %v2664_v41 = vmul.f32 %v7702_v61, %v2631_v56  ;;  %v2691_v44 = vmul.f32 %v7752_v8, %v2653_v57 }
 0x4e3   : > { %v2665_v10 = vmul.f32 %v7702_v61, %v2632_v2  ;;  %v2666_v16 = vmul.f32 %v7702_v61, %v2633_v15  ;;  %v2692_v33 = vmul.f32 %v7752_v8, %v2654_v14  ;;  %v7800_v39 = vadd.f32 %v7780_v38, %v2687_v6 }
 0x4e4   : > { %v2667_v43 = vmul.f32 %v7702_v61, %v2634_v62  ;;  %v2693_v53 = vmul.f32 %v7752_v8, %v2655_v25  ;;  %v7805_v7 = vadd.f32 %v7780_v38, %v2688_v32  ;;  %v7808_v20 = vadd.f32 %v7780_v38, %v2689_v26 }
 0x4e5   : > { %v2668_v63 = vmul.f32 %v7702_v61, %v2635_v37  ;;  %v2669_v40 = vmul.f32 %v7702_v61, %v2636_v21  ;;  %v2694_v9 = vmul.f32 %v7752_v8, %v2656_v55  ;;  %v7814_v1 = vadd.f32 %v7780_v38, %v2690_v18 }
 0x4e6   : > { %v2670_v35 = vmul.f32 %v7702_v61, %v2637_v45  ;;  %v7818_v58 = vmul.f32 %v7702_v61, %v2638_v50  ;;  %v2695_v54 = vmul.f32 %v7752_v8, %v2657_v0  ;;  %v7822_v5 = vadd.f32 %v7780_v38, %v2691_v44 }
 0x4e7   : > { %v2686_v11 = vmul.f32 %v7752_v8, %v2648_v19  ;;  %v7826_v52 = vadd.f32 %v7780_v38, %v2692_v33  ;;  %v7829_v48 = vadd.f32 %v7780_v38, %v2715_v22  ;;  %v4662_v56 = vmul.f32 -1.442695, %v7800_v39 }
 0x4e8   : > { %v2696_v2 = vmul.f32 %v7752_v8, %v2658_v59  ;;  %v7834_v15 = vadd.f32 %v7780_v38, %v2693_v53  ;;  %v4663_v62 = vmul.f32 -1.442695, %v7805_v7  ;;  %v4664_v37 = vmul.f32 -1.442695, %v7808_v20 }
 0x4e9   : > { %9340 = vst [vmem:[#allocation15_spill] sm:$0xff] %v7829_v48  ;;  %v2697_v21 = vmul.f32 %v7752_v8, %v2659_v28  ;;  %v7840_v45 = vadd.f32 %v7780_v38, %v2694_v9  ;;  %v4665_v50 = vmul.f32 -1.442695, %v7814_v1  ;;  %5296 = vpow2.f32 %v4662_v56 }
 0x4ea   : > { %v2672_v3 = vmul.f32 %v7702_v61, %v2639_v12  ;;  %v2698_v23 = vmul.f32 %v7752_v8, %v2660_v13  ;;  %v7846_v4 = vadd.f32 %v7780_v38, %v2695_v54  ;;  %v4666_v17 = vmul.f32 -1.442695, %v7822_v5 }
 0x4eb   : > { %v2673_v19 = vmul.f32 %v7702_v61, %v2640_v49  ;;  %v2699_v57 = vmul.f32 %v7752_v8, %v2661_v46  ;;  %v4667_v14 = vmul.f32 -1.442695, %v7826_v52  ;;  %5298 = vpow2.f32 %v4663_v62 }
 0x4ec   : > { %v2700_v25 = vmul.f32 %v7752_v8, %v2662_v51  ;;  %v7854_v55 = vadd.f32 %v7780_v38, %v2696_v2  ;;  %v4668_v12 = vmul.f32 -1.442695, %v7834_v15  ;;  %5300 = vpow2.f32 %v4664_v37 }
 0x4ed   : > { %v7858_v0 = vadd.f32 %v7780_v38, %v2697_v21  ;;  %v4669_v59 = vmul.f32 -1.442695, %v7840_v45  ;;  %v7862_v49 = vadd.f32 %v7780_v38, %v2686_v11  ;;  %5302 = vpow2.f32 %v4665_v50 }
 0x4ee   : > { %v2701_v6 = vmul.f32 %v7752_v8, %v2663_v36  ;;  %v7866_v32 = vadd.f32 %v7780_v38, %v2698_v23  ;;  %v4670_v26 = vmul.f32 -1.442695, %v7846_v4  ;;  %5304 = vpow2.f32 %v4666_v17 }
 0x4ef   : > { %v2702_v22 = vmul.f32 %v7752_v8, %v2664_v41  ;;  %v2703_v28 = vmul.f32 %v7752_v8, %v2665_v10  ;;  %v7872_v13 = vadd.f32 %v7780_v38, %v2699_v57  ;;  %5306 = vpow2.f32 %v4667_v14 }
 0x4f0   : > { %v2704_v46 = vmul.f32 %v7752_v8, %v2666_v16  ;;  %v7876_v18 = vadd.f32 %v7780_v38, %v2700_v25  ;;  %v4671_v51 = vmul.f32 -1.442695, %v7854_v55  ;;  %5308 = vpow2.f32 %v4668_v12 }
 0x4f1   : > { %v2705_v36 = vmul.f32 %v7752_v8, %v2667_v43  ;;  %v4672_v44 = vmul.f32 -1.442695, %v7858_v0  ;;  %v4661_v41 = vmul.f32 -1.442695, %v7862_v49  ;;  %5310 = vpow2.f32 %v4669_v59 }
 0x4f2   : > { %v7883_v10 = vadd.f32 %v7780_v38, %v2701_v6  ;;  %v4673_v33 = vmul.f32 -1.442695, %v7866_v32  ;;  %5312 = vpow2.f32 %v4670_v26  ;;  %v7888_v16 = vadd.f32 %v7780_v38, %v7785_v47 }
 0x4f3   : > { %v2706_v53 = vmul.f32 %v7752_v8, %v2668_v63  ;;  %v7892_v9 = vadd.f32 %v7780_v38, %v2702_v22  ;;  %v4674_v43 = vmul.f32 -1.442695, %v7872_v13  ;;  %5314 = vpow2.f32 %v4661_v41 }
 0x4f4   : > { %9341 = vst [vmem:[#allocation5_spill] sm:$0xff] %v7888_v16  ;;  %v2707_v54 = vmul.f32 %v7752_v8, %v2669_v40  ;;  %v7897_v11 = vadd.f32 %v7780_v38, %v2703_v28  ;;  %v4675_v56 = vmul.f32 -1.442695, %v7876_v18  ;;  %5316 = vpow2.f32 %v4671_v51 }
 0x4f5   : > { %v2674_v47 = vmul.f32 %v7702_v61, %v2641_v24  ;;  %v2708_v63 = vmul.f32 %v7752_v8, %v2670_v35  ;;  %v7906_v2 = vadd.f32 %v7780_v38, %v2704_v46  ;;  %5318 = vpow2.f32 %v4672_v44 }
 0x4f6   : > { %v5297_v62 = vpop.eup %5296  ;;  %v2709_v40 = vmul.f32 %v7752_v8, %v7818_v58  ;;  %v7911_v37 = vadd.f32 %v7780_v38, %v2705_v36  ;;  %v4676_v21 = vmul.f32 -1.442695, %v7883_v10  ;;  %5320 = vpow2.f32 %v4673_v33 }
 0x4f7   : > { %v7915_v31 = vadd.f32 %v7780_v38, %v2706_v53  ;;  %v4677_v24 = vmul.f32 -1.442695, %v7892_v9  ;;  %v2853_v35 = vadd.f32 1.0, %v5297_v62  ;;  %5322 = vpow2.f32 %v4674_v43 }
 0x4f8   : > { %v5299_v50 = vpop.eup %5298  ;;  %v2710_v23 = vmul.f32 %v7752_v8, %v2672_v3  ;;  %v7920_v17 = vadd.f32 %v7780_v38, %v2707_v54  ;;  %v4678_v58 = vmul.f32 -1.442695, %v7897_v11  ;;  %5324 = vpow2.f32 %v4675_v56 }
 0x4f9   : > { %v5301_v57 = vpop.eup %5300  ;;  %v2711_v14 = vmul.f32 %v7752_v8, %v2673_v19  ;;  %v7925_v25 = vadd.f32 %v7780_v38, %v2708_v63  ;;  %v4679_v12 = vmul.f32 -1.442695, %v7906_v2  ;;  %5326 = vrcp.f32 %v2853_v35 }
 0x4fa   : > { %v5303_v59 = vpop.eup %5302  ;;  %v7929_v6 = vadd.f32 %v7780_v38, %v2709_v40  ;;  %v4680_v3 = vmul.f32 -1.442695, %v7911_v37  ;;  %5328 = vpow2.f32 %v4676_v21  ;;  %v2642_v22 = vsub.f32 %v7651_v27, %v7686_v42 }
 0x4fb   : > { %v5305_v26 = vpop.eup %5304  ;;  %v2712_v28 = vmul.f32 %v7752_v8, %v2674_v47  ;;  %v4681_v19 = vmul.f32 -1.442695, %v7915_v31  ;;  %5330 = vpow2.f32 %v4677_v24  ;;  %v7937_v51 = vadd.f32 %v7780_v38, %v2710_v23 }
 0x4fc   : > { %v5307_v46 = vpop.eup %5306  ;;  %v4682_v36 = vmul.f32 -1.442695, %v7920_v17  ;;  %5332 = vpow2.f32 %v4678_v58  ;;  %v2684_v44 = vmul.f32 %v7752_v8, %v7763_v29  ;;  %v2685_v33 = vmul.f32 %v7752_v8, %v7766_v30 }
 0x4fd   : > { %v5309_v41 = vpop.eup %5308  ;;  %v7945_v27 = vadd.f32 %v7780_v38, %v2711_v14  ;;  %v4683_v42 = vmul.f32 -1.442695, %v7925_v25  ;;  %5334 = vpow2.f32 %v4679_v12  ;;  %v2675_v43 = vmul.f32 %v7702_v61, %v2642_v22 }
 0x4fe   : > { %v5311_v53 = vpop.eup %5310  ;;  %v4684_v54 = vmul.f32 -1.442695, %v7929_v6  ;;  %5336 = vpow2.f32 %v4680_v3  ;;  %v7951_v47 = vadd.f32 %v7780_v38, %v2712_v28  ;;  %v4685_v30 = vmul.f32 -1.442695, %v7937_v51 }
 0x4ff   : > { %v5313_v56 = vpop.eup %5312  ;;  %5338 = vpow2.f32 %v4681_v19  ;;  %v7955_v63 = vadd.f32 %v7780_v38, %v2684_v44  ;;  %v4686_v40 = vmul.f32 -1.442695, %v7945_v27  ;;  %v7959_v61 = vadd.f32 %v7780_v38, %v2685_v33 }
 0x500   : > { %v5315_v29 = vpop.eup %5314  ;;  %5340 = vpow2.f32 %v4682_v36  ;;  %v2713_v35 = vmul.f32 %v7752_v8, %v2675_v43  ;;  %v4687_v58 = vmul.f32 -1.442695, %v7951_v47  ;;  %v2854_v36 = vadd.f32 1.0, %v5299_v50 }
 0x501   : > { %v5317_v62 = vpop.eup %5316  ;;  %v2852_v21 = vadd.f32 1.0, %v5315_v29  ;;  %5342 = vpow2.f32 %v4683_v42  ;;  %v4659_v12 = vmul.f32 -1.442695, %v7955_v63  ;;  %v4660_v22 = vmul.f32 -1.442695, %v7959_v61 }
 0x502   : > { %v5319_v24 = vpop.eup %5318  ;;  %5344 = vpow2.f32 %v4684_v54  ;;  %v7966_v19 = vadd.f32 %v7780_v38, %v2713_v35  ;;  %v2855_v33 = vadd.f32 1.0, %v5301_v57  ;;  %v2856_v43 = vadd.f32 1.0, %v5303_v59 }
 0x503   : > { %v5321_v23 = vpop.eup %5320  ;;  %5346 = vrcp.f32 %v2852_v21  ;;  %v2857_v29 = vadd.f32 1.0, %v5305_v26  ;;  %v4690_v38 = vmul.f32 -1.442695, %v7829_v48  ;;  %v2858_v60 = vadd.f32 1.0, %v5307_v46 }
 0x504   : > { %v5323_v14 = vpop.eup %5322  ;;  %5348 = vpow2.f32 %v4685_v30  ;;  %v2859_v57 = vadd.f32 1.0, %v5309_v41  ;;  %v7972_v59 = vmul.f32 -1.442695, %v7888_v16  ;;  %v2864_v34 = vadd.f32 1.0, %v5321_v23 }
 0x505   : > { %v5325_v3 = vpop.eup %5324  ;;  %5350 = vpow2.f32 %v4686_v40  ;;  %v4688_v40 = vmul.f32 -1.442695, %v7966_v19 }
 0x506   : > { %v5327_v28 = vpop.eup %5326  ;;  %5352 = vpow2.f32 %v4687_v58  ;;  %v2860_v58 = vadd.f32 1.0, %v5311_v53 }
 0x507   : > { %v5329_v44 = vpop.eup %5328  ;;  %v2949_v8 = vmul.f32 %v5327_v28, %v7800_v39  ;;  %5354 = vpow2.f32 %v4659_v12  ;;  %v2861_v12 = vadd.f32 1.0, %v5313_v56  ;;  %v2863_v28 = vadd.f32 1.0, %v5319_v24 }
 0x508   : > { %v5331_v42 = vpop.eup %5330  ;;  %5356 = vpow2.f32 %v4660_v22  ;;  %v2862_v22 = vadd.f32 1.0, %v5317_v62  ;;  %v7975_v48 = vadd.f32 1.0, %v5329_v44 }
 0x509   : > { %v5333_v54 = vpop.eup %5332  ;;  %5358 = vrcp.f32 %v2854_v36  ;;  %v3014_v35 = vrot.slane %v2949_v8, 7  ;;  %v2865_v8 = vadd.f32 1.0, %v5323_v14  ;;  %v2868_v41 = vadd.f32 1.0, %v5331_v42 }
 0x50a   : > { %v5335_v30 = vpop.eup %5334  ;;  %5360 = vrcp.f32 %v2855_v33  ;;  %v7978_v16 = vadd.f32 1.0, %v5333_v54 }
 0x50b   : > { %v5337_v21 = vpop.eup %5336  ;;  %5362 = vrcp.f32 %v2856_v43  ;;  %v3123_v33 = vsel %vm954_vm1, %v3014_v35, 0.0  ;;  %v2866_v43 = vadd.f32 1.0, %v5325_v3  ;;  %v2870_v56 = vadd.f32 1.0, %v5335_v30 }
 0x50c   : > { %v5339_v50 = vpop.eup %5338  ;;  %5364 = vrcp.f32 %v2857_v29  ;;  %v7980_v24 = vadd.f32 1.0, %v5337_v21  ;;  %v3311_v14 = vrot.slane %v3123_v33, 2  ;;  %v3191_v44 = vrot.slane %v3123_v33, 1 }
 0x50d   : > { %v5341_v39 = vpop.eup %5340  ;;  %5366 = vpow2.f32 %v4688_v40  ;;  %v7982_v23 = vadd.f32 1.0, %v5339_v50 }
 0x50e   : > { %v5343_v26 = vpop.eup %5342  ;;  %5368 = vpow2.f32 %v4690_v38  ;;  %v7984_v3 = vadd.f32 1.0, %v5341_v39 }
 0x50f   : > { %v5345_v36 = vpop.eup %5344  ;;  %5370 = vrcp.f32 %v2858_v60  ;;  %v7986_v42 = vadd.f32 1.0, %v5343_v26 }
 0x510   : > { %v5347_v46 = vpop.eup %5346  ;;  %5372 = vrcp.f32 %v2859_v57 }
 0x511   : > { %v5349_v53 = vpop.eup %5348  ;;  %v2948_v29 = vmul.f32 %v5347_v46, %v7862_v49  ;;  %5374 = vrcp.f32 %v2860_v58  ;;  %v7988_v49 = vadd.f32 1.0, %v5345_v36 }
 0x512   : > { %v5351_v62 = vpop.eup %5350  ;;  %5376 = vrcp.f32 %v2861_v12  ;;  %v7990_v54 = vadd.f32 1.0, %v5349_v53 }
 0x513   : > { %v3013_v40 = vrot.slane %v2948_v29, 7  ;;  %v5353_v60 = vpop.eup %5352  ;;  %5378 = vrcp.f32 %v2862_v22  ;;  %v7994_v50 = vadd.f32 1.0, %v5351_v62 }
 0x514   : > { %v5355_v30 = vpop.eup %5354  ;;  %5380 = vrcp.f32 %v2863_v28 }
 0x515   : > { %v3015_v21 = vsel %vm954_vm1, %v3013_v40, %v3014_v35  ;;  %v3107_v38 = vsel %vm954_vm1, 0.0, %v3013_v40  ;;  %v5357_v39 = vpop.eup %5356  ;;  %v2850_v46 = vadd.f32 1.0, %v5355_v30  ;;  %5382 = vrcp.f32 %v2864_v34 }
 0x516   : > { %v7996_v57 = vpack.c.bf16 %v3015_v21, %v3107_v38  ;;  %v3188_v58 = vrot.slane %v3107_v38, 1  ;;  %v3189_v12 = vrot.slane %v3015_v21, 1  ;;  %v3308_v26 = vrot.slane %v3107_v38, 2  ;;  %v5359_v33 = vpop.eup %5358 }
 0x517   : > { %v3309_v36 = vrot.slane %v3015_v21, 2  ;;  %v2851_v53 = vadd.f32 1.0, %v5357_v39  ;;  %v5361_v22 = vpop.eup %5360  ;;  %5384 = vrcp.f32 %v2865_v8  ;;  %v2950_v35 = vmul.f32 %v5359_v33, %v7805_v7 }
 0x518   : > { %9342 = vst [vmem:[#allocation14_spill] sm:$0xff] %v7996_v57  ;;  %3613 = vrot.lane.b32.xlu1 %v7996_v57, %s9343_s21  ;;  %v3190_v28 = vsel %vm1130_vm3, %v3188_v58, %v3189_v12  ;;  %v3192_v29 = vsel %vm1130_vm3, %v3189_v12, %v3191_v44  ;;  %v5363_v62 = vpop.eup %5362  ;;  %5386 = vrcp.f32 %v2850_v46  ;;  %v2951_v30 = vmul.f32 %v5361_v22, %v7808_v20 }
 0x519   : > { %v3310_v40 = vsel %vm1255_vm2, %v3308_v26, %v3309_v36  ;;  %v3312_v21 = vsel %vm1255_vm2, %v3309_v36, %v3311_v14  ;;  %v5365_v34 = vpop.eup %5364  ;;  %5388 = vrcp.f32 %v2851_v53  ;;  %v2952_v8 = vmul.f32 %v5363_v62, %v7814_v1 }
 0x51a   : > { %v8006_v38 = vpack.c.bf16 %v3312_v21, %v3310_v40  ;;  %v3016_v39 = vrot.slane %v2950_v35, 7  ;;  %v5367_v7 = vpop.eup %5366  ;;  %5390 = vrcp.f32 %v2866_v43  ;;  %v3017_v58 = vrot.slane %v2951_v30, 7 }
 0x51b   : > { %v2953_v44 = vmul.f32 %v5365_v34, %v7822_v5  ;;  %v8010_v12 = vpack.c.bf16 %v3192_v29, %v3190_v28  ;;  %v5369_v33 = vpop.eup %5368  ;;  %v2878_v26 = vadd.f32 1.0, %v5353_v60  ;;  %5392 = vrcp.f32 %v2868_v41 }
 0x51c   : > { %9344 = vst [vmem:[#allocation17_spill] sm:$0xff] %v8006_v38  ;;  %5033 = vmatprep.mubr.msk.bf16.mxu0 %vm366_vm0, %v8006_v38  ;;  %v8015_v20 = vsel %vm954_vm1, 0.0, %v3016_v39  ;;  %v3019_v14 = vrot.slane %v2952_v8, 7  ;;  %v5371_v36 = vpop.eup %5370  ;;  %5394 = vrcp.f32 %v2870_v56  ;;  %v8018_v1 = vsel %vm954_vm1, %v3016_v39, %v3017_v58 }
 0x51d   : > { %9345 = vst [vmem:[#allocation18_spill] sm:$0xff] %v8010_v12  ;;  %v8021_v43 = vsel %vm954_vm1, %v3017_v58, 0.0  ;;  %v3313_v5 = vrot.slane %v8015_v20, 2  ;;  %v5373_v46 = vpop.eup %5372  ;;  %v2879_v60 = vadd.f32 1.0, %v5367_v7  ;;  %5396 = vrcp.f32 %v7975_v48 }
 0x51e   : > { %v3314_v41 = vrot.slane %v8018_v1, 2  ;;  %v3316_v53 = vrot.slane %v8021_v43, 2  ;;  %v5375_v22 = vpop.eup %5374  ;;  %5398 = vrcp.f32 %v7982_v23  ;;  %v8030_v56 = vpack.c.bf16 %v8018_v1, %v8015_v20 }
 0x51f   : > { %v3020_v35 = vrot.slane %v2953_v44, 7  ;;  %v8033_v28 = vsel %vm954_vm1, 0.0, %v3019_v14  ;;  %v5377_v29 = vpop.eup %5376  ;;  %5400 = vrcp.f32 %v7978_v16  ;;  %v2954_v48 = vmul.f32 %v5371_v36, %v7826_v52 }
 0x520   : > { %9346 = vst [vmem:[#allocation19_spill] sm:$0xff] %v8030_v56  ;;  %v3315_v62 = vsel %vm1255_vm2, %v3313_v5, %v3314_v41  ;;  %v3317_v40 = vsel %vm1255_vm2, %v3314_v41, %v3316_v53  ;;  %v5379_v21 = vpop.eup %5378  ;;  %5402 = vrcp.f32 %v7986_v42  ;;  %3615 = vrot.lane.b32.xlu1 %v8030_v56, %s9343_s21  ;;  %v2956_v52 = vmul.f32 %v5375_v22, %v7840_v45 }
 0x521   : > { %v8040_v23 = vpack.c.bf16 %v3317_v40, %v3315_v62  ;;  %v8045_v30 = vsel %vm954_vm1, %v3019_v14, %v3020_v35  ;;  %v8048_v34 = vsel %vm954_vm1, %v3020_v35, 0.0  ;;  %v8050_v16 = vpop.eup %5380  ;;  %5404 = vrcp.f32 %v7980_v24 }
 0x522   : > { %v3318_v8 = vrot.slane %v8033_v28, 2  ;;  %v3319_v42 = vrot.slane %v8045_v30, 2  ;;  %5406 = vrcp.f32 %v7990_v54  ;;  %v3321_v39 = vrot.slane %v8048_v34, 2  ;;  %v5383_v24 = vpop.eup %5382 }
 0x523   : > { %9347 = vst [vmem:[#allocation20_spill] sm:$0xff] %v8040_v23  ;;  %5034 = vmatmul.mubr.msk.bf16.vlgmr.msra.gmra.mxu0 %vm366_vm0, %v8040_v23  ;;  %v8062_v7 = vpack.c.bf16 %v8045_v30, %v8033_v28  ;;  %v2955_v58 = vmul.f32 %v5373_v46, %v7834_v15  ;;  %v2881_v44 = vadd.f32 1.0, %v5369_v33  ;;  %5408 = vrcp.f32 %v7984_v3  ;;  %v5148_v15 = vld [vmem:[%s9190_s7 + $0x78] sm:$0xff]  }
 0x524   : > { %v3320_v45 = vsel %vm1255_vm2, %v3318_v8, %v3319_v42  ;;  %v3022_v14 = vrot.slane %v2954_v48, 7  ;;  %v8067_v36 = vpop.eup %5384  ;;  %5410 = vrcp.f32 %v2878_v26  ;;  %v3322_v54 = vsel %vm1255_vm2, %v3319_v42, %v3321_v39  ;;  %4863 = vmatprep.subr.bf16.mxu1 %v5148_v15 }
 0x525   : > { %9348 = vst [vmem:[#allocation7_spill] sm:$0xff] %v8062_v7  ;;  %3617 = vrot.lane.b32.xlu1 %v8062_v7, %s9343_s21  ;;  %v3023_v5 = vrot.slane %v2955_v58, 7  ;;  %v2957_v41 = vmul.f32 %v5377_v29, %v7846_v4  ;;  %v5387_v33 = vpop.eup %5386  ;;  %5412 = vrcp.f32 %v2879_v60  ;;  %v8077_v3 = vmul.f32 %v5379_v21, %v7854_v55 }
 0x526   : > { %v8079_v46 = vpack.c.bf16 %v3322_v54, %v3320_v45  ;;  %v8082_v26 = vsel %vm954_vm1, 0.0, %v3022_v14  ;;  %v5389_v53 = vpop.eup %5388  ;;  %v2946_v22 = vmul.f32 %v5387_v33, %v7955_v63  ;;  %v3025_v29 = vrot.slane %v2956_v52, 7 }
 0x527   : > { %v8086_v35 = vsel %vm954_vm1, %v3022_v14, %v3023_v5  ;;  %v8089_v4 = vsel %vm954_vm1, %v3023_v5, 0.0  ;;  %v5391_v60 = vpop.eup %5390  ;;  %v2947_v55 = vmul.f32 %v5389_v53, %v7959_v61  ;;  %v3323_v48 = vrot.slane %v8082_v26, 2  ;;  %v5149_v61 = vld [vmem:[%s9190_s7 + $0x38] sm:$0xff]  }
 0x528   : > { %9349 = vst [vmem:[#allocation8_spill] sm:$0xff] %v8079_v46  ;;  %5037 = vmatprep.mubr.msk.bf16.mxu0 %vm366_vm0, %v8079_v46  ;;  %v3324_v62 = vrot.slane %v8086_v35, 2  ;;  %v3326_v63 = vrot.slane %v8089_v4, 2  ;;  %v5393_v40 = vpop.eup %5392  ;;  %v3010_v21 = vrot.slane %v2946_v22, 7  ;;  %5414 = vrcp.f32 %v7988_v49  ;;  %4864 = vmatpush3.bf16.msra.mxu1 %v5149_v61 }
 0x529   : > { %v8100_v52 = vpack.c.bf16 %v8086_v35, %v8082_v26  ;;  %v3026_v8 = vrot.slane %v2957_v41, 7  ;;  %v5395_v42 = vpop.eup %5394  ;;  %v3011_v39 = vrot.slane %v2947_v55, 7  ;;  %5416 = vrcp.f32 %v7994_v50 }
 0x52a   : > { %v3325_v58 = vsel %vm1255_vm2, %v3323_v48, %v3324_v62  ;;  %v3327_v45 = vsel %vm1255_vm2, %v3324_v62, %v3326_v63  ;;  %v5397_v14 = vpop.eup %5396  ;;  %v8109_v49 = vsel %vm954_vm1, 0.0, %v3010_v21  ;;  %v8119_v41 = vsel %vm954_vm1, 0.0, %v3025_v29 }
 0x52b   : > { %9350 = vst [vmem:[#allocation9_spill] sm:$0xff] %v8100_v52  ;;  %9351 = vst [vmem:[#allocation10_spill] sm:$0xff] %v8109_v49  ;;  %v8111_v54 = vpack.c.bf16 %v3327_v45, %v3325_v58  ;;  %3619 = vrot.lane.b32.xlu1 %v8100_v52, %s9343_s21  ;;  %v8116_v5 = vsel %vm954_vm1, %v3025_v29, %v3026_v8  ;;  %v5399_v50 = vpop.eup %5398  ;;  %v8122_v15 = vsel %vm954_vm1, %v3010_v21, %v3011_v39 }
 0x52c   : > { %9353 = vst [vmem:[#allocation21_spill] sm:$0xff] %v8122_v15  ;;  %5418 = vrcp.f32 %v2881_v44  ;;  %v2960_v33 = vmul.f32 %v5383_v24, %v7866_v32  ;;  %v8126_v53 = vmul.f32 %v5391_v60, %v7876_v18  ;;  %v8128_v22 = vpop.eup %5400  ;;  %v8131_v55 = vsel %vm954_vm1, %v3011_v39, 0.0  ;;  %v5150_v32 = vld [vmem:[%s9190_s7 + $0x70] sm:$0xff]  }
 0x52d   : > { %9352 = vst [vmem:[#allocation12_spill] sm:$0xff] %v8111_v54  ;;  %v8135_v29 = vpack.c.bf16 %v8122_v15, %v8109_v49  ;;  %v8138_v48 = vmul.f32 %v5393_v40, %v7892_v9  ;;  %v8141_v62 = vmul.f32 %v5395_v42, %v7906_v2  ;;  %5038 = vmatmul.mubr.msk.bf16.gmra.mxu0 %vm366_vm0, %v8111_v54  ;;  %v5403_v18 = vpop.eup %5402  ;;  %v8149_v24 = vsel %vm954_vm1, %v3026_v8, 0.0 }
 0x52e   : > { %v3328_v44 = vrot.slane %v8119_v41, 2  ;;  %v3329_v60 = vrot.slane %v8116_v5, 2  ;;  %v8155_v9 = vpack.c.bf16 %v8116_v5, %v8119_v41  ;;  %v8157_v2 = vpop.eup %5404  ;;  %v8162_v63 = vmul.f32 %v5399_v50, %v7915_v31  ;;  %4865 = vmatprep.subr.bf16.mxu1 %v5150_v32  ;;  %v5151_v50 = vld [vmem:[%s9190_s7 + $0x30] sm:$0xff]  }
 0x52f   : > { %9354 = vst [vmem:[#allocation22_spill] sm:$0xff] %v8135_v29  ;;  %3548 = vrot.lane.b32.xlu0 %v8135_v29, %s9356_s16  ;;  %v3331_v40 = vrot.slane %v8149_v24, 2  ;;  %v2959_v21 = vmul.f32 %v8050_v16, %v7858_v0  ;;  %v3028_v8 = vrot.slane %v8077_v3, 7  ;;  %v5407_v61 = vpop.eup %5406  ;;  %v8169_v42 = vmul.f32 %v5403_v18, %v7925_v25  ;;  %4866 = vmatpush3.bf16.msra.mxu1 %v5151_v50 }
 0x530   : > { %9355 = vst [vmem:[#allocation23_spill] sm:$0xff] %v8155_v9  ;;  %v3330_v39 = vsel %vm1255_vm2, %v3328_v44, %v3329_v60  ;;  %3621 = vrot.lane.b32.xlu1 %v8155_v9, %s9343_s21  ;;  %v2961_v31 = vmul.f32 %v8067_v36, %v7872_v13  ;;  %v3031_v58 = vrot.slane %v2960_v33, 7  ;;  %v8176_v45 = vpop.eup %5408  ;;  %v2963_v25 = vmul.f32 %v5397_v14, %v7883_v10 }
 0x531   : > { %v3332_v0 = vsel %vm1255_vm2, %v3329_v60, %v3331_v40  ;;  %v3029_v16 = vrot.slane %v2959_v21, 7  ;;  %v8180_v3 = vsel %vm954_vm1, 0.0, %v3028_v8  ;;  %v5411_v32 = vpop.eup %5410  ;;  %v8193_v60 = vmul.f32 %v5407_v61, %v7937_v51 }
 0x532   : > { %v8186_v18 = vpack.c.bf16 %v3332_v0, %v3330_v39  ;;  %v3333_v13 = vrot.slane %v8180_v3, 2  ;;  %v3032_v36 = vrot.slane %v2961_v31, 7  ;;  %v8190_v33 = vsel %vm954_vm1, 0.0, %v3031_v58  ;;  %v5413_v44 = vpop.eup %5412 }
 0x533   : > { %v8196_v40 = vmul.f32 %v5411_v32, %v7951_v47  ;;  %3550 = vrot.lane.b32.xlu0 %v7996_v57, %s9356_s16  ;;  %v8201_v10 = vsel %vm954_vm1, %v3028_v8, %v3029_v16  ;;  %v8204_v14 = vsel %vm954_vm1, %v3029_v16, 0.0  ;;  %v3338_v61 = vrot.slane %v8190_v33, 2  ;;  %v5152_v16 = vld [vmem:[%s9190_s7 + $0x68] sm:$0xff]  }
 0x534   : > { %9357 = vst [vmem:[#allocation24_spill] sm:$0xff] %v8186_v18  ;;  %5041 = vmatprep.mubr.msk.bf16.mxu0 %vm366_vm0, %v8186_v18  ;;  %v3334_v21 = vrot.slane %v8201_v10, 2  ;;  %v3336_v51 = vrot.slane %v8204_v14, 2  ;;  %v8212_v47 = vpack.c.bf16 %v8201_v10, %v8180_v3  ;;  %v8216_v8 = vmul.f32 %v5413_v44, %v7966_v19  ;;  %4867 = vmatprep.subr.bf16.mxu1 %v5152_v16 }
 0x535   : > { %v8219_v39 = vsel %vm954_vm1, %v3031_v58, %v3032_v36  ;;  %v8222_v31 = vsel %vm954_vm1, %v3032_v36, 0.0  ;;  %v3034_v0 = vrot.slane %v8126_v53, 7  ;;  %v8228_v50 = vpop.eup %5414  ;;  %v2965_v29 = vmul.f32 %v8128_v22, %v7897_v11  ;;  %v5153_v11 = vld [vmem:[%s9190_s7 + $0x28] sm:$0xff]  }
 0x536   : > { %9358 = vst [vmem:[#allocation25_spill] sm:$0xff] %v8212_v47  ;;  %v3335_v57 = vsel %vm1255_vm2, %v3333_v13, %v3334_v21  ;;  %v3337_v19 = vsel %vm1255_vm2, %v3334_v21, %v3336_v51  ;;  %3623 = vrot.lane.b32.xlu1 %v8212_v47, %s9343_s21  ;;  %v3339_v58 = vrot.slane %v8219_v39, 2  ;;  %v8236_v36 = vpop.eup %5416  ;;  %v3341_v44 = vrot.slane %v8222_v31, 2  ;;  %4868 = vmatpush3.bf16.msra.mxu1 %v5153_v11 }
 0x537   : > { %3552 = vrot.lane.b32.xlu0 %v8030_v56, %s9356_s16  ;;  %v8240_v53 = vpack.c.bf16 %v3337_v19, %v3335_v57  ;;  %v8245_v32 = vpack.c.bf16 %v8219_v39, %v8190_v33  ;;  %v3035_v13 = vrot.slane %v2963_v25, 7  ;;  %v8249_v51 = vsel %vm954_vm1, 0.0, %v3034_v0 }
 0x538   : > { %v3340_v21 = vsel %vm1255_vm2, %v3338_v61, %v3339_v58  ;;  %v3037_v56 = vrot.slane %v8138_v48, 7  ;;  %v3342_v19 = vsel %vm1255_vm2, %v3339_v58, %v3341_v44  ;;  %v3343_v16 = vrot.slane %v8249_v51, 2 }
 0x539   : > { %9359 = vst [vmem:[#allocation26_spill] sm:$0xff] %v8240_v53  ;;  %9360 = vst [vmem:[#allocation27_spill] sm:$0xff] %v8245_v32  ;;  %v8254_v57 = vpop.eup %5418  ;;  %5042 = vmatmul.mubr.msk.bf16.gmra.mxu0 %vm366_vm0, %v8240_v53  ;;  %v8260_v25 = vsel %vm954_vm1, %v3034_v0, %v3035_v13  ;;  %v8263_v61 = vsel %vm954_vm1, %v3035_v13, 0.0  ;;  %v8269_v22 = vpack.c.bf16 %v3342_v19, %v3340_v21  ;;  %v3038_v44 = vrot.slane %v2965_v29, 7 }
 0x53a   : > { %3625 = vrot.lane.b32.xlu1 %v8245_v32, %s9343_s21  ;;  %v3344_v48 = vrot.slane %v8260_v25, 2  ;;  %v3346_v58 = vrot.slane %v8263_v61, 2  ;;  %v8277_v0 = vpack.c.bf16 %v8260_v25, %v8249_v51  ;;  %v8282_v13 = vsel %vm954_vm1, 0.0, %v3037_v56 }
 0x53b   : > { %9361 = vst [vmem:[#allocation28_spill] sm:$0xff] %v8269_v22  ;;  %3554 = vrot.lane.b32.xlu0 %v8062_v7, %s9356_s16  ;;  %v2967_v21 = vmul.f32 %v8157_v2, %v7911_v37  ;;  %v3040_v19 = vrot.slane %v8141_v62, 7  ;;  %5045 = vmatprep.mubr.msk.bf16.mxu0 %vm366_vm0, %v8269_v22  ;;  %v3348_v54 = vrot.slane %v8282_v13, 2  ;;  %v2969_v29 = vmul.f32 %v8176_v45, %v7920_v17  ;;  %v5154_v2 = vld [vmem:[%s9190_s7 + $0x60] sm:$0xff]  }
 0x53c   : > { %9362 = vst [vmem:[#allocation29_spill] sm:$0xff] %v8277_v0  ;;  %v3345_v53 = vsel %vm1255_vm2, %v3343_v16, %v3344_v48  ;;  %v3347_v18 = vsel %vm1255_vm2, %v3344_v48, %v3346_v58  ;;  %v8297_v46 = vsel %vm954_vm1, %v3037_v56, %v3038_v44  ;;  %v8300_v37 = vsel %vm954_vm1, %v3038_v44, 0.0  ;;  %4869 = vmatprep.subr.bf16.mxu1 %v5154_v2 }
 0x53d   : > { %v8294_v7 = vpack.c.bf16 %v3347_v18, %v3345_v53  ;;  %v3041_v62 = vrot.slane %v2967_v21, 7  ;;  %v3349_v16 = vrot.slane %v8297_v46, 2  ;;  %v3351_v17 = vrot.slane %v8300_v37, 2 }
 0x53e   : > { %3627 = vrot.lane.b32.xlu1 %v8277_v0, %s9343_s21  ;;  %v8311_v45 = vpack.c.bf16 %v8297_v46, %v8282_v13  ;;  %v8314_v56 = vsel %vm954_vm1, 0.0, %v3040_v19  ;;  %v3043_v48 = vrot.slane %v8162_v63, 7  ;;  %5420 = vpow2.f32 %v7972_v59 }
 0x53f   : > { %9363 = vst [vmem:[#allocation30_spill] sm:$0xff] %v8294_v7  ;;  %3556 = vrot.lane.b32.xlu0 %v8100_v52, %s9356_s16  ;;  %v8319_v18 = vsel %vm954_vm1, %v3040_v19, %v3041_v62  ;;  %v8322_v53 = vsel %vm954_vm1, %v3041_v62, 0.0  ;;  %v3353_v11 = vrot.slane %v8314_v56, 2  ;;  %v3350_v58 = vsel %vm1255_vm2, %v3348_v54, %v3349_v16  ;;  %v5155_v54 = vld [vmem:[%s9190_s7 + $0x20] sm:$0xff]  }
 0x540   : > { %v3352_v44 = vsel %vm1255_vm2, %v3349_v16, %v3351_v17  ;;  %v3354_v21 = vrot.slane %v8319_v18, 2  ;;  %v3356_v22 = vrot.slane %v8322_v53, 2  ;;  %v3053_v52 = vrot.slane %v8216_v8, 7  ;;  %4870 = vmatpush3.bf16.msra.mxu1 %v5155_v54 }
 0x541   : > { %5046 = vmatmul.mubr.msk.bf16.gmra.mxu0 %vm366_vm0, %v8294_v7  ;;  %v8333_v19 = vpack.c.bf16 %v3352_v44, %v3350_v58  ;;  %v3044_v62 = vrot.slane %v2969_v29, 7  ;;  %v8336_v23 = vsel %vm954_vm1, 0.0, %v3043_v48  ;;  %v2971_v16 = vmul.f32 %v8228_v50, %v7929_v6 }
 0x542   : > { %3629 = vrot.lane.b32.xlu1 %v8311_v45, %s9343_s21  ;;  %v3355_v63 = vsel %vm1255_vm2, %v3353_v11, %v3354_v21  ;;  %v3357_v8 = vsel %vm1255_vm2, %v3354_v21, %v3356_v22  ;;  %v3358_v2 = vrot.slane %v8336_v23, 2  ;;  %v8354_v29 = vpack.c.bf16 %v8319_v18, %v8314_v56 }
 0x543   : > { %9364 = vst [vmem:[#allocation31_spill] sm:$0xff] %v8333_v19  ;;  %3558 = vrot.lane.b32.xlu0 %v8155_v9, %s9356_s16  ;;  %5049 = vmatprep.mubr.msk.bf16.mxu0 %vm366_vm0, %v8333_v19  ;;  %v8357_v17 = vsel %vm954_vm1, %v3043_v48, %v3044_v62  ;;  %v8360_v22 = vsel %vm954_vm1, %v3044_v62, 0.0  ;;  %v3046_v11 = vrot.slane %v8169_v42, 7  ;;  %v8363_v58 = vpack.c.bf16 %v3357_v8, %v3355_v63  ;;  %v5156_v63 = vld [vmem:[%s9190_s7 + $0x58] sm:$0xff]  }
 0x544   : > { %v3359_v6 = vrot.slane %v8357_v17, 2  ;;  %v3361_v50 = vrot.slane %v8360_v22, 2  ;;  %v3047_v44 = vrot.slane %v2971_v16, 7  ;;  %v8369_v21 = vpack.c.bf16 %v8357_v17, %v8336_v23  ;;  %4871 = vmatprep.subr.bf16.mxu1 %v5156_v63 }
 0x545   : > { %9365 = vst [vmem:[#allocation32_spill] sm:$0xff] %v8363_v58  ;;  %v8372_v48 = vsel %vm954_vm1, 0.0, %v3046_v11  ;;  %v2973_v62 = vmul.f32 %v8236_v36, %v7945_v27  ;;  %v3049_v42 = vrot.slane %v8193_v60, 7  ;;  %v9366_v19 = vrot.slane %v8196_v40, 7 }
 0x546   : > { %3631 = vrot.lane.b32.xlu1 %v8354_v29, %s9343_s21  ;;  %v3360_v54 = vsel %vm1255_vm2, %v3358_v2, %v3359_v6  ;;  %v3362_v8 = vsel %vm1255_vm2, %v3359_v6, %v3361_v50  ;;  %v8385_v16 = vsel %vm954_vm1, %v3046_v11, %v3047_v44  ;;  %v8388_v9 = vsel %vm954_vm1, %v3047_v44, 0.0 }
 0x547   : > { %3560 = vrot.lane.b32.xlu0 %v8212_v47, %s9356_s16  ;;  %v3363_v27 = vrot.slane %v8372_v48, 2  ;;  %v3364_v60 = vrot.slane %v8385_v16, 2  ;;  %v3366_v36 = vrot.slane %v8388_v9, 2  ;;  %v8398_v2 = vsel %vm954_vm1, %v9366_v19, %v3053_v52 }
 0x548   : > { %v8400_v11 = vpack.c.bf16 %v3362_v8, %v3360_v54  ;;  %v3050_v6 = vrot.slane %v2973_v62, 7  ;;  %v8403_v50 = vsel %vm954_vm1, 0.0, %v3049_v42  ;;  %v9368_v44 = vmov %v9366_v19  ;;  %v5157_v62 = vld [vmem:[%s9190_s7 + $0x18] sm:$0xff]  }
 0x549   : > { %v8408_v47 = vsel %vm954_vm1, 0.0, %v9368_v44  ;;  %v3303_v7 = vrot.slane %v8109_v49, 2  ;;  %5050 = vmatmul.mubr.msk.bf16.gmra.mxu0 %vm366_vm0, %v8363_v58  ;;  %v3365_v19 = vsel %vm1255_vm2, %v3363_v27, %v3364_v60  ;;  %v3368_v63 = vrot.slane %v8403_v50, 2  ;;  %4872 = vmatpush3.bf16.msra.mxu1 %v5157_v62  ;;  %v5158_v62 = vld [vmem:[%s9190_s7 + $0x50] sm:$0xff]  }
 0x54a   : > { %9367 = vst [vmem:[#allocation33_spill] sm:$0xff] %v8400_v11  ;;  %v8416_v54 = vsel %vm954_vm1, %v3053_v52, 0.0  ;;  %5053 = vmatprep.mubr.msk.bf16.mxu0 %vm366_vm0, %v8400_v11  ;;  %3633 = vrot.lane.b32.xlu1 %v8369_v21, %s9343_s21  ;;  %v3367_v40 = vsel %vm1255_vm2, %v3364_v60, %v3366_v36  ;;  %v8427_v8 = vsel %vm954_vm1, %v3049_v42, %v3050_v6  ;;  %v8430_v27 = vsel %vm954_vm1, %v3050_v6, 0.0 }
 0x54b   : > { %9369 = vst [vmem:[#allocation34_spill] sm:$0xff] %v8430_v27  ;;  %v3373_v52 = vrot.slane %v8408_v47, 2  ;;  %v3304_v44 = vrot.slane %v8122_v15, 2  ;;  %3562 = vrot.lane.b32.xlu0 %v8245_v32, %s9356_s16  ;;  %v3369_v11 = vrot.slane %v8427_v8, 2  ;;  %v3371_v58 = vrot.slane %v8430_v27, 2  ;;  %4873 = vmatprep.subr.bf16.mxu1 %v5158_v62 }
 0x54c   : > { %v3374_v38 = vrot.slane %v8398_v2, 2  ;;  %v8442_v60 = vpack.c.bf16 %v8385_v16, %v8372_v48  ;;  %v3376_v36 = vrot.slane %v8416_v54, 2  ;;  %v8447_v32 = vpack.c.bf16 %v3367_v40, %v3365_v19 }
 0x54d   : > { %v3370_v12 = vsel %vm1255_vm2, %v3368_v63, %v3369_v11  ;;  %v3372_v27 = vsel %vm1255_vm2, %v3369_v11, %v3371_v58  ;;  %v8458_v42 = vpack.c.bf16 %v8427_v8, %v8403_v50  ;;  %v3306_v40 = vrot.slane %v8131_v55, 2  ;;  %v9371_v11 = vld [vmem:[#allocation15_spill] sm:$0xff] }
 0x54e   : > { %3635 = vrot.lane.b32.xlu1 %v8442_v60, %s9343_s21  ;;  %v3375_v59 = vsel %vm1255_vm2, %v3373_v52, %v3374_v38  ;;  %v3377_v19 = vsel %vm1255_vm2, %v3374_v38, %v3376_v36  ;;  %v8467_v58 = vpack.c.bf16 %v8398_v2, %v8408_v47  ;;  %v8471_v63 = vmul.f32 %v8254_v57, %v9371_v11 }
 0x54f   : > { %3564 = vrot.lane.b32.xlu0 %v8277_v0, %s9356_s16  ;;  %v8474_v6 = vsel %vm1255_vm2, %v3303_v7, %v3304_v44  ;;  %v3193_v52 = vrot.slane %v8015_v20, 1  ;;  %v8477_v38 = vpack.c.bf16 %v3372_v27, %v3370_v12  ;;  %v3194_v36 = vrot.slane %v8018_v1, 1  ;;  %v5159_v12 = vld [vmem:[%s9190_s7 + $0x10] sm:$0xff]  }
 0x550   : > { %9370 = vst [vmem:[#allocation35_spill] sm:$0xff] %v8467_v58  ;;  %v3196_v0 = vrot.slane %v8021_v43, 1  ;;  %v3198_v49 = vrot.slane %v8033_v28, 1  ;;  %v8484_v15 = vpack.c.bf16 %v3377_v19, %v3375_v59  ;;  %v3186_v57 = vrot.slane %v8131_v55, 1  ;;  %4874 = vmatpush3.bf16.msra.mxu1 %v5159_v12 }
 0x551   : > { %5054 = vmatmul.mubr.msk.bf16.gmra.mxu0 %vm366_vm0, %v8447_v32  ;;  %v3199_v7 = vrot.slane %v8045_v30, 1  ;;  %v3201_v20 = vrot.slane %v8048_v34, 1  ;;  %v8497_v1 = vsel %vm1255_vm2, %v3304_v44, %v3306_v40  ;;  %v3195_v43 = vsel %vm1130_vm3, %v3193_v52, %v3194_v36 }
 0x552   : > { %5057 = vmatprep.mubr.msk.bf16.mxu0 %vm366_vm0, %v8477_v38  ;;  %3637 = vrot.lane.b32.xlu1 %v8458_v42, %s9343_s21  ;;  %v3197_v28 = vsel %vm1130_vm3, %v3194_v36, %v3196_v0  ;;  %v3203_v30 = vrot.slane %v8082_v26, 1  ;;  %v3204_v59 = vrot.slane %v8086_v35, 1  ;;  %v3206_v19 = vrot.slane %v8089_v4, 1  ;;  %v5160_v35 = vld [vmem:[%s9190_s7 + $0x48] sm:$0xff]  }
 0x553   : > { %3566 = vrot.lane.b32.xlu0 %v8311_v45, %s9356_s16  ;;  %v8504_v34 = vpack.c.bf16 %v3197_v28, %v3195_v43  ;;  %v3200_v27 = vsel %vm1130_vm3, %v3198_v49, %v3199_v7  ;;  %v3202_v62 = vsel %vm1130_vm3, %v3199_v7, %v3201_v20  ;;  %v3208_v0 = vrot.slane %v8119_v41, 1  ;;  %4875 = vmatprep.subr.bf16.mxu1 %v5160_v35  ;;  %v5421_v43 = vpop.eup %5420 }
 0x554   : > { %v8509_v44 = vpack.c.bf16 %v3202_v62, %v3200_v27  ;;  %v3209_v26 = vrot.slane %v8116_v5, 1  ;;  %v3205_v40 = vsel %vm1130_vm3, %v3203_v30, %v3204_v59  ;;  %v3211_v11 = vrot.slane %v8149_v24, 1  ;;  %v5161_v62 = vld [vmem:[%s9190_s7 + $0x8] sm:$0xff]  }
 0x555   : > { %v3213_v52 = vrot.slane %v8180_v3, 1  ;;  %v3214_v49 = vrot.slane %v8201_v10, 1  ;;  %v3207_v4 = vsel %vm1130_vm3, %v3204_v59, %v3206_v19  ;;  %v3216_v5 = vrot.slane %v8204_v14, 1  ;;  %4876 = vmatpush3.bf16.msra.mxu1 %v5161_v62 }
 0x556   : > { %3639 = vrot.lane.b32.xlu1 %v8467_v58, %s9343_s21  ;;  %v3210_v41 = vsel %vm1130_vm3, %v3208_v0, %v3209_v26  ;;  %v3218_v36 = vrot.slane %v8190_v33, 1  ;;  %v8529_v24 = vpack.c.bf16 %v3207_v4, %v3205_v40  ;;  %v3212_v3 = vsel %vm1130_vm3, %v3209_v26, %v3211_v11 }
 0x557   : > { %3568 = vrot.lane.b32.xlu0 %v8354_v29, %s9356_s16  ;;  %v3215_v10 = vsel %vm1130_vm3, %v3213_v52, %v3214_v49  ;;  %v3219_v7 = vrot.slane %v8219_v39, 1  ;;  %v8534_v20 = vpack.c.bf16 %v3212_v3, %v3210_v41  ;;  %v3217_v12 = vsel %vm1130_vm3, %v3214_v49, %v3216_v5 }
 0x558   : > { %v3221_v14 = vrot.slane %v8222_v31, 1  ;;  %v3223_v33 = vrot.slane %v8249_v51, 1  ;;  %v8541_v28 = vpack.c.bf16 %v3217_v12, %v3215_v10  ;;  %v3224_v27 = vrot.slane %v8260_v25, 1 }
 0x559   : > { %5058 = vmatmul.mubr.msk.bf16.gmra.mxu0 %vm366_vm0, %v8484_v15  ;;  %v3220_v30 = vsel %vm1130_vm3, %v3218_v36, %v3219_v7  ;;  %v3226_v39 = vrot.slane %v8263_v61, 1  ;;  %v2880_v59 = vadd.f32 1.0, %v5421_v43  ;;  %v3228_v51 = vrot.slane %v8282_v13, 1 }
 0x55a   : > { %v3222_v31 = vsel %vm1130_vm3, %v3219_v7, %v3221_v14  ;;  %v3229_v19 = vrot.slane %v8297_v46, 1  ;;  %v3225_v25 = vsel %vm1130_vm3, %v3223_v33, %v3224_v27  ;;  %v3231_v26 = vrot.slane %v8300_v37, 1  ;;  %v5162_v37 = vld [vmem:[%s9190_s7 + $0x40] sm:$0xff]   ;;  %v9372_v33 = vld [vmem:[#allocation34_spill] sm:$0xff] }
 0x55b   : > { %3570 = vrot.lane.b32.xlu0 %v8369_v21, %s9356_s16  ;;  %v8554_v0 = vpack.c.bf16 %v3222_v31, %v3220_v30  ;;  %v3227_v61 = vsel %vm1130_vm3, %v3224_v27, %v3226_v39  ;;  %5422 = vrcp.f32 %v2880_v59  ;;  %v3233_v13 = vrot.slane %v8314_v56, 1  ;;  %4877 = vmatprep.subr.bf16.mxu1 %v5162_v37  ;;  %v8608_v59 = vld [vmem:[%s9190_s7 + $0x88] sm:$0xff]  }
 0x55c   : > { %v8559_v40 = vpack.c.bf16 %v3227_v61, %v3225_v25  ;;  %v3230_v11 = vsel %vm1130_vm3, %v3228_v51, %v3229_v19  ;;  %v3232_v46 = vsel %vm1130_vm3, %v3229_v19, %v3231_v26  ;;  %v3234_v52 = vrot.slane %v8319_v18, 1  ;;  %v9373_v51 = vld [vmem:[#allocation21_spill] sm:$0xff]  ;;  %v9375_v25 = vld [vmem:[#allocation10_spill] sm:$0xff] }
 0x55d   : > { %v3236_v49 = vrot.slane %v8322_v53, 1  ;;  %v3238_v35 = vrot.slane %v8336_v23, 1  ;;  %v8570_v4 = vpack.c.bf16 %v3232_v46, %v3230_v11  ;;  %v3239_v41 = vrot.slane %v8357_v17, 1 }
 0x55e   : > { %v3241_v5 = vrot.slane %v8360_v22, 1  ;;  %v3243_v56 = vrot.slane %v8372_v48, 1  ;;  %v3235_v18 = vsel %vm1130_vm3, %v3233_v13, %v3234_v52  ;;  %v3244_v23 = vrot.slane %v8385_v16, 1 }
 0x55f   : > { %3572 = vrot.lane.b32.xlu0 %v8442_v60, %s9356_s16  ;;  %v3237_v53 = vsel %vm1130_vm3, %v3234_v52, %v3236_v49  ;;  %v3246_v36 = vrot.slane %v8388_v9, 1  ;;  %v3240_v17 = vsel %vm1130_vm3, %v3238_v35, %v3239_v41  ;;  %v3248_v48 = vrot.slane %v8403_v50, 1  ;;  %v5163_v9 = vld [vmem:[%s9190_s7] sm:$0xff]  }
 0x560   : > { %v8581_v3 = vpack.c.bf16 %v3237_v53, %v3235_v18  ;;  %v3242_v22 = vsel %vm1130_vm3, %v3239_v41, %v3241_v5  ;;  %v3245_v7 = vsel %vm1130_vm3, %v3243_v56, %v3244_v23  ;;  %v3249_v14 = vrot.slane %v8427_v8, 1  ;;  %4878 = vmatpush3.bf16.msra.mxu1 %v5163_v9  ;;  %v9380_v9 = vld [vmem:[#allocation17_spill] sm:$0xff] }
 0x561   : > { %v8586_v10 = vpack.c.bf16 %v3242_v22, %v3240_v17  ;;  %v3247_v12 = vsel %vm1130_vm3, %v3244_v23, %v3246_v36  ;;  %v3251_v43 = vrot.slane %v9372_v33, 1  ;;  %v3253_v30 = vrot.slane %v8408_v47, 1  ;;  %5065 = vmatprep.subr.bf16.mxu1 %v8608_v59  ;;  %v9381_v33 = vld [vmem:[#allocation20_spill] sm:$0xff] }
 0x562   : > { %v8594_v16 = vpack.c.bf16 %v3247_v12, %v3245_v7  ;;  %v3254_v50 = vrot.slane %v8398_v2, 1  ;;  %v3250_v27 = vsel %vm1130_vm3, %v3248_v48, %v3249_v14  ;;  %v3256_v39 = vrot.slane %v8416_v54, 1  ;;  %v9379_v12 = vld [vmem:[#allocation18_spill] sm:$0xff] }
 0x563   : > { %3574 = vrot.lane.b32.xlu0 %v8458_v42, %s9356_s16  ;;  %v3252_v8 = vsel %vm1130_vm3, %v3249_v14, %v3251_v43  ;;  %v3408_v47 = vpack.c.bf16 %v8497_v1, %v8474_v6  ;;  %v3056_v54 = vrot.slane %v8471_v63, 7  ;;  %v9374_v19 = vrot.slane %v9373_v51, 1  ;;  %v9378_v63 = vld [vmem:[#allocation5_spill] sm:$0xff]  ;;  %v9382_v43 = vld [vmem:[#allocation8_spill] sm:$0xff] }
 0x564   : > { %v3255_v62 = vsel %vm1130_vm3, %v3253_v30, %v3254_v50  ;;  %v8613_v2 = vpack.c.bf16 %v3252_v8, %v3250_v27  ;;  %v3257_v31 = vsel %vm1130_vm3, %v3254_v50, %v3256_v39  ;;  %v9376_v61 = vrot.slane %v9375_v25, 1  ;;  %v9383_v30 = vld [vmem:[#allocation12_spill] sm:$0xff] }
 0x565   : > { %v9377_v11 = vmov %v9374_v19  ;;  %v8627_v46 = vpack.c.bf16 %v3257_v31, %v3255_v62  ;;  %v3137_v49 = vsel %vm954_vm1, %v3056_v54, 0.0  ;;  %v9384_v39 = vld [vmem:[#allocation24_spill] sm:$0xff]  ;;  %v9385_v62 = vld [vmem:[#allocation26_spill] sm:$0xff] }
 0x566   : > { %v3185_v26 = vsel %vm1130_vm3, %v9376_v61, %v9374_v19  ;;  %v3187_v13 = vsel %vm1130_vm3, %v9377_v11, %v3186_v57  ;;  %v3429_v55 = vrot.slane %v3137_v49, 1  ;;  %v3437_v41 = vrot.slane %v3137_v49, 2  ;;  %v9386_v51 = vld [vmem:[#allocation28_spill] sm:$0xff]  ;;  %v9387_v11 = vld [vmem:[#allocation30_spill] sm:$0xff] }
 0x567   : > { %3581 = vrot.lane.b32.xlu0 %v3408_v47, %s9321_s28  ;;  %v8630_v1 = vpack.c.bf16 %v3187_v13, %v3185_v26 }
 0x568   : > { %v5423_v6 = vpop.eup %5422 }
 0x569   : > { %v2976_v52 = vmul.f32 %v5423_v6, %v9378_v63 }
 0x56b   : > { %3457 = vrot.lane.b32.xlu0 %v8630_v1, %s9321_s28  ;;  %v3055_v35 = vrot.slane %v2976_v52, 7  ;;  %v9388_v52 = vld [vmem:[#allocation31_spill] sm:$0xff] }
 0x56d   : > { %v3057_v37 = vsel %vm954_vm1, %v3055_v35, %v3056_v54  ;;  %v3121_v57 = vsel %vm954_vm1, 0.0, %v3055_v35 }
 0x56e   : > { %v8638_v5 = vpack.c.bf16 %v3057_v37, %v3121_v57  ;;  %v3426_v56 = vrot.slane %v3121_v57, 1  ;;  %v3427_v18 = vrot.slane %v3057_v37, 1  ;;  %v3434_v53 = vrot.slane %v3121_v57, 2 }
 0x56f   : > { %3502 = vrot.lane.b32.xlu0 %v3408_v47, %s9343_s21  ;;  %v3435_v23 = vrot.slane %v3057_v37, 2  ;;  %v9389_v37 = vld [vmem:[#allocation32_spill] sm:$0xff] }
 0x570   : > { %3641 = vrot.lane.b32.xlu1 %v8638_v5, %s9343_s21  ;;  %v3428_v36 = vsel %vm1130_vm3, %v3426_v56, %v3427_v18  ;;  %v3430_v17 = vsel %vm1130_vm3, %v3427_v18, %v3429_v55 }
 0x571   : > { %v8645_v22 = vpack.c.bf16 %v3430_v17, %v3428_v36  ;;  %v3436_v48 = vsel %vm1255_vm2, %v3434_v53, %v3435_v23  ;;  %v3438_v7 = vsel %vm1255_vm2, %v3435_v23, %v3437_v41  ;;  %v9390_v53 = vld [vmem:[#allocation33_spill] sm:$0xff] }
 0x572   : > { %v8651_v14 = vpack.c.bf16 %v3438_v7, %v3436_v48 }
 0x573   : > { %3459 = vrot.lane.b32.xlu0 %v9379_v12, %s9321_s28 }
 0x574   : > { %3644 = vrot.lane.b32.xlu1 %v9379_v12, %s9356_s16 }
 0x577   : > { %3504 = vrot.lane.b32.xlu0 %v9380_v9, %s9343_s21 }
 0x578   : > { %3583 = vrot.lane.b32.xlu1 %v9380_v9, %s9321_s28 }
 0x57b   : > { %3461 = vrot.lane.b32.xlu0 %v8504_v34, %s9321_s28 }
 0x57c   : > { %3646 = vrot.lane.b32.xlu1 %v8504_v34, %s9356_s16 }
 0x57f   : > { %3506 = vrot.lane.b32.xlu0 %v9381_v33, %s9343_s21 }
 0x580   : > { %3585 = vrot.lane.b32.xlu1 %v9381_v33, %s9321_s28 }
 0x583   : > { %3463 = vrot.lane.b32.xlu0 %v8509_v44, %s9321_s28 }
 0x584   : > { %3648 = vrot.lane.b32.xlu1 %v8509_v44, %s9356_s16 }
 0x587   : > { %3508 = vrot.lane.b32.xlu0 %v9382_v43, %s9343_s21 }
 0x588   : > { %3587 = vrot.lane.b32.xlu1 %v9382_v43, %s9321_s28 }
 0x58a   : > { %v8681_v50 = vpop.permute.xlu1 %3613 }
 0x58b   : > { %3465 = vrot.lane.b32.xlu0 %v8529_v24, %s9321_s28 }
 0x58c   : > { %3650 = vrot.lane.b32.xlu1 %v8529_v24, %s9356_s16 }
 0x58f   : > { %3510 = vrot.lane.b32.xlu0 %v9383_v30, %s9343_s21 }
 0x590   : > { %3589 = vrot.lane.b32.xlu1 %v9383_v30, %s9321_s28 }
 0x592   : > { %v8689_v27 = vpop.permute.xlu1 %3615 }
 0x593   : > { %3467 = vrot.lane.b32.xlu0 %v8534_v20, %s9321_s28 }
 0x594   : > { %3652 = vrot.lane.b32.xlu1 %v8534_v20, %s9356_s16 }
 0x597   : > { %3512 = vrot.lane.b32.xlu0 %v9384_v39, %s9343_s21  ;;  %v8697_v8 = vpop.permute.xlu1 %3617 }
 0x598   : > { %3591 = vrot.lane.b32.xlu1 %v9384_v39, %s9321_s28 }
 0x59b   : > { %3469 = vrot.lane.b32.xlu0 %v8541_v28, %s9321_s28 }
 0x59c   : > { %3654 = vrot.lane.b32.xlu1 %v8541_v28, %s9356_s16 }
 0x59d   : > { %v8707_v31 = vpop.permute.xlu1 %3619 }
 0x59f   : > { %3514 = vrot.lane.b32.xlu0 %v9385_v62, %s9343_s21 }
 0x5a0   : > { %3593 = vrot.lane.b32.xlu1 %v9385_v62, %s9321_s28 }
 0x5a1   : > { %v8705_v47 = vpop.permute.xlu0 %3548 }
 0x5a2   : > { %v8717_v19 = vpop.permute.xlu1 %3621 }
 0x5a3   : > { %3471 = vrot.lane.b32.xlu0 %v8554_v0, %s9321_s28 }
 0x5a4   : > { %3656 = vrot.lane.b32.xlu1 %v8554_v0, %s9356_s16 }
 0x5a5   : > { %v8713_v54 = vpop.permute.xlu0 %3550 }
 0x5a7   : > { %3516 = vrot.lane.b32.xlu0 %v9386_v51, %s9343_s21 }
 0x5a8   : > { %3595 = vrot.lane.b32.xlu1 %v9386_v51, %s9321_s28  ;;  %v8729_v26 = vpop.permute.xlu1 %3623 }
 0x5a9   : > { %v8721_v25 = vpop.permute.xlu0 %3552 }
 0x5ab   : > { %3473 = vrot.lane.b32.xlu0 %v8559_v40, %s9321_s28 }
 0x5ac   : > { %3658 = vrot.lane.b32.xlu1 %v8559_v40, %s9356_s16  ;;  %v8739_v6 = vpop.permute.xlu1 %3625 }
 0x5ad   : > { %v8727_v61 = vpop.permute.xlu0 %3554 }
 0x5af   : > { %3518 = vrot.lane.b32.xlu0 %v9387_v11, %s9343_s21 }
 0x5b0   : > { %3597 = vrot.lane.b32.xlu1 %v9387_v11, %s9321_s28  ;;  %v8751_v35 = vpop.permute.xlu1 %3627 }
 0x5b1   : > { %v8735_v13 = vpop.permute.xlu0 %3556 }
 0x5b3   : > { %3475 = vrot.lane.b32.xlu0 %v8570_v4, %s9321_s28 }
 0x5b4   : > { %3660 = vrot.lane.b32.xlu1 %v8570_v4, %s9356_s16  ;;  %v8761_v57 = vpop.permute.xlu1 %3629 }
 0x5b5   : > { %v8743_v63 = vpop.permute.xlu0 %3558 }
 0x5b7   : > { %3520 = vrot.lane.b32.xlu0 %v9388_v52, %s9343_s21 }
 0x5b8   : > { %3599 = vrot.lane.b32.xlu1 %v9388_v52, %s9321_s28  ;;  %v8771_v56 = vpop.permute.xlu1 %3631 }
 0x5b9   : > { %v8749_v49 = vpop.permute.xlu0 %3560 }
 0x5bb   : > { %3477 = vrot.lane.b32.xlu0 %v8581_v3, %s9321_s28 }
 0x5bc   : > { %3662 = vrot.lane.b32.xlu1 %v8581_v3, %s9356_s16  ;;  %v8781_v36 = vpop.permute.xlu1 %3633 }
 0x5bd   : > { %v8757_v55 = vpop.permute.xlu0 %3562 }
 0x5bf   : > { %3522 = vrot.lane.b32.xlu0 %v9389_v37, %s9343_s21 }
 0x5c0   : > { %3601 = vrot.lane.b32.xlu1 %v9389_v37, %s9321_s28  ;;  %v8793_v48 = vpop.permute.xlu1 %3635 }
 0x5c1   : > { %v8765_v41 = vpop.permute.xlu0 %3564 }
 0x5c3   : > { %3479 = vrot.lane.b32.xlu0 %v8586_v10, %s9321_s28 }
 0x5c4   : > { %3664 = vrot.lane.b32.xlu1 %v8586_v10, %s9356_s16  ;;  %v8803_v33 = vpop.permute.xlu1 %3637 }
 0x5c5   : > { %v8773_v18 = vpop.permute.xlu0 %3566 }
 0x5c7   : > { %3524 = vrot.lane.b32.xlu0 %v9390_v53, %s9343_s21 }
 0x5c8   : > { %3603 = vrot.lane.b32.xlu1 %v9390_v53, %s9321_s28  ;;  %v8813_v43 = vpop.permute.xlu1 %3639  ;;  %v9391_v53 = vld [vmem:[#allocation13_spill] sm:$0xff] }
 0x5c9   : > { %v8779_v23 = vpop.permute.xlu0 %3568 }
 0x5cb   : > { %3481 = vrot.lane.b32.xlu0 %v8594_v16, %s9321_s28 }
 0x5cc   : > { %3666 = vrot.lane.b32.xlu1 %v8594_v16, %s9356_s16 }
 0x5cd   : > { %v8787_v17 = vpop.permute.xlu0 %3570 }
 0x5cf   : > { %3526 = vrot.lane.b32.xlu0 %v8447_v32, %s9343_s21 }
 0x5d0   : > { %3605 = vrot.lane.b32.xlu1 %v8447_v32, %s9321_s28 }
 0x5d1   : > { %v8795_v7 = vpop.permute.xlu0 %3572 }
 0x5d3   : > { %3483 = vrot.lane.b32.xlu0 %v8613_v2, %s9321_s28 }
 0x5d4   : > { %3668 = vrot.lane.b32.xlu1 %v8613_v2, %s9356_s16 }
 0x5d5   : > { %v8801_v9 = vpop.permute.xlu0 %3574 }
 0x5d7   : > { %3528 = vrot.lane.b32.xlu0 %v8477_v38, %s9343_s21 }
 0x5d8   : > { %3607 = vrot.lane.b32.xlu1 %v8477_v38, %s9321_s28 }
 0x5d9   : > { %v3582_v32 = vpop.permute.xlu0 %3581 }
 0x5da   : > { %v3799_v38 = vsel %vm366_vm0, %v8630_v1, %v3582_v32 }
 0x5db   : > { %3576 = vrot.lane.b32.xlu0 %v8467_v58, %s9356_s16  ;;  %v3846_v52 = vsel %vm1690_vm4, %v3799_v38, %v8681_v50  ;;  %v3750_v58 = vsel %vm1723_vm5, %v9391_v53, %v8705_v47  ;;  %v5425_v50 = vld [vmem:[%s9190_s7 + $0x80] sm:$0xff]   ;;  %v9392_v38 = vld [vmem:[#allocation22_spill] sm:$0xff] }
 0x5dc   : > { %3670 = vrot.lane.b32.xlu1 %v8627_v46, %s9356_s16 }
 0x5dd   : > { %v3458_v30 = vpop.permute.xlu0 %3457 }
 0x5de   : > { %v3676_v47 = vsel %vm366_vm0, %v9392_v38, %v3458_v30 }
 0x5df   : > { %3485 = vrot.lane.b32.xlu0 %v8627_v46, %s9321_s28 }
 0x5e0   : > { %3609 = vrot.lane.b32.xlu1 %v8484_v15, %s9321_s28 }
 0x5e1   : > { %v3503_v39 = vpop.permute.xlu0 %3502 }
 0x5e2   : > { %v8819_v62 = vpop.permute.xlu1 %3641 }
 0x5e3   : > { %3578 = vrot.lane.b32.xlu0 %v8638_v5, %s9356_s16 }
 0x5e4   : > { %3672 = vrot.lane.b32.xlu1 %v8645_v22, %s9356_s16  ;;  %s5462_s16 = sshll.u32 %s5526_s22, 4  ;;  %s5463_s16 = int_to_ptr.vmem [resolvable:$false] %s5462_s16 }
 0x5e5   : > { %v3460_v51 = vpop.permute.xlu0 %3459  ;;  %s5464_s23 = scalar_lea.vmem %s5463_s16, 8192 }
 0x5e6   : > { %v3645_v11 = vpop.permute.xlu1 %3644 }
 0x5e7   : > { %v3877_v37 = vsel %vm1723_vm5, %v3846_v52, %v3645_v11 }
 0x5e8   : > { %3611 = vrot.lane.b32.xlu1 %v8651_v14, %s9321_s28  ;;  %4151 = vmatprep.mubr.bf16.mxu1 %v3877_v37  ;;  %s323_s28 = sand.u32 1, %s5510_s10  }
 0x5e9   : > { %v3505_v5 = vpop.permute.xlu0 %3504  ;;  %4152 = vmatmul.mubr.bf16.vlgmr.msra.gmra.mxu1 %v3750_v58  ;;  %v3720_v58 = vsel %vm1690_vm4, %v3676_v47, %v3503_v39  ;;  %s4585_s26 = sshll.u32 %s323_s28, 8  ;;  %s9143_s13 = scalar_lea.sflag [#allocation3], %s323_s28 }
 0x5ea   : > { %5067 = vmatpush3.bf16.msra.mxu1 %v8608_v59  ;;  %v3584_v1 = vpop.permute.xlu1 %3583  ;;  %v3753_v37 = vsel %vm1723_vm5, %v3720_v58, %v8713_v54  ;;  %s9005_s0 = scalar_lea.vmem [#allocation2], %s4585_s26 }
 0x5eb   : > { %v3802_v32 = vsel %vm366_vm0, %v9379_v12, %v3584_v1  ;;  %5066 = vmatprep.subr.bf16.mxu1 %v5425_v50  ;;  %v9393_v1 = vld [vmem:[#allocation14_spill] sm:$0xff]  ;;  %s4519_s17 = sshll.u32 %s9005_s0, 4  ;;  %s9134_s17 = int_to_ptr.vmem [resolvable:$true] %s4519_s17 }
 0x5ec   : > { %3530 = vrot.lane.b32.xlu1 %v8484_v15, %s9343_s21  ;;  %v3848_v59 = vsel %vm1690_vm4, %v3802_v32, %v8689_v27  ;;  %v3679_v39 = vsel %vm366_vm0, %v9393_v1, %v3460_v51  ;;  %v9394_v51 = vld [vmem:[#allocation19_spill] sm:$0xff]  ;;  %s5458_s27 = scalar_lea.vmem %s9134_s17, 4096  ;;  %p5465_p0 = scmp.lt.s32.totalorder %s9134_s17, %s5463_s16 }
 0x5ed   : > { %v3462_v11 = vpop.permute.xlu0 %3461  ;;  %v3722_v47 = vsel %vm1690_vm4, %v3679_v39, %v3505_v5  ;;  %p5459_p11 = scmp.ne.s32.totalorder %s9134_s17, %s5458_s27  ;;  %p5466_p1 = scmp.lt.s32.totalorder %s5464_s23, %s5458_s27 }
 0x5ee   : > { %v3647_v52 = vpop.permute.xlu1 %3646  ;;  %5068 = vmatpush3.bf16.msra.mxu1 %v5425_v50  ;;  %v3756_v54 = vsel %vm1723_vm5, %v3722_v47, %v8721_v25 }
 0x5ef   : > { %v3880_v12 = vsel %vm1723_vm5, %v3848_v59, %v3647_v52  ;;  %v3682_v59 = vsel %vm366_vm0, %v9394_v51, %v3462_v11  ;;  %v9395_v11 = vld [vmem:[#allocation7_spill] sm:$0xff]  ;;  %p5460_p12 = pnand %p5459_p11, %p5617_p5  ;;  %p5467_p2 = por %p5466_p1, %p5465_p0 }
 0x5f0   : > { %4159 = vmatprep.mubr.bf16.mxu1 %v3880_v12 }
 0x5f1   : > { %v3507_v53 = vpop.permute.xlu0 %3506  ;;  %4160 = vmatmul.mubr.bf16.gmra.mxu1 %v3753_v37  ;;  %p5461_p13 = pneg %p5460_p12 }
 0x5f2   : > { %v3586_v30 = vpop.permute.xlu1 %3585  ;;  %v3724_v12 = vsel %vm1690_vm4, %v3682_v59, %v3507_v53 }
 0x5f3   : > { %v3805_v15 = vsel %vm366_vm0, %v8504_v34, %v3586_v30  ;;  %v3759_v25 = vsel %vm1723_vm5, %v3724_v12, %v8727_v61  ;;  %p5468_p3 = pnand %p5467_p2, %p5461_p13 }
 0x5f4   : > { %v3850_v32 = vsel %vm1690_vm4, %v3805_v15, %v8697_v8 }
 0x5f5   : > { %v3464_v38 = vpop.permute.xlu0 %3463 }
 0x5f6   : > { %v3649_v27 = vpop.permute.xlu1 %3648  ;;  %v3685_v39 = vsel %vm366_vm0, %v9395_v11, %v3464_v38  ;;  %v9396_v38 = vld [vmem:[#allocation9_spill] sm:$0xff] }
 0x5f7   : > { %v3883_v50 = vsel %vm1723_vm5, %v3850_v32, %v3649_v27 }
 0x5f8   : > { %4167 = vmatprep.mubr.bf16.mxu1 %v3883_v50 }
 0x5f9   : > { %v3509_v58 = vpop.permute.xlu0 %3508  ;;  %4168 = vmatmul.mubr.bf16.gmra.mxu1 %v3756_v54 }
 0x5fa   : > { %v3588_v52 = vpop.permute.xlu1 %3587  ;;  %v3726_v47 = vsel %vm1690_vm4, %v3685_v39, %v3509_v58  ;;  %v9398_v39 = vld [vmem:[#allocation25_spill] sm:$0xff] }
 0x5fb   : > { %v3808_v34 = vsel %vm366_vm0, %v8509_v44, %v3588_v52  ;;  %v3762_v61 = vsel %vm1723_vm5, %v3726_v47, %v8735_v13 }
 0x5fc   : > { %v3852_v8 = vsel %vm1690_vm4, %v3808_v34, %v8707_v31 }
 0x5fd   : > { %v3466_v5 = vpop.permute.xlu0 %3465 }
 0x5fe   : > { %v3651_v37 = vpop.permute.xlu1 %3650  ;;  %v3688_v52 = vsel %vm366_vm0, %v9396_v38, %v3466_v5  ;;  %v9397_v5 = vld [vmem:[#allocation23_spill] sm:$0xff] }
 0x5ff   : > { %v3886_v30 = vsel %vm1723_vm5, %v3852_v8, %v3651_v37 }
 0x600   : > { %4175 = vmatprep.mubr.bf16.mxu1 %v3886_v30 }
 0x601   : > { %v3511_v15 = vpop.permute.xlu0 %3510  ;;  %4176 = vmatmul.mubr.bf16.gmra.mxu1 %v3759_v25 }
 0x602   : > { %v3590_v1 = vpop.permute.xlu1 %3589  ;;  %v3728_v34 = vsel %vm1690_vm4, %v3688_v52, %v3511_v15 }
 0x603   : > { %v3811_v44 = vsel %vm366_vm0, %v8529_v24, %v3590_v1  ;;  %v3765_v13 = vsel %vm1723_vm5, %v3728_v34, %v8743_v63 }
 0x604   : > { %v3854_v31 = vsel %vm1690_vm4, %v3811_v44, %v8717_v19 }
 0x605   : > { %v3468_v53 = vpop.permute.xlu0 %3467 }
 0x606   : > { %v3653_v27 = vpop.permute.xlu1 %3652  ;;  %v3691_v8 = vsel %vm366_vm0, %v9397_v5, %v3468_v53 }
 0x607   : > { %v3889_v32 = vsel %vm1723_vm5, %v3854_v31, %v3653_v27 }
 0x608   : > { %4183 = vmatprep.mubr.bf16.mxu1 %v3889_v32 }
 0x609   : > { %v3513_v50 = vpop.permute.xlu0 %3512  ;;  %4184 = vmatmul.mubr.bf16.gmra.mxu1 %v3762_v61 }
 0x60a   : > { %v3592_v54 = vpop.permute.xlu1 %3591  ;;  %v3730_v25 = vsel %vm1690_vm4, %v3691_v8, %v3513_v50 }
 0x60b   : > { %v3814_v24 = vsel %vm366_vm0, %v8534_v20, %v3592_v54  ;;  %v3768_v63 = vsel %vm1723_vm5, %v3730_v25, %v8749_v49  ;;  %v9399_v54 = vld [vmem:[#allocation27_spill] sm:$0xff] }
 0x60c   : > { %v3856_v19 = vsel %vm1690_vm4, %v3814_v24, %v8729_v26 }
 0x60d   : > { %v3470_v58 = vpop.permute.xlu0 %3469 }
 0x60e   : > { %v3655_v51 = vpop.permute.xlu1 %3654  ;;  %v3694_v53 = vsel %vm366_vm0, %v9398_v39, %v3470_v58 }
 0x60f   : > { %v3892_v59 = vsel %vm1723_vm5, %v3856_v19, %v3655_v51 }
 0x610   : > { %4191 = vmatprep.mubr.bf16.mxu1 %v3892_v59  ;;  %v9400_v59 = vld [vmem:[#allocation29_spill] sm:$0xff] }
 0x611   : > { %v3515_v12 = vpop.permute.xlu0 %3514  ;;  %4192 = vmatmul.mubr.bf16.gmra.mxu1 %v3765_v13 }
 0x612   : > { %v3594_v37 = vpop.permute.xlu1 %3593  ;;  %v3732_v27 = vsel %vm1690_vm4, %v3694_v53, %v3515_v12 }
 0x613   : > { %v3817_v20 = vsel %vm366_vm0, %v8541_v28, %v3594_v37  ;;  %v3771_v49 = vsel %vm1723_vm5, %v3732_v27, %v8757_v55 }
 0x614   : > { %v3858_v26 = vsel %vm1690_vm4, %v3817_v20, %v8739_v6 }
 0x615   : > { %v3472_v30 = vpop.permute.xlu0 %3471 }
 0x616   : > { %v3657_v15 = vpop.permute.xlu1 %3656  ;;  %v3697_v24 = vsel %vm366_vm0, %v9399_v54, %v3472_v30 }
 0x617   : > { %v3895_v1 = vsel %vm1723_vm5, %v3858_v26, %v3657_v15 }
 0x618   : > { %4199 = vmatprep.mubr.bf16.mxu1 %v3895_v1 }
 0x619   : > { %v3517_v44 = vpop.permute.xlu0 %3516  ;;  %4200 = vmatmul.mubr.bf16.gmra.mxu1 %v3768_v63 }
 0x61a   : > { %v3596_v11 = vpop.permute.xlu1 %3595  ;;  %v3734_v52 = vsel %vm1690_vm4, %v3697_v24, %v3517_v44 }
 0x61b   : > { %v3820_v28 = vsel %vm366_vm0, %v8554_v0, %v3596_v11  ;;  %v3774_v55 = vsel %vm1723_vm5, %v3734_v52, %v8765_v41 }
 0x61c   : > { %v3860_v6 = vsel %vm1690_vm4, %v3820_v28, %v8751_v35 }
 0x61d   : > { %v3474_v47 = vpop.permute.xlu0 %3473 }
 0x61e   : > { %v3659_v31 = vpop.permute.xlu1 %3658  ;;  %v3700_v13 = vsel %vm366_vm0, %v9400_v59, %v3474_v47  ;;  %v9402_v59 = vld [vmem:[#allocation16_spill] sm:$0xff] }
 0x61f   : > { %v3898_v32 = vsel %vm1723_vm5, %v3860_v6, %v3659_v31 }
 0x620   : > { %4207 = vmatprep.mubr.bf16.mxu1 %v3898_v32 }
 0x621   : > { %v3519_v61 = vpop.permute.xlu0 %3518  ;;  %4208 = vmatmul.mubr.bf16.gmra.mxu1 %v3771_v49 }
 0x622   : > { %v3598_v50 = vpop.permute.xlu1 %3597  ;;  %v3736_v37 = vsel %vm1690_vm4, %v3700_v13, %v3519_v61 }
 0x623   : > { %v3823_v0 = vsel %vm366_vm0, %v8559_v40, %v3598_v50  ;;  %v3777_v41 = vsel %vm1723_vm5, %v3736_v37, %v8773_v18 }
 0x624   : > { %v3862_v35 = vsel %vm1690_vm4, %v3823_v0, %v8761_v57 }
 0x625   : > { %v3476_v38 = vpop.permute.xlu0 %3475 }
 0x626   : > { %v3661_v58 = vpop.permute.xlu1 %3660  ;;  %v3703_v25 = vsel %vm366_vm0, %v8311_v45, %v3476_v38 }
 0x627   : > { %v3901_v34 = vsel %vm1723_vm5, %v3862_v35, %v3661_v58 }
 0x628   : > { %4215 = vmatprep.mubr.bf16.mxu1 %v3901_v34 }
 0x629   : > { %v3521_v51 = vpop.permute.xlu0 %3520  ;;  %4216 = vmatmul.mubr.bf16.gmra.mxu1 %v3774_v55 }
 0x62a   : > { %v3600_v19 = vpop.permute.xlu1 %3599  ;;  %v3738_v26 = vsel %vm1690_vm4, %v3703_v25, %v3521_v51 }
 0x62b   : > { %v3826_v40 = vsel %vm366_vm0, %v8570_v4, %v3600_v19  ;;  %v3780_v18 = vsel %vm1723_vm5, %v3738_v26, %v8779_v23 }
 0x62c   : > { %v3864_v57 = vsel %vm1690_vm4, %v3826_v40, %v8771_v56  ;;  %v9401_v40 = vld [vmem:[#allocation11_spill] sm:$0xff] }
 0x62d   : > { %v3478_v12 = vpop.permute.xlu0 %3477 }
 0x62e   : > { %v3663_v20 = vpop.permute.xlu1 %3662  ;;  %v3706_v45 = vsel %vm366_vm0, %v8354_v29, %v3478_v12 }
 0x62f   : > { %v3904_v5 = vsel %vm1723_vm5, %v3864_v57, %v3663_v20 }
 0x630   : > { %4223 = vmatprep.mubr.bf16.mxu1 %v3904_v5 }
 0x631   : > { %v3523_v8 = vpop.permute.xlu0 %3522  ;;  %4224 = vmatmul.mubr.bf16.gmra.mxu1 %v3777_v41  ;;  %v5035_v41 = vpop.f32.mrf.mxu0 }
 0x632   : > { %v3602_v30 = vpop.permute.xlu1 %3601  ;;  %v3740_v39 = vsel %vm1690_vm4, %v3706_v45, %v3523_v8 }
 0x633   : > { %v3829_v4 = vsel %vm366_vm0, %v8581_v3, %v3602_v30  ;;  %v3783_v23 = vsel %vm1723_vm5, %v3740_v39, %v8787_v17  ;;  %v4314_v30 = vpop.f32.mrf.mxu0 }
 0x634   : > { %v3866_v56 = vsel %vm1690_vm4, %v3829_v4, %v8781_v36  ;;  %v8998_v4 = vld [vmem:[%s9191_s8] ss:$0 sm:$0xff] }
 0x635   : > { %v3480_v15 = vpop.permute.xlu0 %3479 }
 0x636   : > { %v3665_v1 = vpop.permute.xlu1 %3664  ;;  %v3709_v29 = vsel %vm366_vm0, %v8369_v21, %v3480_v15 }
 0x637   : > { %v3907_v63 = vsel %vm1723_vm5, %v3866_v56, %v3665_v1  ;;  %v5036_v1 = vpop.f32.mrf.mxu0 }
 0x638   : > { %4231 = vmatprep.mubr.bf16.mxu1 %v3907_v63 }
 0x639   : > { %v3525_v44 = vpop.permute.xlu0 %3524  ;;  %4232 = vmatmul.mubr.bf16.gmra.mxu1 %v3780_v18 }
 0x63a   : > { %v3604_v11 = vpop.permute.xlu1 %3603  ;;  %v3742_v6 = vsel %vm1690_vm4, %v3709_v29, %v3525_v44 }
 0x63b   : > { %v3832_v3 = vsel %vm366_vm0, %v8586_v10, %v3604_v11  ;;  %v3786_v17 = vsel %vm1723_vm5, %v3742_v6, %v8795_v7  ;;  %v5426_v11 = vld [vmem:[%s5632_s25] sm:$0xff] }
 0x63c   : > { %v3868_v36 = vsel %vm1690_vm4, %v3832_v3, %v8793_v48 }
 0x63d   : > { %v3482_v28 = vpop.permute.xlu0 %3481 }
 0x63e   : > { %v3667_v53 = vpop.permute.xlu1 %3666  ;;  %v3712_v21 = vsel %vm366_vm0, %v8442_v60, %v3482_v28  ;;  %v4317_v28 = vpop.f32.mrf.mxu0 }
 0x63f   : > { %v3910_v47 = vsel %vm1723_vm5, %v3868_v36, %v3667_v53 }
 0x640   : > { %4239 = vmatprep.mubr.bf16.mxu1 %v3910_v47 }
 0x641   : > { %v3527_v27 = vpop.permute.xlu0 %3526  ;;  %4240 = vmatmul.mubr.bf16.gmra.mxu1 %v3783_v23  ;;  %v5427_v23 = vld [vmem:[%s5632_s25 + $0x8] sm:$0xff] }
 0x642   : > { %v3606_v31 = vpop.permute.xlu1 %3605  ;;  %v3744_v54 = vsel %vm1690_vm4, %v3712_v21, %v3527_v27 }
 0x643   : > { %v3835_v10 = vsel %vm366_vm0, %v8594_v16, %v3606_v31  ;;  %v3789_v7 = vsel %vm1723_vm5, %v3744_v54, %v8801_v9 }
 0x644   : > { %v3870_v48 = vsel %vm1690_vm4, %v3835_v10, %v8803_v33  ;;  %v5039_v10 = vpop.f32.mrf.mxu0 }
 0x645   : > { %v3484_v32 = vpop.permute.xlu0 %3483 }
 0x646   : > { %v3669_v49 = vpop.permute.xlu1 %3668  ;;  %v3715_v60 = vsel %vm366_vm0, %v8458_v42, %v3484_v32 }
 0x647   : > { %v3913_v61 = vsel %vm1723_vm5, %v3870_v48, %v3669_v49  ;;  %v5428_v48 = vld [vmem:[%s5632_s25 + $0x10] sm:$0xff] }
 0x648   : > { %4247 = vmatprep.mubr.bf16.mxu1 %v3913_v61 }
 0x649   : > { %4248 = vmatmul.mubr.bf16.gmra.mxu1 %v3786_v17  ;;  %v3529_v0 = vpop.permute.xlu0 %3528 }
 0x64a   : > { %v3608_v50 = vpop.permute.xlu1 %3607  ;;  %v3746_v35 = vsel %vm1690_vm4, %v3715_v60, %v3529_v0 }
 0x64b   : > { %v3838_v16 = vsel %vm366_vm0, %v8613_v2, %v3608_v50  ;;  %v4330_v50 = vpop.f32.mrf.mxu0 }
 0x64c   : > { %v3872_v33 = vsel %vm1690_vm4, %v3838_v16, %v8813_v43 }
 0x64d   : > { %v3577_v52 = vpop.permute.xlu0 %3576 }
 0x64e   : > { %v3671_v24 = vpop.permute.xlu1 %3670  ;;  %v3792_v55 = vsel %vm1723_vm5, %v3746_v35, %v3577_v52  ;;  %v5430_v35 = vld [vmem:[%s5632_s25 + $0x20] sm:$0xff] }
 0x64f   : > { %v3916_v38 = vsel %vm1723_vm5, %v3872_v33, %v3671_v24  ;;  %v5429_v24 = vld [vmem:[%s5632_s25 + $0x18] sm:$0xff] }
 0x650   : > { %4255 = vmatprep.mubr.bf16.mxu1 %v3916_v38 }
 0x651   : > { %4256 = vmatmul.mubr.bf16.gmra.mxu1 %v3789_v7  ;;  %v3486_v9 = vpop.permute.xlu0 %3485  ;;  %v5040_v7 = vpop.f32.mrf.mxu0 }
 0x652   : > { %v3610_v58 = vpop.permute.xlu1 %3609 }
 0x653   : > { %v3841_v2 = vsel %vm366_vm0, %v8627_v46, %v3610_v58 }
 0x654   : > { %v3874_v43 = vsel %vm1690_vm4, %v3841_v2, %v8819_v62  ;;  %v9403_v62 = vld [vmem:[#allocation35_spill] sm:$0xff] }
 0x655   : > { %v3579_v12 = vpop.permute.xlu0 %3578  ;;  %v3718_v37 = vsel %vm366_vm0, %v9403_v62, %v3486_v9 }
 0x656   : > { %v3673_v34 = vpop.permute.xlu1 %3672 }
 0x657   : > { %v3919_v51 = vsel %vm1723_vm5, %v3874_v43, %v3673_v34 }
 0x658   : > { %4263 = vmatprep.mubr.bf16.mxu1 %v3919_v51 }
 0x659   : > { %4264 = vmatmul.mubr.bf16.gmra.mxu1 %v3792_v55  ;;  %v4333_v55 = vpop.f32.mrf.mxu0 }
 0x65a   : > { %v3612_v19 = vpop.permute.xlu1 %3611 }
 0x65b   : > { %v3844_v46 = vsel %vm366_vm0, %v8645_v22, %v3612_v19  ;;  %v9404_v22 = vld [vmem:[#allocation6_spill] sm:$0xff] }
 0x65c   : > { %v3875_v42 = vsel %vm1690_vm4, %v3844_v46, %v9401_v40  ;;  %v5431_v40 = vld [vmem:[%s5632_s25 + $0x28] sm:$0xff] }
 0x65d   : > { %v3921_v13 = vsel %vm1723_vm5, %v3875_v42, %v9402_v59 }
 0x65e   : > { %v3531_v20 = vpop.permute.xlu1 %3530  ;;  %4271 = vmatprep.mubr.bf16.mxu1 %v3921_v13  ;;  %v5043_v13 = vpop.f32.mrf.mxu0 }
 0x65f   : > { %v3748_v57 = vsel %vm1690_vm4, %v3718_v37, %v3531_v20 }
 0x660   : > { %v3795_v5 = vsel %vm1723_vm5, %v3748_v57, %v3579_v12  ;;  %v5432_v57 = vld [vmem:[%s5632_s25 + $0x30] sm:$0xff] }
 0x661   : > { %4272 = vmatmul.mubr.bf16.gmra.mxu1 %v3795_v5 }
 0x662   : > { %5061 = vmatprep.mubr.msk.bf16.mxu1 %vm366_vm0, %v8651_v14 }
 0x669   : > { %5062 = vmatmul.mubr.msk.bf16.vlgmr.msra.gmra.mxu1 %vm366_vm0, %v9404_v22 }
 0x6a9   : > { %v4879_v8 = vpop.f32.mrf.mxu1 }
 0x6ab   : > { %v4880_v25 = vpop.f32.mrf.mxu1 }
 0x6ac   : > { %v4881_v15 = vadd.f32 %v4880_v25, %v4879_v8 }
 0x6ad   : > { %v4882_v26 = vpop.f32.mrf.mxu1 }
 0x6ae   : > { %v4154_v14 = vadd.f32 %v4881_v15, %v8998_v4 }
 0x6af   : > { %v4883_v56 = vpop.f32.mrf.mxu1 }
 0x6b0   : > { %v4315_v63 = vadd.f32 %v4314_v30, %v4154_v14  ;;  %v4884_v18 = vadd.f32 %v4883_v56, %v4882_v26  ;;  %v5433_v26 = vld [vmem:[%s5632_s25 + $0x38] sm:$0xff] }
 0x6b1   : > { %v4885_v44 = vpop.f32.mrf.mxu1 }
 0x6b2   : > { %v4441_v3 = vadd.f32 %v5426_v11, %v4315_v63  ;;  %v4157_v45 = vadd.f32 %v4884_v18, %v8998_v4 }
 0x6b3   : > { %v4886_v39 = vpop.f32.mrf.mxu1 }
 0x6b4   : > { %4473 = vst.msk [vmem:[%s9005_s0] sm:$0xff] %vm366_vm0, %v4441_v3  ;;  %v4318_v53 = vadd.f32 %v4317_v28, %v4157_v45  ;;  %v4887_v36 = vadd.f32 %v4886_v39, %v4885_v44  ;;  %v5434_v3 = vld [vmem:[%s5632_s25 + $0x40] sm:$0xff] }
 0x6b5   : > { %v4888_v47 = vpop.f32.mrf.mxu1 }
 0x6b6   : > { %v4442_v27 = vadd.f32 %v5427_v23, %v4318_v53  ;;  %v4162_v31 = vadd.f32 %v4887_v36, %v8998_v4 }
 0x6b7   : > { %v4889_v29 = vpop.f32.mrf.mxu1 }
 0x6b8   : > { %4474 = vst.msk [vmem:[%s9005_s0 + $0x8] sm:$0xff] %vm366_vm0, %v4442_v27  ;;  %v4323_v6 = vadd.f32 %v5035_v41, %v4162_v31  ;;  %v4890_v32 = vadd.f32 %v4889_v29, %v4888_v47  ;;  %v4346_v41 = vpop.f32.mrf.mxu0  ;;  %v5435_v27 = vld [vmem:[%s5632_s25 + $0x48] sm:$0xff] }
 0x6b9   : > { %v4891_v49 = vpop.f32.mrf.mxu1 }
 0x6ba   : > { %v4443_v61 = vadd.f32 %v5428_v48, %v4323_v6  ;;  %v4165_v17 = vadd.f32 %v4890_v32, %v8998_v4  ;;  %v5044_v56 = vpop.f32.mrf.mxu0 }
 0x6bb   : > { %v4892_v16 = vpop.f32.mrf.mxu1 }
 0x6bc   : > { %4475 = vst.msk [vmem:[%s9005_s0 + $0x10] sm:$0xff] %vm366_vm0, %v4443_v61  ;;  %v4326_v0 = vadd.f32 %v5036_v1, %v4165_v17  ;;  %v4893_v21 = vadd.f32 %v4892_v16, %v4891_v49  ;;  %v4349_v39 = vpop.f32.mrf.mxu0  ;;  %v5436_v61 = vld [vmem:[%s5632_s25 + $0x50] sm:$0xff] }
 0x6bd   : > { %v4894_v54 = vpop.f32.mrf.mxu1 }
 0x6be   : > { %v4444_v33 = vadd.f32 %v5429_v24, %v4326_v0  ;;  %v4170_v38 = vadd.f32 %v4893_v21, %v8998_v4  ;;  %v5047_v29 = vpop.f32.mrf.mxu0 }
 0x6bf   : > { %v4895_v52 = vpop.f32.mrf.mxu1 }
 0x6c0   : > { %4476 = vst.msk [vmem:[%s9005_s0 + $0x18] sm:$0xff] %vm366_vm0, %v4444_v33  ;;  %v4331_v58 = vadd.f32 %v4330_v50, %v4170_v38  ;;  %v4896_v2 = vadd.f32 %v4895_v52, %v4894_v54  ;;  %v4362_v16 = vpop.f32.mrf.mxu0  ;;  %v5437_v33 = vld [vmem:[%s5632_s25 + $0x58] sm:$0xff] }
 0x6c1   : > { %v4897_v60 = vpop.f32.mrf.mxu1 }
 0x6c2   : > { %v4445_v34 = vadd.f32 %v5430_v35, %v4331_v58  ;;  %v4173_v43 = vadd.f32 %v4896_v2, %v8998_v4  ;;  %v5048_v52 = vpop.f32.mrf.mxu0 }
 0x6c3   : > { %v4898_v51 = vpop.f32.mrf.mxu1 }
 0x6c4   : > { %4477 = vst.msk [vmem:[%s9005_s0 + $0x20] sm:$0xff] %vm366_vm0, %v4445_v34  ;;  %v4334_v9 = vadd.f32 %v4333_v55, %v4173_v43  ;;  %v4899_v19 = vadd.f32 %v4898_v51, %v4897_v60  ;;  %v5438_v34 = vld [vmem:[%s5632_s25 + $0x60] sm:$0xff]  ;;  %v4365_v51 = vpop.f32.mrf.mxu0 }
 0x6c5   : > { %v4900_v46 = vpop.f32.mrf.mxu1 }
 0x6c6   : > { %v4446_v42 = vadd.f32 %v5431_v40, %v4334_v9  ;;  %v4178_v59 = vadd.f32 %v4899_v19, %v8998_v4 }
 0x6c7   : > { %v4901_v12 = vpop.f32.mrf.mxu1 }
 0x6c8   : > { %4478 = vst.msk [vmem:[%s9005_s0 + $0x28] sm:$0xff] %vm366_vm0, %v4446_v42  ;;  %v4339_v62 = vadd.f32 %v5039_v10, %v4178_v59  ;;  %v4902_v37 = vadd.f32 %v4901_v12, %v4900_v46  ;;  %v5439_v42 = vld [vmem:[%s5632_s25 + $0x68] sm:$0xff]  ;;  %v5051_v12 = vpop.f32.mrf.mxu0 }
 0x6c9   : > { %v4903_v20 = vpop.f32.mrf.mxu1 }
 0x6ca   : > { %v4447_v5 = vadd.f32 %v5432_v57, %v4339_v62  ;;  %v4181_v22 = vadd.f32 %v4902_v37, %v8998_v4 }
 0x6cb   : > { %v4904_v8 = vpop.f32.mrf.mxu1 }
 0x6cc   : > { %4479 = vst.msk [vmem:[%s9005_s0 + $0x30] sm:$0xff] %vm366_vm0, %v4447_v5  ;;  %v4342_v30 = vadd.f32 %v5040_v7, %v4181_v22  ;;  %v4905_v25 = vadd.f32 %v4904_v8, %v4903_v20  ;;  %v5440_v5 = vld [vmem:[%s5632_s25 + $0x70] sm:$0xff]  ;;  %v4378_v8 = vpop.f32.mrf.mxu0 }
 0x6cd   : > { %v4906_v15 = vpop.f32.mrf.mxu1 }
 0x6ce   : > { %v4448_v14 = vadd.f32 %v5433_v26, %v4342_v30  ;;  %v4186_v1 = vadd.f32 %v4905_v25, %v8998_v4 }
 0x6cf   : > { %v4907_v63 = vpop.f32.mrf.mxu1 }
 0x6d0   : > { %4480 = vst.msk [vmem:[%s9005_s0 + $0x38] sm:$0xff] %vm366_vm0, %v4448_v14  ;;  %v4347_v18 = vadd.f32 %v4346_v41, %v4186_v1  ;;  %v4908_v44 = vadd.f32 %v4907_v63, %v4906_v15  ;;  %v5441_v14 = vld [vmem:[%s5632_s25 + $0x78] sm:$0xff]  ;;  %v5052_v63 = vpop.f32.mrf.mxu0 }
 0x6d1   : > { %v4909_v11 = vpop.f32.mrf.mxu1 }
 0x6d2   : > { %v4449_v45 = vadd.f32 %v5434_v3, %v4347_v18  ;;  %v4189_v28 = vadd.f32 %v4908_v44, %v8998_v4 }
 0x6d3   : > { %v4910_v53 = vpop.f32.mrf.mxu1 }
 0x6d4   : > { %4481 = vst.msk [vmem:[%s9005_s0 + $0x40] sm:$0xff] %vm366_vm0, %v4449_v45  ;;  %v4350_v36 = vadd.f32 %v4349_v39, %v4189_v28  ;;  %v4911_v47 = vadd.f32 %v4910_v53, %v4909_v11  ;;  %v5442_v45 = vld [vmem:[%s5632_s25 + $0x80] sm:$0xff]  ;;  %v4381_v53 = vpop.f32.mrf.mxu0 }
 0x6d5   : > { %v4912_v23 = vpop.f32.mrf.mxu1 }
 0x6d6   : > { %v4450_v31 = vadd.f32 %v5435_v27, %v4350_v36  ;;  %v4194_v10 = vadd.f32 %v4911_v47, %v8998_v4 }
 0x6d7   : > { %v4913_v6 = vpop.f32.mrf.mxu1 }
 0x6d8   : > { %4482 = vst.msk [vmem:[%s9005_s0 + $0x48] sm:$0xff] %vm366_vm0, %v4450_v31  ;;  %v4355_v32 = vadd.f32 %v5043_v13, %v4194_v10  ;;  %v4914_v49 = vadd.f32 %v4913_v6, %v4912_v23  ;;  %v5443_v31 = vld [vmem:[%s5632_s25 + $0x88] sm:$0xff]  ;;  %v5055_v6 = vpop.f32.mrf.mxu0 }
 0x6d9   : > { %v4915_v48 = vpop.f32.mrf.mxu1 }
 0x6da   : > { %v4451_v17 = vadd.f32 %v5436_v61, %v4355_v32  ;;  %v4197_v50 = vadd.f32 %v4914_v49, %v8998_v4 }
 0x6db   : > { %v4916_v0 = vpop.f32.mrf.mxu1 }
 0x6dc   : > { %4483 = vst.msk [vmem:[%s9005_s0 + $0x50] sm:$0xff] %vm366_vm0, %v4451_v17  ;;  %v4358_v21 = vadd.f32 %v5044_v56, %v4197_v50  ;;  %v4917_v54 = vadd.f32 %v4916_v0, %v4915_v48  ;;  %v5444_v17 = vld [vmem:[%s5632_s25 + $0x90] sm:$0xff]  ;;  %v4394_v0 = vpop.f32.mrf.mxu0 }
 0x6dd   : > { %v4918_v24 = vpop.f32.mrf.mxu1 }
 0x6de   : > { %v4452_v38 = vadd.f32 %v5437_v33, %v4358_v21  ;;  %v4202_v7 = vadd.f32 %v4917_v54, %v8998_v4 }
 0x6df   : > { %v4919_v58 = vpop.f32.mrf.mxu1 }
 0x6e0   : > { %4484 = vst.msk [vmem:[%s9005_s0 + $0x58] sm:$0xff] %vm366_vm0, %v4452_v38  ;;  %v4363_v2 = vadd.f32 %v4362_v16, %v4202_v7  ;;  %v4920_v60 = vadd.f32 %v4919_v58, %v4918_v24  ;;  %v5445_v38 = vld [vmem:[%s5632_s25 + $0x98] sm:$0xff]  ;;  %v5056_v58 = vpop.f32.mrf.mxu0 }
 0x6e1   : > { %v4921_v35 = vpop.f32.mrf.mxu1 }
 0x6e2   : > { %v4453_v43 = vadd.f32 %v5438_v34, %v4363_v2  ;;  %v4205_v55 = vadd.f32 %v4920_v60, %v8998_v4 }
 0x6e3   : > { %v4922_v9 = vpop.f32.mrf.mxu1 }
 0x6e4   : > { %4485 = vst.msk [vmem:[%s9005_s0 + $0x60] sm:$0xff] %vm366_vm0, %v4453_v43  ;;  %v4366_v19 = vadd.f32 %v4365_v51, %v4205_v55  ;;  %v4923_v46 = vadd.f32 %v4922_v9, %v4921_v35  ;;  %v5446_v43 = vld [vmem:[%s5632_s25 + $0xa0] sm:$0xff]  ;;  %v4397_v9 = vpop.f32.mrf.mxu0 }
 0x6e5   : > { %v4924_v40 = vpop.f32.mrf.mxu1 }
 0x6e6   : > { %v4454_v59 = vadd.f32 %v5439_v42, %v4366_v19  ;;  %v4210_v13 = vadd.f32 %v4923_v46, %v8998_v4 }
 0x6e7   : > { %v4925_v62 = vpop.f32.mrf.mxu1 }
 0x6e8   : > { %4486 = vst.msk [vmem:[%s9005_s0 + $0x68] sm:$0xff] %vm366_vm0, %v4454_v59  ;;  %v4371_v37 = vadd.f32 %v5047_v29, %v4210_v13  ;;  %v4926_v20 = vadd.f32 %v4925_v62, %v4924_v40  ;;  %v5447_v59 = vld [vmem:[%s5632_s25 + $0xa8] sm:$0xff]  ;;  %v5059_v62 = vpop.f32.mrf.mxu0 }
 0x6e9   : > { %v4927_v57 = vpop.f32.mrf.mxu1 }
 0x6ea   : > { %v4455_v22 = vadd.f32 %v5440_v5, %v4371_v37  ;;  %v4213_v41 = vadd.f32 %v4926_v20, %v8998_v4 }
 0x6eb   : > { %v4928_v30 = vpop.f32.mrf.mxu1 }
 0x6ec   : > { %4487 = vst.msk [vmem:[%s9005_s0 + $0x70] sm:$0xff] %vm366_vm0, %v4455_v22  ;;  %v4374_v25 = vadd.f32 %v5048_v52, %v4213_v41  ;;  %v4929_v15 = vadd.f32 %v4928_v30, %v4927_v57  ;;  %v5448_v22 = vld [vmem:[%s5632_s25 + $0xb0] sm:$0xff]  ;;  %v4410_v30 = vpop.f32.mrf.mxu0 }
 0x6ed   : > { %v4930_v26 = vpop.f32.mrf.mxu1 }
 0x6ee   : > { %v4456_v1 = vadd.f32 %v5441_v14, %v4374_v25  ;;  %v4218_v56 = vadd.f32 %v4929_v15, %v8998_v4 }
 0x6ef   : > { %v4931_v18 = vpop.f32.mrf.mxu1 }
 0x6f0   : > { %4488 = vst.msk [vmem:[%s9005_s0 + $0x78] sm:$0xff] %vm366_vm0, %v4456_v1  ;;  %v4379_v44 = vadd.f32 %v4378_v8, %v4218_v56  ;;  %v4932_v11 = vadd.f32 %v4931_v18, %v4930_v26  ;;  %v5449_v1 = vld [vmem:[%s5632_s25 + $0xb8] sm:$0xff]  ;;  %v5060_v18 = vpop.f32.mrf.mxu0 }
 0x6f1   : > { %v4933_v3 = vpop.f32.mrf.mxu1 }
 0x6f2   : > { %v4457_v28 = vadd.f32 %v5442_v45, %v4379_v44  ;;  %v4221_v39 = vadd.f32 %v4932_v11, %v8998_v4 }
 0x6f3   : > { %v4934_v36 = vpop.f32.mrf.mxu1 }
 0x6f4   : > { %4489 = vst.msk [vmem:[%s9005_s0 + $0x80] sm:$0xff] %vm366_vm0, %v4457_v28  ;;  %v4382_v47 = vadd.f32 %v4381_v53, %v4221_v39  ;;  %v4935_v23 = vadd.f32 %v4934_v36, %v4933_v3  ;;  %v5450_v28 = vld [vmem:[%s5632_s25 + $0xc0] sm:$0xff]  ;;  %v4413_v36 = vpop.f32.mrf.mxu0 }
 0x6f5   : > { %v4936_v27 = vpop.f32.mrf.mxu1 }
 0x6f6   : > { %v4458_v10 = vadd.f32 %v5443_v31, %v4382_v47  ;;  %v4226_v29 = vadd.f32 %v4935_v23, %v8998_v4 }
 0x6f7   : > { %v4937_v32 = vpop.f32.mrf.mxu1 }
 0x6f8   : > { %4490 = vst.msk [vmem:[%s9005_s0 + $0x88] sm:$0xff] %vm366_vm0, %v4458_v10  ;;  %v4387_v49 = vadd.f32 %v5051_v12, %v4226_v29  ;;  %v4938_v48 = vadd.f32 %v4937_v32, %v4936_v27  ;;  %v5451_v10 = vld [vmem:[%s5632_s25 + $0xc8] sm:$0xff] }
 0x6f9   : > { %v4939_v61 = vpop.f32.mrf.mxu1 }
 0x6fa   : > { %v4459_v50 = vadd.f32 %v5444_v17, %v4387_v49  ;;  %v4229_v16 = vadd.f32 %v4938_v48, %v8998_v4  ;;  %v5452_v17 = vld [vmem:[%s5632_s25 + $0xd0] sm:$0xff] }
 0x6fb   : > { %v4940_v21 = vpop.f32.mrf.mxu1 }
 0x6fc   : > { %4491 = vst.msk [vmem:[%s9005_s0 + $0x90] sm:$0xff] %vm366_vm0, %v4459_v50  ;;  %v4390_v54 = vadd.f32 %v5052_v63, %v4229_v16  ;;  %v4941_v24 = vadd.f32 %v4940_v21, %v4939_v61 }
 0x6fd   : > { %v4942_v33 = vpop.f32.mrf.mxu1 }
 0x6fe   : > { %v4460_v7 = vadd.f32 %v5445_v38, %v4390_v54  ;;  %v4234_v52 = vadd.f32 %v4941_v24, %v8998_v4  ;;  %v5453_v24 = vld [vmem:[%s5632_s25 + $0xd8] sm:$0xff] }
 0x6ff   : > { %v4943_v2 = vpop.f32.mrf.mxu1 }
 0x700   : > { %4492 = vst.msk [vmem:[%s9005_s0 + $0x98] sm:$0xff] %vm366_vm0, %v4460_v7  ;;  %v4395_v60 = vadd.f32 %v4394_v0, %v4234_v52  ;;  %v4944_v35 = vadd.f32 %v4943_v2, %v4942_v33 }
 0x701   : > { %v4945_v34 = vpop.f32.mrf.mxu1 }
 0x702   : > { %v4461_v55 = vadd.f32 %v5446_v43, %v4395_v60  ;;  %v4237_v51 = vadd.f32 %v4944_v35, %v8998_v4 }
 0x703   : > { %v4946_v19 = vpop.f32.mrf.mxu1 }
 0x704   : > { %4493 = vst.msk [vmem:[%s9005_s0 + $0xa0] sm:$0xff] %vm366_vm0, %v4461_v55  ;;  %v4398_v46 = vadd.f32 %v4397_v9, %v4237_v51  ;;  %v4947_v40 = vadd.f32 %v4946_v19, %v4945_v34 }
 0x705   : > { %v4948_v42 = vpop.f32.mrf.mxu1 }
 0x706   : > { %v4462_v13 = vadd.f32 %v5447_v59, %v4398_v46  ;;  %v4242_v12 = vadd.f32 %v4947_v40, %v8998_v4  ;;  %v5454_v40 = vld [vmem:[%s5632_s25 + $0xf0] sm:$0xff] }
 0x707   : > { %v4949_v37 = vpop.f32.mrf.mxu1 }
 0x708   : > { %4494 = vst.msk [vmem:[%s9005_s0 + $0xa8] sm:$0xff] %vm366_vm0, %v4462_v13  ;;  %v4403_v20 = vadd.f32 %v5055_v6, %v4242_v12  ;;  %v4950_v57 = vadd.f32 %v4949_v37, %v4948_v42 }
 0x709   : > { %v4951_v5 = vpop.f32.mrf.mxu1 }
 0x70a   : > { %v4463_v41 = vadd.f32 %v5448_v22, %v4403_v20  ;;  %v4245_v8 = vadd.f32 %v4950_v57, %v8998_v4  ;;  %v5456_v22 = vld [vmem:[%s5632_s25 + $0xf8] sm:$0xff] }
 0x70b   : > { %v4952_v25 = vpop.f32.mrf.mxu1 }
 0x70c   : > { %4495 = vst.msk [vmem:[%s9005_s0 + $0xb0] sm:$0xff] %vm366_vm0, %v4463_v41  ;;  %v4406_v15 = vadd.f32 %v5056_v58, %v4245_v8  ;;  %v4953_v26 = vadd.f32 %v4952_v25, %v4951_v5 }
 0x70d   : > { %v4954_v14 = vpop.f32.mrf.mxu1 }
 0x70e   : > { %v4464_v56 = vadd.f32 %v5449_v1, %v4406_v15  ;;  %v4250_v63 = vadd.f32 %v4953_v26, %v8998_v4 }
 0x70f   : > { %v4955_v44 = vpop.f32.mrf.mxu1 }
 0x710   : > { %4496 = vst.msk [vmem:[%s9005_s0 + $0xb8] sm:$0xff] %vm366_vm0, %v4464_v56  ;;  %v4411_v11 = vadd.f32 %v4410_v30, %v4250_v63  ;;  %v4956_v3 = vadd.f32 %v4955_v44, %v4954_v14 }
 0x711   : > { %v4957_v45 = vpop.f32.mrf.mxu1 }
 0x712   : > { %v4465_v39 = vadd.f32 %v5450_v28, %v4411_v11  ;;  %v4253_v53 = vadd.f32 %v4956_v3, %v8998_v4 }
 0x713   : > { %v4958_v47 = vpop.f32.mrf.mxu1 }
 0x714   : > { %4497 = vst.msk [vmem:[%s9005_s0 + $0xc0] sm:$0xff] %vm366_vm0, %v4465_v39  ;;  %v4414_v23 = vadd.f32 %v4413_v36, %v4253_v53  ;;  %v4959_v27 = vadd.f32 %v4958_v47, %v4957_v45 }
 0x715   : > { %v4960_v31 = vpop.f32.mrf.mxu1 }
 0x716   : > { %v4466_v29 = vadd.f32 %v5451_v10, %v4414_v23  ;;  %v4258_v6 = vadd.f32 %v4959_v27, %v8998_v4 }
 0x717   : > { %v4961_v32 = vpop.f32.mrf.mxu1 }
 0x718   : > { %4498 = vst.msk [vmem:[%s9005_s0 + $0xc8] sm:$0xff] %vm366_vm0, %v4466_v29  ;;  %v4419_v49 = vadd.f32 %v5059_v62, %v4258_v6  ;;  %v4962_v48 = vadd.f32 %v4961_v32, %v4960_v31  ;;  %v5455_v62 = vld [vmem:[%s5632_s25 + $0xe0] sm:$0xff] }
 0x719   : > { %v4963_v61 = vpop.f32.mrf.mxu1 }
 0x71a   : > { %v4467_v50 = vadd.f32 %v5452_v17, %v4419_v49  ;;  %v4261_v16 = vadd.f32 %v4962_v48, %v8998_v4 }
 0x71b   : > { %v4964_v0 = vpop.f32.mrf.mxu1 }
 0x71c   : > { %4499 = vst.msk [vmem:[%s9005_s0 + $0xd0] sm:$0xff] %vm366_vm0, %v4467_v50  ;;  %v4422_v21 = vadd.f32 %v5060_v18, %v4261_v16  ;;  %v4965_v60 = vadd.f32 %v4964_v0, %v4963_v61 }
 0x71d   : > { %v4966_v54 = vpop.f32.mrf.mxu1 }
 0x71e   : > { %v4468_v33 = vadd.f32 %v5453_v24, %v4422_v21  ;;  %v4266_v19 = vadd.f32 %v4965_v60, %v8998_v4 }
 0x71f   : > { %v4967_v38 = vpop.f32.mrf.mxu1 }
 0x720   : > { %4500 = vst.msk [vmem:[%s9005_s0 + $0xd8] sm:$0xff] %vm366_vm0, %v4468_v33  ;;  %v4968_v51 = vadd.f32 %v4967_v38, %v4966_v54 }
 0x721   : > { %v4969_v7 = vpop.f32.mrf.mxu1 }
 0x722   : > { %v4269_v57 = vadd.f32 %v4968_v51, %v8998_v4 }
 0x723   : > { %v4970_v52 = vpop.f32.mrf.mxu1 }
 0x724   : > { %v4971_v58 = vadd.f32 %v4970_v52, %v4969_v7 }
 0x725   : > { %v4972_v2 = vpop.f32.mrf.mxu1 }
 0x726   : > { %v4274_v43 = vadd.f32 %v4971_v58, %v8998_v4 }
 0x727   : > { %v4973_v35 = vpop.f32.mrf.mxu1 }
 0x728   : > { %v4974_v34 = vadd.f32 %v4973_v35, %v4972_v2 }
 0x729   : > { %v5063_v55 = vpop.f32.mrf.mxu1 }
 0x72a   : > { %v4435_v9 = vadd.f32 %v5063_v55, %v4274_v43  ;;  %v4277_v13 = vadd.f32 %v4974_v34, %v8998_v4  ;;  %v5457_v4 = vld [vmem:[%s5632_s25 + $0xe8] sm:$0xff] }
 0x72b   : > { %v4426_v46 = vpop.f32.mrf.mxu1 }
 0x72c   : > { %v4471_v42 = vadd.f32 %v5454_v40, %v4435_v9  ;;  %v4427_v59 = vadd.f32 %v4426_v46, %v4266_v19 }
 0x72d   : > { %v5064_v12 = vpop.f32.mrf.mxu1 }
 0x72e   : > { %4503 = vst.msk [vmem:[%s9005_s0 + $0xf0] sm:$0xff] %vm366_vm0, %v4471_v42  ;;  %v4469_v37 = vadd.f32 %v5455_v62, %v4427_v59  ;;  %v4438_v20 = vadd.f32 %v5064_v12, %v4277_v13 }
 0x72f   : > { %v4429_v5 = vpop.f32.mrf.mxu1 }
 0x730   : > { %4501 = vst.msk [vmem:[%s9005_s0 + $0xe0] sm:$0xff] %vm366_vm0, %v4469_v37  ;;  %v4472_v41 = vadd.f32 %v5456_v22, %v4438_v20  ;;  %v4430_v8 = vadd.f32 %v4429_v5, %v4269_v57 }
 0x732   : > { %4504 = vst.msk [vmem:[%s9005_s0 + $0xf8] sm:$0xff] %vm366_vm0, %v4472_v41  ;;  %v4470_v30 = vadd.f32 %v5457_v4, %v4430_v8 }
 0x734   : > { %4502 = vst.msk [vmem:[%s9005_s0 + $0xe8] sm:$0xff] %vm366_vm0, %v4470_v30 }
 0x735   : > { %5471 = shalt.err (!%p5468_p3)
}
 0x736   : > { %s5472_s25 = scalar_lea.hbm %s9132_s29, 4096  ;;  %s5476_s24 = scalar_lea.hbm %s9192_s9, 8192 }
 0x737   : > { %p5473_p4 = scmp.ne.s32.totalorder %s9132_s29, %s5472_s25  ;;  %p5477_p9 = scmp.lt.s32.totalorder %s9132_s29, %s9192_s9 }
 0x738   : > { %p5478_p10 = scmp.lt.s32.totalorder %s5476_s24, %s5472_s25 }
 0x739   : > { %p5474_p7 = pnand %p5473_p4, %p5617_p5 }
 0x73a   : > { %p5479_p11 = por %p5478_p10, %p5477_p9 }
 0x73b   : > { %p5475_p8 = pneg %p5474_p7 }
 0x73d   : > { %p5480_p12 = pnand %p5479_p11, %p5475_p8 }
 0x73f   : > { %5483 = shalt.err (!%p5480_p12)
}
 0x740   : > { %s5527_s14 = smov 128   ;;  %s5528_s1 = smov 8  }
 0x741   : > { %5081 = dma.vmem_to_hbm [thread:$0]  (%p5617_p5), %s9134_s17, 4096, %s9132_s29, %s9143_s13, %s5527_s14, %s5527_s14, %s5528_s1  }
 0x742 PF: > { %p5087_p13 = scmp.ge.s32.totalorder %s5518_s12, 2  ;;  %s4534_s2 = sand.u32 1, %s5506_s30  }
 0x743   : > { %s4535_s27 = scalar_lea.sflag [#allocation3], %s4534_s2 }
 0x744   : > { %p5084_p0 = pnand %p5087_p13, %p5621_p6 }
 0x746   : > { %p5085_p1 = pneg %p5084_p0 }
 0x748   : > { %5501 = dma.done.wait (%p5085_p1), %s4535_s27, 4096  }
 0x749   : > { %5503 = vsyncadd (%p5085_p1), %s4535_s27, 4294963200  ;;  %p19_p2 = scmp.ge.s32.totalorder %s5604_s15, 4   ;;  %s9405_s30 = smov %s5510_s10 }
 0x74a   : > { %s9406_s10 = smov %s5514_s11  ;;  %s9407_s11 = smov %s5615_s18 }
 0x74b   : > { %s9408_s12 = smov %s5604_s15  ;;  %21 = sbr.rel (!%p19_p2) target bundleno = 7 (0x7), region = 91 }
 0x750   :  { %4540 = vsyncpa [#allocation3], 1 }
 0x751   :  { %4542 = vsyncpa [#allocation3 + $0x1], 1 }

</bundles_post_ra>
